<compile_context>
chip_gen: v5e
topology: v5e:2x2
jax: 0.10.0
libtpu: 0.0.40
codegen_flags: <defaults>
</compile_context>

<pallas_src>
import functools

import jax
import jax.numpy as jnp
from jax import lax
from jax.experimental import pallas as pl
from jax.experimental.pallas import tpu as pltpu

_EPS = 1e-5
_LEAKY_SLOPE = 0.01  # nn.LeakyReLU() default


def _bdot(a, b):
    """bf16 MXU matmul with f32 accumulation (DEFAULT precision)."""
    return jnp.dot(a.astype(jnp.bfloat16), b.astype(jnp.bfloat16),
                   preferred_element_type=jnp.float32)


def holoformer_encoder_layer_kernel(x_ref, ltri_ref, w1_ref, b1_ref,
                                    w2f_ref, b2f_ref, f_ref, g_ref,
                                    o_ref, carry_ref, s_ref, h_ref):
    t = pl.program_id(1)
    tT, D = x_ref.shape
    H = w2f_ref.shape[1]                      # per-head hidden width (4*D)
    # Row-chunk for the frequency-domain stage: bounds live vregs (≈12
    # (C, D) f32 spectra + products) so the compiler does not spill to VMEM.
    C = 32 if tT % 32 == 0 else tT
    n_chunks = tT // C

    x = x_ref[...]                            # (tT, D) f32

    # NOTE: carry correctness relies on the grid order (batch axis outer /
    # "parallel", seq-tile axis inner / "arbitrary"): t runs 0..n_t-1
    # sequentially for each batch on one core, and is reset at t == 0.
    @pl.when(t == 0)
    def _():
        carry_ref[...] = jnp.zeros_like(carry_ref)

    # ---- exclusive causal prefix sum, f32-accurate --------------------------
    # ltri is a host-built strictly-lower-triangular 0/1 mask (exact in bf16).
    # Splitting x into bf16 hi/lo parts makes the two DEFAULT MXU passes
    # reproduce the f32 cumsum (mask entries are exact, accumulation is f32).
    ltri = ltri_ref[...]                      # (tT, tT) bf16
    x_hi = x.astype(jnp.bfloat16)
    x_lo = (x - x_hi.astype(jnp.float32)).astype(jnp.bfloat16)
    s = (carry_ref[...]
         + jnp.dot(ltri, x_hi, preferred_element_type=jnp.float32)
         + jnp.dot(ltri, x_lo, preferred_element_type=jnp.float32))
    carry_ref[...] = carry_ref[...] + jnp.sum(x, axis=0, keepdims=True)
    s_ref[...] = s

    # ---- five MLP first layers: one fused K=2D matmul ------------------------
    sx = jnp.concatenate([s.astype(jnp.bfloat16), x_hi], axis=1)   # (tT, 2D) bf16
    h = jnp.dot(sx, w1_ref[...], preferred_element_type=jnp.float32) + b1_ref[...]
    h = jnp.where(h > 0, h, _LEAKY_SLOPE * h)                      # LeakyReLU
    h_ref[...] = h.astype(jnp.bfloat16)       # single bf16 cast, stored once

    b2f = b2f_ref[...]                        # (5, 2D) f32

    # ---- frequency-domain HRR stage, chunked over rows ----------------------
    @pl.loop(0, n_chunks)
    def _(c):
        r0 = pl.multiple_of(c * C, C)
        sc = s_ref[pl.ds(r0, C), :]           # (C, D) f32
        xc = x_ref[pl.ds(r0, C), :]           # (C, D) f32

        # spectrum of s:   s @ [Cos | -Sin]  ->  [Re(S) | Im(S)]
        sf = _bdot(sc, f_ref[...])            # (C, 2D) f32
        s_r, s_i = sf[:, :D], sf[:, D:]

        def head_spec(i):
            # Head spectrum directly (W2 folded through the DFT on the host),
            # then frequency-domain unit projection.
            hc = h_ref[pl.ds(r0, C), pl.ds(i * H, H)]              # (C, H) bf16
            zf = jnp.dot(hc, w2f_ref[i],
                         preferred_element_type=jnp.float32) + b2f[i:i + 1, :]
            ar, ai = zf[:, :D], zf[:, D:]
            inv = pl.reciprocal(jnp.sqrt(ar * ar + ai * ai) + _EPS, approx=True)
            return ar * inv, ai * inv

        ea_r, ea_i = head_spec(0)
        eb_r, eb_i = head_spec(1)
        rw_r, rw_i = head_spec(2)
        rm_r, rm_i = head_spec(3)
        rb_r, rb_i = head_spec(4)

        def cmul(ar, ai, br, bi):
            return ar * br - ai * bi, ar * bi + ai * br

        # Exact compression of the bind/unbind chain:
        #   W = Pw*Eb - |Pw|^2 S,  M = Pm*Eb - |Pm|^2 S,  B = Q*Ea - |Q|^2 S
        pw_r, pw_i = cmul(ea_r, ea_i, rw_r, rw_i)      # Pw = Ea*Rw
        pm_r, pm_i = cmul(ea_r, ea_i, rm_r, rm_i)      # Pm = Ea*Rm
        q_r, q_i = cmul(eb_r, eb_i, rb_r, rb_i)        # Q  = Eb*Rb

        t1_r, t1_i = cmul(pw_r + pm_r, pw_i + pm_i, eb_r, eb_i)    # (Pw+Pm)*Eb
        t2_r, t2_i = cmul(q_r, q_i, ea_r, ea_i)                    # Q*Ea
        cmag = (pw_r * pw_r + pw_i * pw_i) + (pm_r * pm_r + pm_i * pm_i) \
             + (q_r * q_r + q_i * q_i)                             # real, >= 0

        y_r = t1_r + t2_r - cmag * s_r
        y_i = t1_i + t2_i - cmag * s_i

        # single inverse real-DFT (bf16 DEFAULT) + residual, lane-dense store
        y = jnp.concatenate([y_r, y_i], axis=1)        # (C, 2D)
        mix = _bdot(y, g_ref[...])                     # (C, D)
        o_ref[pl.ds(r0, C), :] = xc + mix


@functools.partial(jax.jit, static_argnames=("t_tile",))
def holoformer_encoder_layer(x, w1s, b1s, w2s, b2s, *, t_tile=None):
    B, T, D = x.shape
    H = 4 * D
    assert w1s.shape == (5, 2 * D, H) and w2s.shape == (5, H, D)
    if t_tile is None:
        t_tile = T if T <= 256 else 256      # v6e/v5e can raise to 512 if T allows
    assert T % t_tile == 0, "T must be divisible by t_tile"
    assert t_tile == T or t_tile % 8 == 0
    n_t = T // t_tile
    f32 = jnp.float32

    # Fused real-DFT operators:  F = [C | -S] (D, 2D),  G = [C ; -S]/D (2D, D).
    k = jnp.arange(D, dtype=f32)
    ang = 2.0 * jnp.pi * jnp.outer(k, k) / D
    cosm, sinm = jnp.cos(ang), jnp.sin(ang)
    f_op = jnp.concatenate([cosm, -sinm], axis=1)                  # (D, 2D)
    g_op = jnp.concatenate([cosm, -sinm], axis=0) / D              # (2D, D)

    # Fold the second MLP layer through the forward DFT: heads emit spectra.
    w2f = jnp.einsum("ihd,de->ihe", w2s.astype(f32), f_op,
                     precision=lax.Precision.HIGHEST)              # (5, H, 2D)
    b2f = jnp.einsum("id,de->ie", b2s.astype(f32), f_op,
                     precision=lax.Precision.HIGHEST)              # (5, 2D)

    # Fuse the five first-layer weights into one (2D, 5H) bf16 operand.
    w1_cat = jnp.transpose(w1s, (1, 0, 2)).reshape(2 * D, 5 * H).astype(jnp.bfloat16)
    b1_cat = b1s.reshape(1, 5 * H).astype(f32)

    # Strictly lower-triangular causal mask, built once on the host (0/1 exact
    # in bf16) so the kernel does no per-step iota/compare/cast.
    ltri = jnp.tril(jnp.ones((t_tile, t_tile), f32), k=-1).astype(jnp.bfloat16)

    return pl.pallas_call(
        holoformer_encoder_layer_kernel,
        out_shape=jax.ShapeDtypeStruct((B, T, D), f32),
        grid=(B, n_t),
        in_specs=[
            pl.BlockSpec((None, t_tile, D), lambda b, t: (b, t, 0)),   # x tile
            pl.BlockSpec((t_tile, t_tile), lambda b, t: (0, 0)),       # causal mask
            pl.BlockSpec((2 * D, 5 * H), lambda b, t: (0, 0)),         # fused W1
            pl.BlockSpec((1, 5 * H), lambda b, t: (0, 0)),             # fused b1
            pl.BlockSpec((5, H, 2 * D), lambda b, t: (0, 0, 0)),       # W2 @ F
            pl.BlockSpec((5, 2 * D), lambda b, t: (0, 0)),             # b2 @ F
            pl.BlockSpec((D, 2 * D), lambda b, t: (0, 0)),             # fwd DFT
            pl.BlockSpec((2 * D, D), lambda b, t: (0, 0)),             # inv DFT
        ],
        out_specs=pl.BlockSpec((None, t_tile, D), lambda b, t: (b, t, 0)),
        scratch_shapes=[
            pltpu.VMEM((1, D), f32),                     # cross-tile cumsum carry
            pltpu.VMEM((t_tile, D), f32),                # s (prefix sums)
            pltpu.VMEM((t_tile, 5 * H), jnp.bfloat16),   # post-LeakyReLU h, bf16
        ],
        compiler_params=pltpu.CompilerParams(
            dimension_semantics=("parallel", "arbitrary"),
            vmem_limit_bytes=48 * 1024 * 1024),          # headroom for v7x (64 MiB)
    )(x.astype(f32), ltri, w1_cat, b1_cat,
      w2f.astype(jnp.bfloat16), b2f.astype(f32),
      f_op.astype(jnp.bfloat16), g_op.astype(jnp.bfloat16))


# ---------------- pure-JAX reference (faithful to the PyTorch module) --------
def _ref_forward(x, w1s, b1s, w2s, b2s):
    def fft(a):
        return jnp.fft.fft(a, axis=-1)

    def ifft_r(A):
        return jnp.real(jnp.fft.ifft(A, axis=-1))

    def unit_projection(a):
        A = fft(a)
        return ifft_r(A / (jnp.abs(A) + _EPS))

    def bind(a, b):
        return ifft_r(fft(a) * fft(b))

    def inverse(a):
        return ifft_r(jnp.conj(fft(a)))

    def unbind(sv, a):
        return bind(sv, inverse(a))

    s = jnp.cumsum(x, axis=1) - x
    sx = jnp.concatenate([s, x], axis=-1)

    def mlp(i):
        h = sx @ w1s[i] + b1s[i]
        h = jnp.where(h > 0, h, _LEAKY_SLOPE * h)
        return h @ w2s[i] + b2s[i]

    e_a, e_b, r_w, r_m, r_b = (unit_projection(mlp(i)) for i in range(5))
    w_hat = unbind(unbind(s, r_w), e_a)
    m_hat = unbind(unbind(s, r_m), e_a)
    b_hat = unbind(unbind(s, r_b), e_b)
    w = bind(bind(e_a, r_w), e_b) - bind(bind(e_a, r_w), w_hat)
    m = bind(bind(e_a, r_m), e_b) - bind(bind(e_a, r_m), m_hat)
    b = bind(bind(e_a, r_b), e_b) - bind(bind(e_b, r_b), b_hat)
    return x + w + m + b


if __name__ == "__main__":
    # Small but TPU-aligned demo: lane dim D = 128, two sequence tiles of 8.
    B, T, D = 2, 16, 128
    key = jax.random.PRNGKey(0)
    kx, kw1, kb1, kw2, kb2 = jax.random.split(key, 5)

    x = jax.random.normal(kx, (B, T, D), jnp.float32)
    w1s = 0.05 * jax.random.normal(kw1, (5, 2 * D, 4 * D), jnp.float32)
    b1s = 0.01 * jax.random.normal(kb1, (5, 4 * D), jnp.float32)
    w2s = 0.05 * jax.random.normal(kw2, (5, 4 * D, D), jnp.float32)
    b2s = 0.01 * jax.random.normal(kb2, (5, D), jnp.float32)

    out = holoformer_encoder_layer(x, w1s, b1s, w2s, b2s, t_tile=8)
    out = jax.block_until_ready(out)

    assert out.shape == (B, T, D)
    assert bool(jnp.all(jnp.isfinite(out)))

    ref = _ref_forward(x, w1s, b1s, w2s, b2s)
    max_err = float(jnp.max(jnp.abs(out - ref)))
    scale = float(jnp.max(jnp.abs(ref))) + 1e-6
    # Every matmul (incl. both DFTs) now runs as a single bf16 MXU pass with
    # f32 accumulation, so a few-1e-3 relative error per chained pass is
    # expected; 3e-2 of the global scale leaves comfortable headroom.
    assert max_err < 3e-2 * scale, f"mismatch: {max_err} vs scale {scale}"

    print("KERNEL_OK")
</pallas_src>

<mosaic_0001>
module attributes {stable_mosaic.version = 11 : i64} {
  func.func @holoformer_encoder_layer_kernel(%arg0: i32, %arg1: i32, %arg2: memref<1x8x128xf32, #tpu.memory_space<vmem>>, %arg3: memref<8x8xbf16, #tpu.memory_space<vmem>>, %arg4: memref<256x2560xbf16, #tpu.memory_space<vmem>>, %arg5: memref<1x2560xf32, #tpu.memory_space<vmem>>, %arg6: memref<5x512x256xbf16, #tpu.memory_space<vmem>>, %arg7: memref<5x256xf32, #tpu.memory_space<vmem>>, %arg8: memref<128x256xbf16, #tpu.memory_space<vmem>>, %arg9: memref<256x128xbf16, #tpu.memory_space<vmem>>, %arg10: memref<1x8x128xf32, #tpu.memory_space<vmem>>, %arg11: memref<1x128xf32, #tpu.memory_space<vmem>>, %arg12: memref<8x128xf32, #tpu.memory_space<vmem>>, %arg13: memref<8x2560xbf16, #tpu.memory_space<vmem>>) attributes {dimension_semantics = [#tpu.dimension_semantics<parallel>, #tpu.dimension_semantics<arbitrary>], iteration_bounds = array<i64: 2, 2>, scalar_prefetch = 0 : i64, scratch_operands = 3 : i64, tpu.core_type = #tpu.core_type<tc>, window_params = [{transform_indices = @transform_0, window_bounds = array<i64: 1, 8, 128>}, {pipeline_mode = #tpu.pipeline_mode<synchronous>, transform_indices = @transform_1, window_bounds = array<i64: 8, 8>}, {pipeline_mode = #tpu.pipeline_mode<synchronous>, transform_indices = @transform_2, window_bounds = array<i64: 256, 2560>}, {pipeline_mode = #tpu.pipeline_mode<synchronous>, transform_indices = @transform_3, window_bounds = array<i64: 1, 2560>}, {pipeline_mode = #tpu.pipeline_mode<synchronous>, transform_indices = @transform_4, window_bounds = array<i64: 5, 512, 256>}, {pipeline_mode = #tpu.pipeline_mode<synchronous>, transform_indices = @transform_5, window_bounds = array<i64: 5, 256>}, {pipeline_mode = #tpu.pipeline_mode<synchronous>, transform_indices = @transform_6, window_bounds = array<i64: 128, 256>}, {pipeline_mode = #tpu.pipeline_mode<synchronous>, transform_indices = @transform_7, window_bounds = array<i64: 256, 128>}, {transform_indices = @transform_8, window_bounds = array<i64: 1, 8, 128>}]} {
    %c0 = arith.constant 0 : index
    %c0_0 = arith.constant 0 : index
    %c0_1 = arith.constant 0 : index
    %0 = vector.load %arg2[%c0, %c0_0, %c0_1] : memref<1x8x128xf32, #tpu.memory_space<vmem>>, vector<1x8x128xf32>
    %1 = vector.shape_cast %0 : vector<1x8x128xf32> to vector<8x128xf32>
    %c0_i32 = arith.constant 0 : i32
    %2 = arith.cmpi eq, %arg1, %c0_i32 : i32
    %3 = arith.extui %2 : i1 to i32
    %c0_i32_2 = arith.constant 0 : i32
    %4 = arith.cmpi ne, %3, %c0_i32_2 : i32
    scf.if %4 {
      %cst_62 = arith.constant 0.000000e+00 : f32
      %204 = vector.broadcast %cst_62 : f32 to vector<1x128xf32>
      %c0_63 = arith.constant 0 : index
      %c0_64 = arith.constant 0 : index
      %205 = vector.load %arg11[%c0_63, %c0_64] : memref<1x128xf32, #tpu.memory_space<vmem>>, vector<1x128xf32>
      tpu.vector_store %arg11[%c0_63, %c0_64], %204 {strides = array<i32>} : memref<1x128xf32, #tpu.memory_space<vmem>>, vector<1x128xf32>,
    } else {
    }
    %c0_3 = arith.constant 0 : index
    %c0_4 = arith.constant 0 : index
    %5 = vector.load %arg3[%c0_3, %c0_4] : memref<8x8xbf16, #tpu.memory_space<vmem>>, vector<8x8xbf16>
    %6 = arith.truncf %1 : vector<8x128xf32> to vector<8x128xbf16>
    %7 = arith.extf %6 : vector<8x128xbf16> to vector<8x128xf32>
    %8 = arith.subf %1, %7 : vector<8x128xf32>
    %9 = arith.truncf %8 : vector<8x128xf32> to vector<8x128xbf16>
    %c0_5 = arith.constant 0 : index
    %c0_6 = arith.constant 0 : index
    %10 = vector.load %arg11[%c0_5, %c0_6] : memref<1x128xf32, #tpu.memory_space<vmem>>, vector<1x128xf32>
    %cst = arith.constant dense<0.000000e+00> : vector<8x128xf32>
    %11 = tpu.matmul %5, %6, %cst {dimension_numbers = #tpu.dot_dimension_numbers<[1], [0], [0], [1], [0, 0, 1, 1], [], []>} : vector<8x8xbf16>, vector<8x128xbf16>, vector<8x128xf32> -> vector<8x128xf32>
    %12 = vector.broadcast %10 : vector<1x128xf32> to vector<8x128xf32>
    %13 = arith.addf %12, %11 : vector<8x128xf32>
    %cst_7 = arith.constant dense<0.000000e+00> : vector<8x128xf32>
    %14 = tpu.matmul %5, %9, %cst_7 {dimension_numbers = #tpu.dot_dimension_numbers<[1], [0], [0], [1], [0, 0, 1, 1], [], []>} : vector<8x8xbf16>, vector<8x128xbf16>, vector<8x128xf32> -> vector<8x128xf32>
    %15 = arith.addf %13, %14 : vector<8x128xf32>
    %c0_8 = arith.constant 0 : index
    %c0_9 = arith.constant 0 : index
    %16 = vector.load %arg11[%c0_8, %c0_9] : memref<1x128xf32, #tpu.memory_space<vmem>>, vector<1x128xf32>
    %cst_10 = arith.constant dense<0.000000e+00> : vector<128xf32>
    %17 = vector.multi_reduction <add>, %1, %cst_10 [0] : vector<8x128xf32> to vector<128xf32>
    %18 = vector.shape_cast %17 : vector<128xf32> to vector<1x128xf32>
    %19 = arith.addf %16, %18 : vector<1x128xf32>
    %c0_11 = arith.constant 0 : index
    %c0_12 = arith.constant 0 : index
    %20 = vector.load %arg11[%c0_11, %c0_12] : memref<1x128xf32, #tpu.memory_space<vmem>>, vector<1x128xf32>
    tpu.vector_store %arg11[%c0_11, %c0_12], %19 {strides = array<i32>} : memref<1x128xf32, #tpu.memory_space<vmem>>, vector<1x128xf32>,
    %c0_13 = arith.constant 0 : index
    %c0_14 = arith.constant 0 : index
    %21 = vector.load %arg12[%c0_13, %c0_14] : memref<8x128xf32, #tpu.memory_space<vmem>>, vector<8x128xf32>
    tpu.vector_store %arg12[%c0_13, %c0_14], %15 {strides = array<i32>} : memref<8x128xf32, #tpu.memory_space<vmem>>, vector<8x128xf32>,
    %22 = arith.truncf %15 : vector<8x128xf32> to vector<8x128xbf16>
    %23 = tpu.concatenate %22, %6 in 1 : vector<8x128xbf16>, vector<8x128xbf16> -> vector<8x256xbf16>
    %c0_15 = arith.constant 0 : index
    %c0_16 = arith.constant 0 : index
    %24 = vector.load %arg4[%c0_15, %c0_16] : memref<256x2560xbf16, #tpu.memory_space<vmem>>, vector<256x2560xbf16>
    %cst_17 = arith.constant dense<0.000000e+00> : vector<8x2560xf32>
    %25 = tpu.matmul %23, %24, %cst_17 {dimension_numbers = #tpu.dot_dimension_numbers<[1], [0], [0], [1], [0, 0, 1, 1], [], []>} : vector<8x256xbf16>, vector<256x2560xbf16>, vector<8x2560xf32> -> vector<8x2560xf32>
    %c0_18 = arith.constant 0 : index
    %c0_19 = arith.constant 0 : index
    %26 = vector.load %arg5[%c0_18, %c0_19] : memref<1x2560xf32, #tpu.memory_space<vmem>>, vector<1x2560xf32>
    %27 = vector.broadcast %26 : vector<1x2560xf32> to vector<8x2560xf32>
    %28 = arith.addf %25, %27 : vector<8x2560xf32>
    %cst_20 = arith.constant 0.000000e+00 : f32
    %29 = vector.broadcast %cst_20 : f32 to vector<8x2560xf32>
    %30 = arith.cmpf ogt, %28, %29 : vector<8x2560xf32>
    %cst_21 = arith.constant 0.00999999977 : f32
    %31 = vector.broadcast %cst_21 : f32 to vector<8x2560xf32>
    %32 = arith.mulf %31, %28 : vector<8x2560xf32>
    %33 = arith.select %30, %28, %32 : vector<8x2560xi1>, vector<8x2560xf32>
    %34 = arith.truncf %33 : vector<8x2560xf32> to vector<8x2560xbf16>
    %c0_22 = arith.constant 0 : index
    %c0_23 = arith.constant 0 : index
    %35 = vector.load %arg13[%c0_22, %c0_23] : memref<8x2560xbf16, #tpu.memory_space<vmem>>, vector<8x2560xbf16>
    tpu.vector_store %arg13[%c0_22, %c0_23], %34 {strides = array<i32>} : memref<8x2560xbf16, #tpu.memory_space<vmem>>, vector<8x2560xbf16>,
    %c0_24 = arith.constant 0 : index
    %c0_25 = arith.constant 0 : index
    %36 = vector.load %arg7[%c0_24, %c0_25] : memref<5x256xf32, #tpu.memory_space<vmem>>, vector<5x256xf32>
    %c0_i32_26 = arith.constant 0 : i32
    %c1_i32 = arith.constant 1 : i32
    %37 = arith.muli %c0_i32_26, %c1_i32 : i32
    %c0_i32_27 = arith.constant 0 : i32
    %38 = arith.addi %c0_i32_27, %37 : i32
    %c8_i32 = arith.constant 8 : i32
    %39 = arith.muli %38, %c8_i32 : i32
    %40 = tpu.assume_multiple %39, 8 : i32
    %41 = arith.index_cast %40 : i32 to index
    %c0_28 = arith.constant 0 : index
    %42 = vector.load %arg12[%41, %c0_28] : memref<8x128xf32, #tpu.memory_space<vmem>>, vector<8x128xf32>
    %c0_29 = arith.constant 0 : index
    %43 = arith.index_cast %40 : i32 to index
    %c0_30 = arith.constant 0 : index
    %44 = vector.load %arg2[%c0_29, %43, %c0_30] : memref<1x8x128xf32, #tpu.memory_space<vmem>>, vector<1x8x128xf32>
    %45 = vector.shape_cast %44 : vector<1x8x128xf32> to vector<8x128xf32>
    %c0_31 = arith.constant 0 : index
    %c0_32 = arith.constant 0 : index
    %46 = vector.load %arg8[%c0_31, %c0_32] : memref<128x256xbf16, #tpu.memory_space<vmem>>, vector<128x256xbf16>
    %47 = arith.truncf %42 : vector<8x128xf32> to vector<8x128xbf16>
    %cst_33 = arith.constant dense<0.000000e+00> : vector<8x256xf32>
    %48 = tpu.matmul %47, %46, %cst_33 {dimension_numbers = #tpu.dot_dimension_numbers<[1], [0], [0], [1], [0, 0, 1, 1], [], []>} : vector<8x128xbf16>, vector<128x256xbf16>, vector<8x256xf32> -> vector<8x256xf32>
    %49 = vector.extract_strided_slice %48 {offsets = [0, 0], sizes = [8, 128], strides = [1, 1]} : vector<8x256xf32> to vector<8x128xf32>
    %50 = vector.extract_strided_slice %48 {offsets = [0, 128], sizes = [8, 128], strides = [1, 1]} : vector<8x256xf32> to vector<8x128xf32>
    %51 = arith.index_cast %40 : i32 to index
    %c0_34 = arith.constant 0 : index
    %52 = vector.load %arg13[%51, %c0_34] : memref<8x2560xbf16, #tpu.memory_space<vmem>>, vector<8x512xbf16>
    %c0_35 = arith.constant 0 : index
    %c0_36 = arith.constant 0 : index
    %c0_37 = arith.constant 0 : index
    %53 = vector.load %arg6[%c0_35, %c0_36, %c0_37] : memref<5x512x256xbf16, #tpu.memory_space<vmem>>, vector<1x512x256xbf16>
    %54 = vector.shape_cast %53 : vector<1x512x256xbf16> to vector<512x256xbf16>
    %cst_38 = arith.constant dense<0.000000e+00> : vector<8x256xf32>
    %55 = tpu.matmul %52, %54, %cst_38 {dimension_numbers = #tpu.dot_dimension_numbers<[1], [0], [0], [1], [0, 0, 1, 1], [], []>} : vector<8x512xbf16>, vector<512x256xbf16>, vector<8x256xf32> -> vector<8x256xf32>
    %56 = vector.extract_strided_slice %36 {offsets = [0, 0], sizes = [1, 256], strides = [1, 1]} : vector<5x256xf32> to vector<1x256xf32>
    %57 = vector.broadcast %56 : vector<1x256xf32> to vector<8x256xf32>
    %58 = arith.addf %55, %57 : vector<8x256xf32>
    %59 = vector.extract_strided_slice %58 {offsets = [0, 0], sizes = [8, 128], strides = [1, 1]} : vector<8x256xf32> to vector<8x128xf32>
    %60 = vector.extract_strided_slice %58 {offsets = [0, 128], sizes = [8, 128], strides = [1, 1]} : vector<8x256xf32> to vector<8x128xf32>
    %61 = arith.mulf %59, %59 : vector<8x128xf32>
    %62 = arith.mulf %60, %60 : vector<8x128xf32>
    %63 = arith.addf %61, %62 : vector<8x128xf32>
    %64 = math.sqrt %63 : vector<8x128xf32>
    %cst_39 = arith.constant 9.99999974E-6 : f32
    %65 = vector.broadcast %cst_39 : f32 to vector<8x128xf32>
    %66 = arith.addf %64, %65 : vector<8x128xf32>
    %67 = tpu.reciprocal %66 {approx = true} : vector<8x128xf32> -> vector<8x128xf32>
    %68 = arith.mulf %59, %67 : vector<8x128xf32>
    %69 = arith.mulf %60, %67 : vector<8x128xf32>
    %70 = arith.index_cast %40 : i32 to index
    %c512 = arith.constant 512 : index
    %71 = vector.load %arg13[%70, %c512] : memref<8x2560xbf16, #tpu.memory_space<vmem>>, vector<8x512xbf16>
    %c1 = arith.constant 1 : index
    %c0_40 = arith.constant 0 : index
    %c0_41 = arith.constant 0 : index
    %72 = vector.load %arg6[%c1, %c0_40, %c0_41] : memref<5x512x256xbf16, #tpu.memory_space<vmem>>, vector<1x512x256xbf16>
    %73 = vector.shape_cast %72 : vector<1x512x256xbf16> to vector<512x256xbf16>
    %cst_42 = arith.constant dense<0.000000e+00> : vector<8x256xf32>
    %74 = tpu.matmul %71, %73, %cst_42 {dimension_numbers = #tpu.dot_dimension_numbers<[1], [0], [0], [1], [0, 0, 1, 1], [], []>} : vector<8x512xbf16>, vector<512x256xbf16>, vector<8x256xf32> -> vector<8x256xf32>
    %75 = vector.extract_strided_slice %36 {offsets = [1, 0], sizes = [1, 256], strides = [1, 1]} : vector<5x256xf32> to vector<1x256xf32>
    %76 = vector.broadcast %75 : vector<1x256xf32> to vector<8x256xf32>
    %77 = arith.addf %74, %76 : vector<8x256xf32>
    %78 = vector.extract_strided_slice %77 {offsets = [0, 0], sizes = [8, 128], strides = [1, 1]} : vector<8x256xf32> to vector<8x128xf32>
    %79 = vector.extract_strided_slice %77 {offsets = [0, 128], sizes = [8, 128], strides = [1, 1]} : vector<8x256xf32> to vector<8x128xf32>
    %80 = arith.mulf %78, %78 : vector<8x128xf32>
    %81 = arith.mulf %79, %79 : vector<8x128xf32>
    %82 = arith.addf %80, %81 : vector<8x128xf32>
    %83 = math.sqrt %82 : vector<8x128xf32>
    %cst_43 = arith.constant 9.99999974E-6 : f32
    %84 = vector.broadcast %cst_43 : f32 to vector<8x128xf32>
    %85 = arith.addf %83, %84 : vector<8x128xf32>
    %86 = tpu.reciprocal %85 {approx = true} : vector<8x128xf32> -> vector<8x128xf32>
    %87 = arith.mulf %78, %86 : vector<8x128xf32>
    %88 = arith.mulf %79, %86 : vector<8x128xf32>
    %89 = arith.index_cast %40 : i32 to index
    %c1024 = arith.constant 1024 : index
    %90 = vector.load %arg13[%89, %c1024] : memref<8x2560xbf16, #tpu.memory_space<vmem>>, vector<8x512xbf16>
    %c2 = arith.constant 2 : index
    %c0_44 = arith.constant 0 : index
    %c0_45 = arith.constant 0 : index
    %91 = vector.load %arg6[%c2, %c0_44, %c0_45] : memref<5x512x256xbf16, #tpu.memory_space<vmem>>, vector<1x512x256xbf16>
    %92 = vector.shape_cast %91 : vector<1x512x256xbf16> to vector<512x256xbf16>
    %cst_46 = arith.constant dense<0.000000e+00> : vector<8x256xf32>
    %93 = tpu.matmul %90, %92, %cst_46 {dimension_numbers = #tpu.dot_dimension_numbers<[1], [0], [0], [1], [0, 0, 1, 1], [], []>} : vector<8x512xbf16>, vector<512x256xbf16>, vector<8x256xf32> -> vector<8x256xf32>
    %94 = vector.extract_strided_slice %36 {offsets = [2, 0], sizes = [1, 256], strides = [1, 1]} : vector<5x256xf32> to vector<1x256xf32>
    %95 = vector.broadcast %94 : vector<1x256xf32> to vector<8x256xf32>
    %96 = arith.addf %93, %95 : vector<8x256xf32>
    %97 = vector.extract_strided_slice %96 {offsets = [0, 0], sizes = [8, 128], strides = [1, 1]} : vector<8x256xf32> to vector<8x128xf32>
    %98 = vector.extract_strided_slice %96 {offsets = [0, 128], sizes = [8, 128], strides = [1, 1]} : vector<8x256xf32> to vector<8x128xf32>
    %99 = arith.mulf %97, %97 : vector<8x128xf32>
    %100 = arith.mulf %98, %98 : vector<8x128xf32>
    %101 = arith.addf %99, %100 : vector<8x128xf32>
    %102 = math.sqrt %101 : vector<8x128xf32>
    %cst_47 = arith.constant 9.99999974E-6 : f32
    %103 = vector.broadcast %cst_47 : f32 to vector<8x128xf32>
    %104 = arith.addf %102, %103 : vector<8x128xf32>
    %105 = tpu.reciprocal %104 {approx = true} : vector<8x128xf32> -> vector<8x128xf32>
    %106 = arith.mulf %97, %105 : vector<8x128xf32>
    %107 = arith.mulf %98, %105 : vector<8x128xf32>
    %108 = arith.index_cast %40 : i32 to index
    %c1536 = arith.constant 1536 : index
    %109 = vector.load %arg13[%108, %c1536] : memref<8x2560xbf16, #tpu.memory_space<vmem>>, vector<8x512xbf16>
    %c3 = arith.constant 3 : index
    %c0_48 = arith.constant 0 : index
    %c0_49 = arith.constant 0 : index
    %110 = vector.load %arg6[%c3, %c0_48, %c0_49] : memref<5x512x256xbf16, #tpu.memory_space<vmem>>, vector<1x512x256xbf16>
    %111 = vector.shape_cast %110 : vector<1x512x256xbf16> to vector<512x256xbf16>
    %cst_50 = arith.constant dense<0.000000e+00> : vector<8x256xf32>
    %112 = tpu.matmul %109, %111, %cst_50 {dimension_numbers = #tpu.dot_dimension_numbers<[1], [0], [0], [1], [0, 0, 1, 1], [], []>} : vector<8x512xbf16>, vector<512x256xbf16>, vector<8x256xf32> -> vector<8x256xf32>
    %113 = vector.extract_strided_slice %36 {offsets = [3, 0], sizes = [1, 256], strides = [1, 1]} : vector<5x256xf32> to vector<1x256xf32>
    %114 = vector.broadcast %113 : vector<1x256xf32> to vector<8x256xf32>
    %115 = arith.addf %112, %114 : vector<8x256xf32>
    %116 = vector.extract_strided_slice %115 {offsets = [0, 0], sizes = [8, 128], strides = [1, 1]} : vector<8x256xf32> to vector<8x128xf32>
    %117 = vector.extract_strided_slice %115 {offsets = [0, 128], sizes = [8, 128], strides = [1, 1]} : vector<8x256xf32> to vector<8x128xf32>
    %118 = arith.mulf %116, %116 : vector<8x128xf32>
    %119 = arith.mulf %117, %117 : vector<8x128xf32>
    %120 = arith.addf %118, %119 : vector<8x128xf32>
    %121 = math.sqrt %120 : vector<8x128xf32>
    %cst_51 = arith.constant 9.99999974E-6 : f32
    %122 = vector.broadcast %cst_51 : f32 to vector<8x128xf32>
    %123 = arith.addf %121, %122 : vector<8x128xf32>
    %124 = tpu.reciprocal %123 {approx = true} : vector<8x128xf32> -> vector<8x128xf32>
    %125 = arith.mulf %116, %124 : vector<8x128xf32>
    %126 = arith.mulf %117, %124 : vector<8x128xf32>
    %127 = arith.index_cast %40 : i32 to index
    %c2048 = arith.constant 2048 : index
    %128 = vector.load %arg13[%127, %c2048] : memref<8x2560xbf16, #tpu.memory_space<vmem>>, vector<8x512xbf16>
    %c4 = arith.constant 4 : index
    %c0_52 = arith.constant 0 : index
    %c0_53 = arith.constant 0 : index
    %129 = vector.load %arg6[%c4, %c0_52, %c0_53] : memref<5x512x256xbf16, #tpu.memory_space<vmem>>, vector<1x512x256xbf16>
    %130 = vector.shape_cast %129 : vector<1x512x256xbf16> to vector<512x256xbf16>
    %cst_54 = arith.constant dense<0.000000e+00> : vector<8x256xf32>
    %131 = tpu.matmul %128, %130, %cst_54 {dimension_numbers = #tpu.dot_dimension_numbers<[1], [0], [0], [1], [0, 0, 1, 1], [], []>} : vector<8x512xbf16>, vector<512x256xbf16>, vector<8x256xf32> -> vector<8x256xf32>
    %132 = vector.extract_strided_slice %36 {offsets = [4, 0], sizes = [1, 256], strides = [1, 1]} : vector<5x256xf32> to vector<1x256xf32>
    %133 = vector.broadcast %132 : vector<1x256xf32> to vector<8x256xf32>
    %134 = arith.addf %131, %133 : vector<8x256xf32>
    %135 = vector.extract_strided_slice %134 {offsets = [0, 0], sizes = [8, 128], strides = [1, 1]} : vector<8x256xf32> to vector<8x128xf32>
    %136 = vector.extract_strided_slice %134 {offsets = [0, 128], sizes = [8, 128], strides = [1, 1]} : vector<8x256xf32> to vector<8x128xf32>
    %137 = arith.mulf %135, %135 : vector<8x128xf32>
    %138 = arith.mulf %136, %136 : vector<8x128xf32>
    %139 = arith.addf %137, %138 : vector<8x128xf32>
    %140 = math.sqrt %139 : vector<8x128xf32>
    %cst_55 = arith.constant 9.99999974E-6 : f32
    %141 = vector.broadcast %cst_55 : f32 to vector<8x128xf32>
    %142 = arith.addf %140, %141 : vector<8x128xf32>
    %143 = tpu.reciprocal %142 {approx = true} : vector<8x128xf32> -> vector<8x128xf32>
    %144 = arith.mulf %135, %143 : vector<8x128xf32>
    %145 = arith.mulf %136, %143 : vector<8x128xf32>
    %146 = arith.mulf %68, %106 : vector<8x128xf32>
    %147 = arith.mulf %69, %107 : vector<8x128xf32>
    %148 = arith.subf %146, %147 : vector<8x128xf32>
    %149 = arith.mulf %68, %107 : vector<8x128xf32>
    %150 = arith.mulf %69, %106 : vector<8x128xf32>
    %151 = arith.addf %149, %150 : vector<8x128xf32>
    %152 = arith.mulf %68, %125 : vector<8x128xf32>
    %153 = arith.mulf %69, %126 : vector<8x128xf32>
    %154 = arith.subf %152, %153 : vector<8x128xf32>
    %155 = arith.mulf %68, %126 : vector<8x128xf32>
    %156 = arith.mulf %69, %125 : vector<8x128xf32>
    %157 = arith.addf %155, %156 : vector<8x128xf32>
    %158 = arith.mulf %87, %144 : vector<8x128xf32>
    %159 = arith.mulf %88, %145 : vector<8x128xf32>
    %160 = arith.subf %158, %159 : vector<8x128xf32>
    %161 = arith.mulf %87, %145 : vector<8x128xf32>
    %162 = arith.mulf %88, %144 : vector<8x128xf32>
    %163 = arith.addf %161, %162 : vector<8x128xf32>
    %164 = arith.addf %148, %154 : vector<8x128xf32>
    %165 = arith.addf %151, %157 : vector<8x128xf32>
    %166 = arith.mulf %164, %87 : vector<8x128xf32>
    %167 = arith.mulf %165, %88 : vector<8x128xf32>
    %168 = arith.subf %166, %167 : vector<8x128xf32>
    %169 = arith.mulf %164, %88 : vector<8x128xf32>
    %170 = arith.mulf %165, %87 : vector<8x128xf32>
    %171 = arith.addf %169, %170 : vector<8x128xf32>
    %172 = arith.mulf %160, %68 : vector<8x128xf32>
    %173 = arith.mulf %163, %69 : vector<8x128xf32>
    %174 = arith.subf %172, %173 : vector<8x128xf32>
    %175 = arith.mulf %160, %69 : vector<8x128xf32>
    %176 = arith.mulf %163, %68 : vector<8x128xf32>
    %177 = arith.addf %175, %176 : vector<8x128xf32>
    %178 = arith.mulf %148, %148 : vector<8x128xf32>
    %179 = arith.mulf %151, %151 : vector<8x128xf32>
    %180 = arith.addf %178, %179 : vector<8x128xf32>
    %181 = arith.mulf %154, %154 : vector<8x128xf32>
    %182 = arith.mulf %157, %157 : vector<8x128xf32>
    %183 = arith.addf %181, %182 : vector<8x128xf32>
    %184 = arith.addf %180, %183 : vector<8x128xf32>
    %185 = arith.mulf %160, %160 : vector<8x128xf32>
    %186 = arith.mulf %163, %163 : vector<8x128xf32>
    %187 = arith.addf %185, %186 : vector<8x128xf32>
    %188 = arith.addf %184, %187 : vector<8x128xf32>
    %189 = arith.addf %168, %174 : vector<8x128xf32>
    %190 = arith.mulf %188, %49 : vector<8x128xf32>
    %191 = arith.subf %189, %190 : vector<8x128xf32>
    %192 = arith.addf %171, %177 : vector<8x128xf32>
    %193 = arith.mulf %188, %50 : vector<8x128xf32>
    %194 = arith.subf %192, %193 : vector<8x128xf32>
    %195 = tpu.concatenate %191, %194 in 1 : vector<8x128xf32>, vector<8x128xf32> -> vector<8x256xf32>
    %c0_56 = arith.constant 0 : index
    %c0_57 = arith.constant 0 : index
    %196 = vector.load %arg9[%c0_56, %c0_57] : memref<256x128xbf16, #tpu.memory_space<vmem>>, vector<256x128xbf16>
    %197 = arith.truncf %195 : vector<8x256xf32> to vector<8x256xbf16>
    %cst_58 = arith.constant dense<0.000000e+00> : vector<8x128xf32>
    %198 = tpu.matmul %197, %196, %cst_58 {dimension_numbers = #tpu.dot_dimension_numbers<[1], [0], [0], [1], [0, 0, 1, 1], [], []>} : vector<8x256xbf16>, vector<256x128xbf16>, vector<8x128xf32> -> vector<8x128xf32>
    %199 = arith.addf %45, %198 : vector<8x128xf32>
    %c0_59 = arith.constant 0 : index
    %200 = arith.index_cast %40 : i32 to index
    %c0_60 = arith.constant 0 : index
    %201 = vector.load %arg10[%c0_59, %200, %c0_60] : memref<1x8x128xf32, #tpu.memory_space<vmem>>, vector<1x8x128xf32>
    %202 = vector.shape_cast %201 : vector<1x8x128xf32> to vector<8x128xf32>
    %203 = vector.shape_cast %199 : vector<8x128xf32> to vector<1x8x128xf32>
    tpu.vector_store %arg10[%c0_59, %200, %c0_60], %203 {strides = array<i32>} : memref<1x8x128xf32, #tpu.memory_space<vmem>>, vector<1x8x128xf32>,
    %c1_i32_61 = arith.constant 1 : i32
    return
  }
  func.func @transform_0(%arg0: i32, %arg1: i32) -> (i32, i32, i32) {
    %c0_i32 = arith.constant 0 : i32
    %c0_i32_0 = arith.constant 0 : i32
    return %arg0, %arg1, %c0_i32 : i32, i32, i32
  }
  func.func @transform_1(%arg0: i32, %arg1: i32) -> (i32, i32) {
    %c0_i32 = arith.constant 0 : i32
    %c0_i32_0 = arith.constant 0 : i32
    %c0_i32_1 = arith.constant 0 : i32
    return %c0_i32, %c0_i32_0 : i32, i32
  }
  func.func @transform_2(%arg0: i32, %arg1: i32) -> (i32, i32) {
    %c0_i32 = arith.constant 0 : i32
    %c0_i32_0 = arith.constant 0 : i32
    %c0_i32_1 = arith.constant 0 : i32
    return %c0_i32, %c0_i32_0 : i32, i32
  }
  func.func @transform_3(%arg0: i32, %arg1: i32) -> (i32, i32) {
    %c0_i32 = arith.constant 0 : i32
    %c0_i32_0 = arith.constant 0 : i32
    %c0_i32_1 = arith.constant 0 : i32
    return %c0_i32, %c0_i32_0 : i32, i32
  }
  func.func @transform_4(%arg0: i32, %arg1: i32) -> (i32, i32, i32) {
    %c0_i32 = arith.constant 0 : i32
    %c0_i32_0 = arith.constant 0 : i32
    %c0_i32_1 = arith.constant 0 : i32
    %c0_i32_2 = arith.constant 0 : i32
    return %c0_i32, %c0_i32_0, %c0_i32_1 : i32, i32, i32
  }
  func.func @transform_5(%arg0: i32, %arg1: i32) -> (i32, i32) {
    %c0_i32 = arith.constant 0 : i32
    %c0_i32_0 = arith.constant 0 : i32
    %c0_i32_1 = arith.constant 0 : i32
    return %c0_i32, %c0_i32_0 : i32, i32
  }
  func.func @transform_6(%arg0: i32, %arg1: i32) -> (i32, i32) {
    %c0_i32 = arith.constant 0 : i32
    %c0_i32_0 = arith.constant 0 : i32
    %c0_i32_1 = arith.constant 0 : i32
    return %c0_i32, %c0_i32_0 : i32, i32
  }
  func.func @transform_7(%arg0: i32, %arg1: i32) -> (i32, i32) {
    %c0_i32 = arith.constant 0 : i32
    %c0_i32_0 = arith.constant 0 : i32
    %c0_i32_1 = arith.constant 0 : i32
    return %c0_i32, %c0_i32_0 : i32, i32
  }
  func.func @transform_8(%arg0: i32, %arg1: i32) -> (i32, i32, i32) {
    %c0_i32 = arith.constant 0 : i32
    %c0_i32_0 = arith.constant 0 : i32
    return %arg0, %arg1, %c0_i32 : i32, i32, i32
  }
}

</mosaic_0001>

<bundles_post_ra>
// kernel: holoformer_encoder_layer.1
= control target key start
LH: loop header
LB: loop body
LE: loop exit
PB: predicated region body
PF: predicated region fallthrough
CT: control target
= control target key end

     0   :  { %s14475_s0 = inlined_call_operand.vmem [shape: f32[2,16,128], index: 0, kind: input, shape index: {}]   ;;  %s14476_s1 = inlined_call_operand.vmem [shape: bf16[8,8], index: 1, kind: input, shape index: {}]   ;;  %s14477_s2 = inlined_call_operand.vmem [shape: bf16[256,2560], index: 2, kind: input, shape index: {}]   ;;  %s14478_s3 = inlined_call_operand.vmem [shape: f32[1,2560], index: 3, kind: input, shape index: {}]   ;;  %s14479_s4 = inlined_call_operand.vmem [shape: bf16[5,512,256], index: 4, kind: input, shape index: {}]   ;;  %s14480_s5 = inlined_call_operand.vmem [shape: f32[5,256], index: 5, kind: input, shape index: {}]   ;;  %s14481_s6 = inlined_call_operand.vmem [shape: bf16[128,256], index: 6, kind: input, shape index: {}]   ;;  %s14482_s7 = inlined_call_operand.vmem [shape: bf16[256,128], index: 7, kind: input, shape index: {}]   ;;  %s14483_s8 = inlined_call_operand.hbm [shape: f32[2,16,128], index: 8, kind: output, shape index: {}]  }
   0x1   :  { %14488 = sst [smem:[#allocation11_spill]] %s14475_s0 }
   0x2   :  { %14489 = sst [smem:[#allocation12_spill]] %s14476_s1 }
   0x3   :  { %13 = vsyncpa [#allocation6], 0 }
   0x4   :  { %15 = vsyncpa [#allocation6 + $0x1], 0  ;;  %s9891_s27 = smov 0   ;;  %s9893_s28 = smov 0  }
   0x5   :  { %s9895_s29 = smov 0   ;;  %s9897_s30 = smov 0  }
   0x6   :  { %s9899_s9 = smov 0   ;;  %s9901_s10 = smov 0  }
   0x7   :  { %s9903_s11 = smov 0   ;;  %s9905_s12 = smov 0  }
   0x8 LB: > { %14490 = sst [smem:[#allocation8_spill]] %s9839_s11  ;;  %s6022_s13 = sadd.s32 4294967295, %s9843_s12   ;;  %s9843_s12 = sphi %s9905_s12, %s21_s12   ;;  %s9839_s11 = sphi %s9903_s11, %s14502_s11   ;;  %s9835_s10 = sphi %s9901_s10, %s14507_s10   ;;  %s9831_s9 = sphi %s9899_s9, %s14500_s9   ;;  %s9827_s30 = sphi %s9897_s30, %s14506_s30   ;;  %s9823_s29 = sphi %s9895_s29, %s14505_s29   ;;  %s9819_s28 = sphi %s9893_s28, %s14504_s28   ;;  %s9815_s27 = sphi %s9891_s27, %s14503_s27  }
   0x9   : > { %s6023_s14 = sadd.s32 4294967294, %s9843_s12   ;;  %s30_s15 = sadd.s32 1, %s9835_s10 }
   0xa   : > { %p31_p0 = scmp.ge.s32.totalorder %s30_s15, 2  ;;  %s33_s16 = sadd.s32 1, %s9839_s11 }
   0xb   : > { %p227_p1 = scmp.ne.s32.totalorder %s9823_s29, %s9819_s28  ;;  %p228_p2 = scmp.eq.s32.totalorder %s6022_s13, 3 }
   0xc   : > { %s14509_s15 = smov (%p31_p0, %s30_s15), 0  ;;  %s14511_s16 = smov (!%p31_p0, %s33_s16), %s9839_s11 }
   0xd   : > { %14491 = sst [smem:[#allocation9_spill]] %s14509_s15  ;;  %s213_s17 = ssub.s32 %s9835_s10, %s14509_s15 }
   0xe   : > { %p9942_p3 = por %p228_p2, %p227_p1  ;;  %p35_p4 = scmp.ge.s32.totalorder %s14511_s16, 2 }
   0xf   : > { %p233_p5 = scmp.ne.s32.totalorder %s9819_s28, %s9815_s27  ;;  %p234_p6 = scmp.eq.s32.totalorder %s6023_s14, 3 }
  0x10   : > { %p6026_p7 = scmp.ge.s32.totalorder %s9843_s12, 1  ;;  %s14513_s16 = smov (%p35_p4, %s14511_s16), 0 }
  0x11   : > { %14493 = sst [smem:[#allocation10_spill]] %s14513_s16  ;;  %p9951_p8 = por %p234_p6, %p233_p5 }
  0x12   : > { %p284_p9 = scmp.lt.s32.totalorder %s9843_s12, 5  ;;  %s212_s20 = ssub.s32 %s9839_s11, %s14513_s16 }
  0x13   : > { %s217_s21 = sadd.s32 1, %s9823_s29  ;;  %s214_s22 = sor.u32 %s213_s17, %s212_s20 }
  0x14   : > { %p285_p10 = pnand %p6026_p7, %p284_p9  ;;  %p215_p11 = scmp.eq.s32.totalorder %s214_s22, 0 }
  0x15   : > { %s14486_s24 = sand.u32 (!%p285_p10), 1, %s9819_s28   ;;  %p321_p12 = scmp.lt.s32.totalorder (!%p285_p10), %s9831_s9, 1 }
  0x16   : > { %s9960_s23 = scalar_select %p215_p11, %s9823_s29, %s217_s21  }
  0x17   : > { %288 = sbr.rel (%p285_p10) target bundleno = 1115 (0x45b), region = 52  ;;  %s9966_s25 = sshll.u32 (!%p285_p10), %s14486_s24, 3 }
  0x18   : > { %p323_p13 = scmp.lt.s32.totalorder (!%p285_p10), %s9827_s30, 1  ;;  %s14495_s0 = sld [smem:[#allocation11_spill]] (!%p285_p10) }
  0x19   : > { %p6030_p0 = scmp.ne.s32.totalorder (!%p285_p10), %s9827_s30, 0 }
  0x1c   : > { %s322_s26 = scalar_select %p321_p12, %s9831_s9, 1 }
  0x1d   : > { %s324_s13 = scalar_select %p323_p13, %s9827_s30, 1 }
  0x1e   : > { %s6028_s14 = sshll.u32 %s322_s26, 1  ;;  %334 = sbr.rel (%p6030_p0) target bundleno = 37 (0x25), region = 56 }
  0x1f   : > { %s326_s17 = sadd.s32 %s6028_s14, %s324_s13 }
  0x20   : > { %s6029_s20 = sshll.u32 %s326_s17, 3 }
  0x21   : > { %s9974_s16 = scalar_lea.vmem %s14495_s0, %s6029_s20 }
  0x22   : > { %v9977_v0 = vld [vmem:[%s9974_s16] sm:$0xff] }
  0x23   : > { %v9845_v1 = vmov 0.0  }
  0x24   : > { %335 = vst [vmem:[#allocation2] sm:$0x1] %v9845_v1 }
  0x25 PF: > { %v9983_v2 = vpack.c.bf16 %v9977_v0, %v9977_v0  ;;  %vm346_vm0 = vcmask 1043456   ;;  %v7235_v3 = vld [vmem:[%s14477_s2 + $0x960] sm:$0xf]  ;;  %v9292_v4 = vld [vmem:[%s14477_s2 + $0x9ac] sm:$0xf0]  ;;  %vm342_vm1 = vcmask 64512  }
  0x26   : > { %v7236_v5 = vor.u32 %v9292_v4, %v7235_v3  ;;  %v7155_v6 = vld [vmem:[%s14477_s2 + $0x8c0] sm:$0xf]  ;;  %v9272_v7 = vld [vmem:[%s14477_s2 + $0x90c] sm:$0xf0]  ;;  %s14496_s1 = sld [smem:[#allocation12_spill]]  ;;  %s8978_s21 = sshll.u32 %s9831_s9, 1 }
  0x27   : > { %v348_v8 = vsel %vm346_vm0, %v9983_v2, 0  ;;  %v338_v9 = vunpack.c.l.bf16 %v9983_v2  ;;  %v7156_v11 = vor.u32 %v9272_v7, %v7155_v6  ;;  %v9282_v12 = vld [vmem:[%s14477_s2 + $0x964] sm:$0xf]  ;;  %v7237_v13 = vld [vmem:[%s14477_s2 + $0x9b0] sm:$0xf0]  ;;  %s14497_s14 = scalar_lea.vmem [#allocation5], %s9966_s25 }
  0x28   : > { %357 = vmatpush.bf16.msra.mxu0 %v348_v8  ;;  %2373 = vmatpush.bf16.msra.mxu3 %v7236_v5  ;;  %v7075_v15 = vld [vmem:[%s14477_s2 + $0x820] sm:$0xf]  ;;  %v9252_v16 = vld [vmem:[%s14477_s2 + $0x86c] sm:$0xf0]  ;;  %v7240_v18 = vor.u32 %v9282_v12, %v7237_v13  ;;  %v9262_v20 = vld [vmem:[%s14477_s2 + $0x8c4] sm:$0xf]  ;;  %s14498_s24 = smov %s14497_s14 }
  0x29   : > { %v339_v14 = vsub.f32 %v9977_v0, %v338_v9  ;;  %v7076_v19 = vor.u32 %v9252_v16, %v7075_v15  ;;  %v7157_v21 = vld [vmem:[%s14477_s2 + $0x910] sm:$0xf0]  ;;  %v6995_v23 = vld [vmem:[%s14477_s2 + $0x780] sm:$0xf]  ;;  %v9232_v24 = vld [vmem:[%s14477_s2 + $0x7cc] sm:$0xf0] }
  0x2a   : > { %v7160_v25 = vor.u32 %v9262_v20, %v7157_v21  ;;  %v6996_v26 = vor.u32 %v9232_v24, %v6995_v23  ;;  %v9242_v27 = vld [vmem:[%s14477_s2 + $0x824] sm:$0xf]  ;;  %v7077_v28 = vld [vmem:[%s14477_s2 + $0x870] sm:$0xf0]  ;;  %v6915_v29 = vld [vmem:[%s14477_s2 + $0x6e0] sm:$0xf] }
  0x2b   : > { %v340_v17 = vpack.c.bf16 %v339_v14, %v339_v14  ;;  %v9212_v30 = vld [vmem:[%s14477_s2 + $0x72c] sm:$0xf0]  ;;  %v7080_v31 = vor.u32 %v9242_v27, %v7077_v28  ;;  %v9222_v33 = vld [vmem:[%s14477_s2 + $0x784] sm:$0xf]  ;;  %v6997_v34 = vld [vmem:[%s14477_s2 + $0x7d0] sm:$0xf0] }
  0x2c   : > { %v336_v10 = vld [vmem:[%s14496_s1] sm:$0xf]  ;;  %2374 = vmatpush.bf16.msra.mxu3 %v7156_v11  ;;  %v6916_v32 = vor.u32 %v9212_v30, %v6915_v29  ;;  %v9192_v36 = vld [vmem:[%s14477_s2 + $0x68c] sm:$0xf0]  ;;  %v7000_v37 = vor.u32 %v9222_v33, %v6997_v34  ;;  %v9202_v39 = vld [vmem:[%s14477_s2 + $0x6e4] sm:$0xf]  ;;  %s5937_s1 = sadd.s32 %s9827_s30, %s8978_s21 }
  0x2d   : > { %6031 = vmatmul.msk.bf16.vlgmr.msra.gmra.mxu0 %vm342_vm1, %v336_v10  ;;  %v368_v22 = vsel %vm346_vm0, %v340_v17, 0  ;;  %v6835_v35 = vld [vmem:[%s14477_s2 + $0x640] sm:$0xf]  ;;  %v6917_v40 = vld [vmem:[%s14477_s2 + $0x730] sm:$0xf0]  ;;  %s8979_s11 = sshll.u32 %s5937_s1, 3 }
  0x2e   : > { %377 = vmatpush.bf16.msra.mxu1 %v368_v22  ;;  %v6836_v38 = vor.u32 %v9192_v36, %v6835_v35  ;;  %v6755_v41 = vld [vmem:[%s14477_s2 + $0x5a0] sm:$0xf]  ;;  %v9172_v42 = vld [vmem:[%s14477_s2 + $0x5ec] sm:$0xf0]  ;;  %v6920_v43 = vor.u32 %v9202_v39, %v6917_v40  ;;  %v9182_v45 = vld [vmem:[%s14477_s2 + $0x644] sm:$0xf]  ;;  %s5939_s13 = scalar_lea.hbm %s14483_s8, %s8979_s11 }
  0x2f   : > { %v6756_v44 = vor.u32 %v9172_v42, %v6755_v41  ;;  %v6837_v46 = vld [vmem:[%s14477_s2 + $0x690] sm:$0xf0]  ;;  %v6675_v47 = vld [vmem:[%s14477_s2 + $0x500] sm:$0xf]  ;;  %v9152_v48 = vld [vmem:[%s14477_s2 + $0x54c] sm:$0xf0] }
  0x30   : > { %2375 = vmatpush.bf16.msra.mxu3 %v7076_v19  ;;  %v7243_v49 = vld [vmem:[%s14477_s2 + $0x968] sm:$0xf]  ;;  %v9293_v50 = vld [vmem:[%s14477_s2 + $0x9b4] sm:$0xf0]  ;;  %v6840_v51 = vor.u32 %v9182_v45, %v6837_v46  ;;  %v6676_v52 = vor.u32 %v9152_v48, %v6675_v47  ;;  %v9162_v53 = vld [vmem:[%s14477_s2 + $0x5a4] sm:$0xf] }
  0x31   : > { %6032 = vmatmul.msk.bf16.vlgmr.msra.gmra.mxu1 %vm342_vm1, %v336_v10  ;;  %v6757_v54 = vld [vmem:[%s14477_s2 + $0x5f0] sm:$0xf0]  ;;  %v7244_v55 = vor.u32 %v9293_v50, %v7243_v49  ;;  %v7163_v56 = vld [vmem:[%s14477_s2 + $0x8c8] sm:$0xf]  ;;  %v9273_v57 = vld [vmem:[%s14477_s2 + $0x914] sm:$0xf0] }
  0x32   : > { %2399 = vmatpush.bf16.msrb.mxu1 %v7240_v18  ;;  %v6760_v58 = vor.u32 %v9162_v53, %v6757_v54  ;;  %v9142_v59 = vld [vmem:[%s14477_s2 + $0x504] sm:$0xf]  ;;  %v6677_v60 = vld [vmem:[%s14477_s2 + $0x550] sm:$0xf0]  ;;  %v7164_v61 = vor.u32 %v9273_v57, %v7163_v56  ;;  %v9283_v62 = vld [vmem:[%s14477_s2 + $0x96c] sm:$0xf] }
  0x33   : > { %v7245_v63 = vld [vmem:[%s14477_s2 + $0x9b8] sm:$0xf0]  ;;  %v7083_v1 = vld [vmem:[%s14477_s2 + $0x828] sm:$0xf]  ;;  %v9253_v3 = vld [vmem:[%s14477_s2 + $0x874] sm:$0xf0]  ;;  %v6680_v4 = vor.u32 %v9142_v59, %v6677_v60 }
  0x34   : > { %2376 = vmatpush.bf16.msra.mxu3 %v6996_v26  ;;  %v7248_v5 = vor.u32 %v9283_v62, %v7245_v63  ;;  %v7084_v6 = vor.u32 %v9253_v3, %v7083_v1  ;;  %v9263_v7 = vld [vmem:[%s14477_s2 + $0x8cc] sm:$0xf]  ;;  %v7165_v8 = vld [vmem:[%s14477_s2 + $0x918] sm:$0xf0]  ;;  %v7003_v9 = vld [vmem:[%s14477_s2 + $0x788] sm:$0xf] }
  0x35   : > { %v9233_v10 = vld [vmem:[%s14477_s2 + $0x7d4] sm:$0xf0]  ;;  %v7168_v11 = vor.u32 %v9263_v7, %v7165_v8  ;;  %v9243_v13 = vld [vmem:[%s14477_s2 + $0x82c] sm:$0xf]  ;;  %v7085_v14 = vld [vmem:[%s14477_s2 + $0x878] sm:$0xf0] }
  0x36   : > { %2400 = vmatpush.bf16.msrb.mxu1 %v7160_v25  ;;  %v7004_v12 = vor.u32 %v9233_v10, %v7003_v9  ;;  %v6923_v15 = vld [vmem:[%s14477_s2 + $0x6e8] sm:$0xf]  ;;  %v9213_v16 = vld [vmem:[%s14477_s2 + $0x734] sm:$0xf0]  ;;  %v7088_v17 = vor.u32 %v9243_v13, %v7085_v14  ;;  %v9223_v19 = vld [vmem:[%s14477_s2 + $0x78c] sm:$0xf] }
  0x37   : > { %v6924_v18 = vor.u32 %v9213_v16, %v6923_v15  ;;  %v7005_v20 = vld [vmem:[%s14477_s2 + $0x7d8] sm:$0xf0]  ;;  %v6843_v21 = vld [vmem:[%s14477_s2 + $0x648] sm:$0xf]  ;;  %v9193_v22 = vld [vmem:[%s14477_s2 + $0x694] sm:$0xf0] }
  0x38   : > { %2377 = vmatpush.bf16.msra.mxu3 %v6916_v32  ;;  %v7008_v23 = vor.u32 %v9223_v19, %v7005_v20  ;;  %v9203_v24 = vld [vmem:[%s14477_s2 + $0x6ec] sm:$0xf]  ;;  %v6844_v25 = vor.u32 %v9193_v22, %v6843_v21  ;;  %v6925_v26 = vld [vmem:[%s14477_s2 + $0x738] sm:$0xf0]  ;;  %v6763_v27 = vld [vmem:[%s14477_s2 + $0x5a8] sm:$0xf] }
  0x39   : > { %v9173_v28 = vld [vmem:[%s14477_s2 + $0x5f4] sm:$0xf0]  ;;  %v6595_v29 = vld [vmem:[%s14477_s2 + $0x460] sm:$0xf]  ;;  %v9132_v30 = vld [vmem:[%s14477_s2 + $0x4ac] sm:$0xf0]  ;;  %v6928_v34 = vor.u32 %v9203_v24, %v6925_v26 }
  0x3a   : > { %2401 = vmatpush.bf16.msrb.mxu1 %v7080_v31  ;;  %v9122_v31 = vld [vmem:[%s14477_s2 + $0x464] sm:$0xf]  ;;  %v6596_v32 = vor.u32 %v9132_v30, %v6595_v29  ;;  %v6597_v33 = vld [vmem:[%s14477_s2 + $0x4b0] sm:$0xf0]  ;;  %v9183_v35 = vld [vmem:[%s14477_s2 + $0x64c] sm:$0xf] }
  0x3b   : > { %v6600_v36 = vor.u32 %v9122_v31, %v6597_v33  ;;  %v6683_v39 = vld [vmem:[%s14477_s2 + $0x508] sm:$0xf]  ;;  %v9153_v40 = vld [vmem:[%s14477_s2 + $0x554] sm:$0xf0]  ;;  %v6515_v41 = vld [vmem:[%s14477_s2 + $0x3c0] sm:$0xf] }
  0x3c   : > { %2378 = vmatpush.bf16.msra.mxu3 %v6836_v38  ;;  %v6845_v38 = vld [vmem:[%s14477_s2 + $0x698] sm:$0xf0]  ;;  %2360 = vmatpush.bf16.msra.mxu2 %v6596_v32  ;;  %v9112_v42 = vld [vmem:[%s14477_s2 + $0x40c] sm:$0xf0]  ;;  %v9294_v45 = vld [vmem:[%s14477_s2 + $0x9bc] sm:$0xf0]  ;;  %v6684_v50 = vor.u32 %v9153_v40, %v6683_v39 }
  0x3d   : > { %2386 = vmatpush.bf16.msrb.mxu0 %v6600_v36  ;;  %v6516_v46 = vor.u32 %v9112_v42, %v6515_v41  ;;  %v6517_v47 = vld [vmem:[%s14477_s2 + $0x410] sm:$0xf0]  ;;  %v6848_v48 = vor.u32 %v9183_v35, %v6845_v38  ;;  %v6435_v54 = vld [vmem:[%s14477_s2 + $0x320] sm:$0xf]  ;;  %v9082_v56 = vld [vmem:[%s14477_s2 + $0x324] sm:$0xf] }
  0x3e   : > { %2402 = vmatpush.bf16.msrb.mxu1 %v7000_v37  ;;  %v6764_v37 = vor.u32 %v9173_v28, %v6763_v27  ;;  %v7171_v57 = vld [vmem:[%s14477_s2 + $0x8d0] sm:$0xf]  ;;  %v6437_v60 = vld [vmem:[%s14477_s2 + $0x370] sm:$0xf0]  ;;  %v9143_v62 = vld [vmem:[%s14477_s2 + $0x50c] sm:$0xf] }
  0x3f   : > { %v6440_v63 = vor.u32 %v9082_v56, %v6437_v60  ;;  %v6685_v1 = vld [vmem:[%s14477_s2 + $0x558] sm:$0xf0]  ;;  %v9284_v3 = vld [vmem:[%s14477_s2 + $0x974] sm:$0xf]  ;;  %v9072_v7 = vld [vmem:[%s14477_s2 + $0x2cc] sm:$0xf0] }
  0x40   : > { %2379 = vmatpush.bf16.msra.mxu3 %v6756_v44  ;;  %v7251_v44 = vld [vmem:[%s14477_s2 + $0x970] sm:$0xf]  ;;  %2361 = vmatpush.bf16.msra.mxu2 %v6516_v46  ;;  %v9062_v8 = vld [vmem:[%s14477_s2 + $0x284] sm:$0xf]  ;;  %v9254_v10 = vld [vmem:[%s14477_s2 + $0x87c] sm:$0xf0]  ;;  %v6688_v13 = vor.u32 %v9143_v62, %v6685_v1 }
  0x41   : > { %v7252_v53 = vor.u32 %v9294_v45, %v7251_v44  ;;  %v7091_v9 = vld [vmem:[%s14477_s2 + $0x830] sm:$0xf]  ;;  %v9264_v16 = vld [vmem:[%s14477_s2 + $0x8d4] sm:$0xf]  ;;  %v6275_v19 = vld [vmem:[%s14477_s2 + $0x1e0] sm:$0xf] }
  0x42   : > { %2403 = vmatpush.bf16.msrb.mxu1 %v6920_v43  ;;  %v9102_v43 = vld [vmem:[%s14477_s2 + $0x3c4] sm:$0xf]  ;;  %v9052_v20 = vld [vmem:[%s14477_s2 + $0x22c] sm:$0xf0]  ;;  %v9244_v28 = vld [vmem:[%s14477_s2 + $0x834] sm:$0xf] }
  0x43   : > { %v6520_v49 = vor.u32 %v9102_v43, %v6517_v47  ;;  %v9042_v21 = vld [vmem:[%s14477_s2 + $0x1e4] sm:$0xf]  ;;  %v7011_v22 = vld [vmem:[%s14477_s2 + $0x790] sm:$0xf]  ;;  %v6276_v24 = vor.u32 %v9052_v20, %v6275_v19  ;;  %v6195_v31 = vld [vmem:[%s14477_s2 + $0x140] sm:$0xf] }
  0x44   : > { %2380 = vmatpush.bf16.msra.mxu3 %v6676_v52  ;;  %v6765_v52 = vld [vmem:[%s14477_s2 + $0x5f8] sm:$0xf0]  ;;  %v7093_v29 = vld [vmem:[%s14477_s2 + $0x880] sm:$0xf0]  ;;  %v9032_v32 = vld [vmem:[%s14477_s2 + $0x18c] sm:$0xf0] }
  0x45   : > { %2387 = vmatpush.bf16.msrb.mxu0 %v6520_v49  ;;  %v9022_v33 = vld [vmem:[%s14477_s2 + $0x144] sm:$0xf]  ;;  %v9214_v35 = vld [vmem:[%s14477_s2 + $0x73c] sm:$0xf0]  ;;  %v6196_v36 = vor.u32 %v9032_v32, %v6195_v31  ;;  %v7096_v39 = vor.u32 %v9244_v28, %v7093_v29  ;;  %v9224_v40 = vld [vmem:[%s14477_s2 + $0x794] sm:$0xf] }
  0x46   : > { %2404 = vmatpush.bf16.msrb.mxu1 %v6840_v51  ;;  %v9163_v51 = vld [vmem:[%s14477_s2 + $0x5ac] sm:$0xf]  ;;  %v7013_v41 = vld [vmem:[%s14477_s2 + $0x7e0] sm:$0xf0]  ;;  %v6115_v43 = vld [vmem:[%s14477_s2 + $0xa0] sm:$0xf] }
  0x47   : > { %2381 = vmatmul.bf16.vlgmr.msra.gmra.mxu3 %v9983_v2  ;;  %v9012_v44 = vld [vmem:[%s14477_s2 + $0xec] sm:$0xf0]  ;;  %v9002_v45 = vld [vmem:[%s14477_s2 + $0xa4] sm:$0xf]  ;;  %v9194_v47 = vld [vmem:[%s14477_s2 + $0x69c] sm:$0xf0] }
  0x48   : > { %2425 = vmatpush.bf16.msrb.mxu3 %v7244_v55  ;;  %v9092_v55 = vld [vmem:[%s14477_s2 + $0x36c] sm:$0xf0]  ;;  %v6117_v49 = vld [vmem:[%s14477_s2 + $0xf0] sm:$0xf0]  ;;  %v6603_v62 = vld [vmem:[%s14477_s2 + $0x468] sm:$0xf] }
  0x49   : > { %v6436_v59 = vor.u32 %v9092_v55, %v6435_v54  ;;  %2388 = vmatpush.bf16.msrb.mxu0 %v6440_v63  ;;  %v6851_v46 = vld [vmem:[%s14477_s2 + $0x650] sm:$0xf]  ;;  %v9174_v55 = vld [vmem:[%s14477_s2 + $0x5fc] sm:$0xf0]  ;;  %v9133_v63 = vld [vmem:[%s14477_s2 + $0x4b4] sm:$0xf0] }
  0x4a   : > { %2405 = vmatpush.bf16.msrb.mxu1 %v6760_v58  ;;  %v9274_v58 = vld [vmem:[%s14477_s2 + $0x91c] sm:$0xf0]  ;;  %v6771_v54 = vld [vmem:[%s14477_s2 + $0x5b0] sm:$0xf]  ;;  %v6852_v56 = vor.u32 %v9194_v47, %v6851_v46  ;;  %v6525_v19 = vld [vmem:[%s14477_s2 + $0x418] sm:$0xf0] }
  0x4b   : > { %2362 = vmatpush.bf16.msra.mxu2 %v6436_v59  ;;  %v8982_v59 = vld [vmem:[%s14477_s2 + $0x4] sm:$0xf]  ;;  %v9083_v28 = vld [vmem:[%s14477_s2 + $0x32c] sm:$0xf]  ;;  %v7179_v29 = vld [vmem:[%s14477_s2 + $0x8d8] sm:$0xf] }
  0x4c   : > { %2426 = vmatpush.bf16.msrb.mxu3 %v7164_v61  ;;  %v6768_v61 = vor.u32 %v9163_v51, %v6765_v52  ;;  %v6120_v51 = vor.u32 %v9002_v45, %v6117_v49  ;;  %v7016_v52 = vor.u32 %v9224_v40, %v7013_v41  ;;  %v6445_v32 = vld [vmem:[%s14477_s2 + $0x378] sm:$0xf0]  ;;  %v6363_v40 = vld [vmem:[%s14477_s2 + $0x288] sm:$0xf]  ;;  %v9073_v41 = vld [vmem:[%s14477_s2 + $0x2d4] sm:$0xf0] }
  0x4d   : > { %v6364_v45 = vor.u32 %v9073_v41, %v6363_v40  ;;  %v6365_v46 = vld [vmem:[%s14477_s2 + $0x2d8] sm:$0xf0]  ;;  %v341_v40 = vld [vmem:[#allocation2] sm:$0x1]  ;;  %s5941_s17 = sshll.u32 %s14497_s14, 4  ;;  %s5943_s20 = sshll.u32 %s5939_s13, 4  ;;  %s5942_s17 = int_to_ptr.vmem [resolvable:$true] %s5941_s17  ;;  %s5944_s20 = int_to_ptr.hbm [resolvable:$true] %s5943_s20 }
  0x4e   : > { %2406 = vmatpush.bf16.msrb.mxu1 %v6680_v4  ;;  %v7253_v4 = vld [vmem:[%s14477_s2 + $0x9c0] sm:$0xf0]  ;;  %s14499_s9 = sand.u32 1, %s9819_s28   ;;  %s9763_s0 = sshra.s32 %s5944_s20, 4  ;;  %s9764_s0 = int_to_ptr.hbm [resolvable:$true] %s9763_s0 }
  0x4f   : > { %v7256_v15 = vor.u32 %v9284_v3, %v7253_v4  ;;  %v6604_v3 = vor.u32 %v9133_v63, %v6603_v62  ;;  %v9123_v4 = vld [vmem:[%s14477_s2 + $0x46c] sm:$0xf]  ;;  %v9245_v62 = vld [vmem:[%s14477_s2 + $0x83c] sm:$0xf]  ;;  %s5927_s30 = scalar_lea.sflag [#allocation6], %s14499_s9  ;;  %s9765_s15 = scalar_lea.hbm %s9764_s0, 8 }
  0x50   : > { %2427 = vmatpush.bf16.msrb.mxu3 %v7084_v6  ;;  %v6355_v6 = vld [vmem:[%s14477_s2 + $0x280] sm:$0xf]  ;;  %v7101_v63 = vld [vmem:[%s14477_s2 + $0x888] sm:$0xf0]  ;;  %p9766_p1 = scmp.ne.s32.totalorder %s9764_s0, %s9765_s15  ;;  %s9769_s1 = scalar_lea.hbm %s14483_s8, 32 }
  0x51   : > { %2407 = vmatmul.bf16.vlgmr.msrb.gmra.mxu1 %v9983_v2  ;;  %p9770_p5 = scmp.lt.s32.totalorder %s9764_s0, %s14483_s8  ;;  %p9771_p6 = scmp.lt.s32.totalorder %s9769_s1, %s9765_s15 }
  0x52   : > { %2451 = vmatpush.bf16.msra.mxu1 %v7248_v5  ;;  %v7172_v5 = vor.u32 %v9274_v58, %v7171_v57  ;;  %v6035_v57 = vld [vmem:[%s14477_s2] sm:$0xf]  ;;  %v8992_v58 = vld [vmem:[%s14477_s2 + $0x4c] sm:$0xf0]  ;;  %p9767_p2 = pnand %p9766_p1, %p9942_p3 }
  0x53   : > { %v6036_v60 = vor.u32 %v8992_v58, %v6035_v57  ;;  %v9235_v57 = vld [vmem:[%s14477_s2 + $0x7e4] sm:$0xf0]  ;;  %p9772_p7 = por %p9771_p6, %p9770_p5 }
  0x54   : > { %2428 = vmatpush.bf16.msrb.mxu3 %v7004_v12  ;;  %v6357_v12 = vld [vmem:[%s14477_s2 + $0x2d0] sm:$0xf0]  ;;  %p9768_p4 = pneg %p9767_p2 }
  0x55   : > { %v6360_v14 = vor.u32 %v9062_v8, %v6357_v12  ;;  %v9154_v12 = vld [vmem:[%s14477_s2 + $0x55c] sm:$0xf0] }
  0x56   : > { %2452 = vmatpush.bf16.msra.mxu1 %v7168_v11  ;;  %v6356_v11 = vor.u32 %v9072_v7, %v6355_v6  ;;  %v9184_v7 = vld [vmem:[%s14477_s2 + $0x654] sm:$0xf]  ;;  %p9773_p9 = pnand %p9772_p7, %p9768_p4 }
  0x57   : > { %2389 = vmatpush.bf16.msrb.mxu0 %v6360_v14  ;;  %v9113_v14 = vld [vmem:[%s14477_s2 + $0x414] sm:$0xf0] }
  0x58   : > { %2429 = vmatpush.bf16.msrb.mxu3 %v6924_v18  ;;  %2363 = vmatpush.bf16.msra.mxu2 %v6356_v11  ;;  %v7092_v18 = vor.u32 %v9254_v10, %v7091_v9  ;;  %v6772_v9 = vor.u32 %v9174_v55, %v6771_v54  ;;  %v6853_v10 = vld [vmem:[%s14477_s2 + $0x6a0] sm:$0xf0]  ;;  %v6691_v11 = vld [vmem:[%s14477_s2 + $0x510] sm:$0xf]  ;;  %v9053_v54 = vld [vmem:[%s14477_s2 + $0x234] sm:$0xf0] }
  0x59   : > { %v6856_v20 = vor.u32 %v9184_v7, %v6853_v10  ;;  %v9043_v55 = vld [vmem:[%s14477_s2 + $0x1ec] sm:$0xf]  ;;  %v384_v10 = vrot.slane %v9977_v0, 4 }
  0x5a   : > { %2453 = vmatpush.bf16.msra.mxu1 %v7088_v17  ;;  %v7173_v17 = vld [vmem:[%s14477_s2 + $0x920] sm:$0xf0] }
  0x5b   : > { %v7176_v27 = vor.u32 %v9264_v16, %v7173_v17  ;;  %v7259_v16 = vld [vmem:[%s14477_s2 + $0x978] sm:$0xf]  ;;  %v9295_v17 = vld [vmem:[%s14477_s2 + $0x9c4] sm:$0xf0] }
  0x5c   : > { %2430 = vmatpush.bf16.msrb.mxu3 %v6844_v25  ;;  %v6277_v25 = vld [vmem:[%s14477_s2 + $0x230] sm:$0xf0]  ;;  %2364 = vmatpush.bf16.msra.mxu2 %v6276_v24  ;;  %v6773_v24 = vld [vmem:[%s14477_s2 + $0x600] sm:$0xf0] }
  0x5d   : > { %v6280_v26 = vor.u32 %v9042_v21, %v6277_v25  ;;  %v7260_v25 = vor.u32 %v9295_v17, %v7259_v16  ;;  %v385_v16 = vadd.f32 %v384_v10, %v9977_v0  ;;  %v6123_v17 = vld [vmem:[%s14477_s2 + $0xa8] sm:$0xf]  ;;  %v9236_v10 = vld [vmem:[%s14477_s2 + $0x7ec] sm:$0xf0] }
  0x5e   : > { %2454 = vmatpush.bf16.msra.mxu1 %v7008_v23  ;;  %v9234_v23 = vld [vmem:[%s14477_s2 + $0x7dc] sm:$0xf0]  ;;  %v9195_v0 = vld [vmem:[%s14477_s2 + $0x6a4] sm:$0xf0] }
  0x5f   : > { %v7012_v30 = vor.u32 %v9234_v23, %v7011_v22  ;;  %2390 = vmatpush.bf16.msrb.mxu0 %v6280_v26  ;;  %v6692_v22 = vor.u32 %v9154_v12, %v6691_v11  ;;  %v9164_v23 = vld [vmem:[%s14477_s2 + $0x5b4] sm:$0xf]  ;;  %v6443_v26 = vld [vmem:[%s14477_s2 + $0x328] sm:$0xf]  ;;  %v7104_v12 = vor.u32 %v9245_v62, %v7101_v63  ;;  %v9286_v62 = vld [vmem:[%s14477_s2 + $0x984] sm:$0xf] }
  0x60   : > { %2431 = vmatpush.bf16.msrb.mxu3 %v6764_v37  ;;  %v6197_v37 = vld [vmem:[%s14477_s2 + $0x190] sm:$0xf0]  ;;  %2365 = vmatpush.bf16.msra.mxu2 %v6196_v36  ;;  %v6693_v36 = vld [vmem:[%s14477_s2 + $0x560] sm:$0xf0] }
  0x61   : > { %v6200_v38 = vor.u32 %v9022_v33, %v6197_v37  ;;  %v6776_v33 = vor.u32 %v9164_v23, %v6773_v24  ;;  %v9285_v37 = vld [vmem:[%s14477_s2 + $0x97c] sm:$0xf]  ;;  %v386_v23 = vrot.slane %v385_v16, 2  ;;  %v7269_v63 = vld [vmem:[%s14477_s2 + $0x9d0] sm:$0xf0] }
  0x62   : > { %2455 = vmatpush.bf16.msra.mxu1 %v6928_v34  ;;  %v6931_v34 = vld [vmem:[%s14477_s2 + $0x6f0] sm:$0xf] }
  0x63   : > { %v6932_v42 = vor.u32 %v9214_v35, %v6931_v34  ;;  %2391 = vmatpush.bf16.msrb.mxu0 %v6200_v38  ;;  %v9144_v34 = vld [vmem:[%s14477_s2 + $0x514] sm:$0xf]  ;;  %v6448_v35 = vor.u32 %v9083_v28, %v6445_v32  ;;  %v7261_v38 = vld [vmem:[%s14477_s2 + $0x9c8] sm:$0xf0] }
  0x64   : > { %2432 = vmatpush.bf16.msrb.mxu3 %v6684_v50  ;;  %v9204_v50 = vld [vmem:[%s14477_s2 + $0x6f4] sm:$0xf]  ;;  %v6696_v47 = vor.u32 %v9144_v34, %v6693_v36  ;;  %v7264_v49 = vor.u32 %v9285_v37, %v7261_v38  ;;  %v8983_v32 = vld [vmem:[%s14477_s2 + $0xc] sm:$0xf]  ;;  %v9175_v34 = vld [vmem:[%s14477_s2 + $0x604] sm:$0xf0] }
  0x65   : > { %v6045_v36 = vld [vmem:[%s14477_s2 + $0x58] sm:$0xf0] }
  0x66   : > { %2456 = vmatpush.bf16.msra.mxu1 %v6848_v48  ;;  %v6116_v48 = vor.u32 %v9012_v44, %v6115_v43  ;;  %v7099_v43 = vld [vmem:[%s14477_s2 + $0x838] sm:$0xf]  ;;  %v9255_v44 = vld [vmem:[%s14477_s2 + $0x884] sm:$0xf0]  ;;  %v6048_v38 = vor.u32 %v8983_v32, %v6045_v36  ;;  %v6949_v32 = vld [vmem:[%s14477_s2 + $0x750] sm:$0xf0] }
  0x67   : > { %2433 = vmatmul.bf16.vlgmr.msrb.gmra.mxu3 %v9983_v2  ;;  %2392 = vmatpush.bf16.msrb.mxu0 %v6120_v51  ;;  %v7181_v51 = vld [vmem:[%s14477_s2 + $0x928] sm:$0xf0] }
  0x68   : > { %2477 = vmatpush.bf16.msra.mxu3 %v7252_v53  ;;  %v6933_v53 = vld [vmem:[%s14477_s2 + $0x740] sm:$0xf0]  ;;  %2366 = vmatpush.bf16.msra.mxu2 %v6116_v48 }
  0x69   : > { %v6936_v6 = vor.u32 %v9204_v50, %v6933_v53  ;;  %v9265_v50 = vld [vmem:[%s14477_s2 + $0x8dc] sm:$0xf]  ;;  %v6283_v53 = vld [vmem:[%s14477_s2 + $0x1e8] sm:$0xf] }
  0x6a   : > { %2457 = vmatpush.bf16.msra.mxu1 %v6768_v61  ;;  %v6037_v61 = vld [vmem:[%s14477_s2 + $0x50] sm:$0xf0]  ;;  %v6284_v58 = vor.u32 %v9053_v54, %v6283_v53  ;;  %v9165_v53 = vld [vmem:[%s14477_s2 + $0x5bc] sm:$0xf]  ;;  %v6781_v54 = vld [vmem:[%s14477_s2 + $0x608] sm:$0xf0] }
  0x6b   : > { %v6040_v1 = vor.u32 %v8982_v59, %v6037_v61  ;;  %v6285_v59 = vld [vmem:[%s14477_s2 + $0x238] sm:$0xf0]  ;;  %v7184_v61 = vor.u32 %v9265_v50, %v7181_v51  ;;  %v9726_v51 = vld [vmem:[#allocation2] ss:$0 sm:$0xff] }
  0x6c   : > { %2478 = vmatpush.bf16.msra.mxu3 %v7172_v5  ;;  %v6605_v5 = vld [vmem:[%s14477_s2 + $0x4b8] sm:$0xf0]  ;;  %2367 = vmatpush.bf16.msra.mxu2 %v6036_v60  ;;  %v6288_v60 = vor.u32 %v9043_v55, %v6285_v59 }
  0x6d   : > { %v6608_v8 = vor.u32 %v9123_v4, %v6605_v5  ;;  %2393 = vmatpush.bf16.msrb.mxu0 %v6040_v1  ;;  %v6203_v4 = vld [vmem:[%s14477_s2 + $0x148] sm:$0xf]  ;;  %v9033_v5 = vld [vmem:[%s14477_s2 + $0x194] sm:$0xf0]  ;;  %v9145_v59 = vld [vmem:[%s14477_s2 + $0x51c] sm:$0xf] }
  0x6e   : > { %2458 = vmatpush.bf16.msra.mxu1 %v6688_v13  ;;  %v6523_v13 = vld [vmem:[%s14477_s2 + $0x3c8] sm:$0xf]  ;;  %v6204_v7 = vor.u32 %v9033_v5, %v6203_v4  ;;  %v7272_v5 = vor.u32 %v9286_v62, %v7269_v63  ;;  %v9166_v62 = vld [vmem:[%s14477_s2 + $0x5c4] sm:$0xf]  ;;  %v6789_v63 = vld [vmem:[%s14477_s2 + $0x610] sm:$0xf0] }
  0x70   : > { %2479 = vmatpush.bf16.msra.mxu3 %v7092_v18  ;;  %2412 = vmatpush.bf16.msrb.mxu2 %v6604_v3  ;;  %v6524_v18 = vor.u32 %v9113_v14, %v6523_v13  ;;  %v6939_v3 = vld [vmem:[%s14477_s2 + $0x6f8] sm:$0xf]  ;;  %v9225_v13 = vld [vmem:[%s14477_s2 + $0x79c] sm:$0xf]  ;;  %v7021_v14 = vld [vmem:[%s14477_s2 + $0x7e8] sm:$0xf0] }
  0x71   : > { %2459 = vmatmul.bf16.vlgmr.msra.gmra.mxu1 %v9983_v2  ;;  %2438 = vmatpush.bf16.msra.mxu0 %v6608_v8  ;;  %v9023_v8 = vld [vmem:[%s14477_s2 + $0x14c] sm:$0xf] }
  0x72   : > { %2503 = vmatpush.bf16.msrb.mxu1 %v7256_v15  ;;  %v9103_v15 = vld [vmem:[%s14477_s2 + $0x3cc] sm:$0xf] }
  0x73   : > { %v6528_v21 = vor.u32 %v9103_v15, %v6525_v19  ;;  %v9003_v19 = vld [vmem:[%s14477_s2 + $0xac] sm:$0xf] }
  0x74   : > { %2480 = vmatpush.bf16.msra.mxu3 %v7012_v30  ;;  %2413 = vmatpush.bf16.msrb.mxu2 %v6524_v18  ;;  %v9275_v30 = vld [vmem:[%s14477_s2 + $0x924] sm:$0xf0]  ;;  %v9013_v18 = vld [vmem:[%s14477_s2 + $0xf4] sm:$0xf0] }
  0x75   : > { %2439 = vmatpush.bf16.msra.mxu0 %v6528_v21  ;;  %v6124_v21 = vor.u32 %v9013_v18, %v6123_v17 }
  0x76   : > { %2504 = vmatpush.bf16.msrb.mxu1 %v7176_v27  ;;  %v9093_v27 = vld [vmem:[%s14477_s2 + $0x374] sm:$0xf0] }
  0x77   : > { %v6444_v31 = vor.u32 %v9093_v27, %v6443_v26  ;;  %v9205_v26 = vld [vmem:[%s14477_s2 + $0x6fc] sm:$0xf]  ;;  %v6941_v27 = vld [vmem:[%s14477_s2 + $0x748] sm:$0xf0] }
  0x78   : > { %2481 = vmatpush.bf16.msra.mxu3 %v6932_v42  ;;  %v9063_v42 = vld [vmem:[%s14477_s2 + $0x28c] sm:$0xf] }
  0x79   : > { %2414 = vmatpush.bf16.msrb.mxu2 %v6444_v31  ;;  %2440 = vmatpush.bf16.msra.mxu0 %v6448_v35  ;;  %v6368_v48 = vor.u32 %v9063_v42, %v6365_v46  ;;  %v8993_v31 = vld [vmem:[%s14477_s2 + $0x54] sm:$0xf0]  ;;  %v9185_v42 = vld [vmem:[%s14477_s2 + $0x65c] sm:$0xf]  ;;  %v9155_v46 = vld [vmem:[%s14477_s2 + $0x564] sm:$0xf0] }
  0x7a   : > { %2505 = vmatpush.bf16.msrb.mxu1 %v7096_v39  ;;  %v7180_v39 = vor.u32 %v9275_v30, %v7179_v29  ;;  %v387_v29 = vadd.f32 %v386_v23, %v385_v16  ;;  %v6043_v30 = vld [vmem:[%s14477_s2 + $0x8] sm:$0xf]  ;;  %v9216_v16 = vld [vmem:[%s14477_s2 + $0x74c] sm:$0xf0] }
  0x7b   : > { %v6044_v35 = vor.u32 %v8993_v31, %v6043_v30  ;;  %v9206_v30 = vld [vmem:[%s14477_s2 + $0x704] sm:$0xf] }
  0x7c   : > { %2482 = vmatpush.bf16.msra.mxu3 %v6852_v56  ;;  %v7019_v56 = vld [vmem:[%s14477_s2 + $0x798] sm:$0xf]  ;;  %v388_v37 = vrot.slane %v387_v29, 1 }
  0x7d   : > { %2415 = vmatpush.bf16.msrb.mxu2 %v6364_v45  ;;  %2441 = vmatpush.bf16.msra.mxu0 %v6368_v48  ;;  %v7020_v1 = vor.u32 %v9235_v57, %v7019_v56  ;;  %v6699_v45 = vld [vmem:[%s14477_s2 + $0x518] sm:$0xf]  ;;  %v9296_v48 = vld [vmem:[%s14477_s2 + $0x9cc] sm:$0xf0]  ;;  %v7187_v56 = vld [vmem:[%s14477_s2 + $0x8e0] sm:$0xf] }
  0x7e   : > { %2506 = vmatpush.bf16.msrb.mxu1 %v7016_v52  ;;  %v7100_v52 = vor.u32 %v9255_v44, %v7099_v43  ;;  %v6861_v43 = vld [vmem:[%s14477_s2 + $0x6a8] sm:$0xf0]  ;;  %v389_v44 = vadd.f32 %v388_v37, %v387_v29  ;;  %v9276_v57 = vld [vmem:[%s14477_s2 + $0x92c] sm:$0xf0]  ;;  %v6613_v29 = vld [vmem:[%s14477_s2 + $0x4c0] sm:$0xf0] }
  0x7f   : > { %v6864_v50 = vor.u32 %v9185_v42, %v6861_v43  ;;  %v6952_v42 = vor.u32 %v9206_v30, %v6949_v32  ;;  %v6211_v32 = vld [vmem:[%s14477_s2 + $0x150] sm:$0xf] }
  0x80   : > { %2483 = vmatpush.bf16.msra.mxu3 %v6772_v9  ;;  %v6205_v9 = vld [vmem:[%s14477_s2 + $0x198] sm:$0xf0] }
  0x81   : > { %2416 = vmatpush.bf16.msrb.mxu2 %v6284_v58  ;;  %2442 = vmatpush.bf16.msra.mxu0 %v6288_v60  ;;  %v6208_v11 = vor.u32 %v9023_v8, %v6205_v9  ;;  %v6784_v58 = vor.u32 %v9165_v53, %v6781_v54  ;;  %v6701_v60 = vld [vmem:[%s14477_s2 + $0x568] sm:$0xf0]  ;;  %v7189_v8 = vld [vmem:[%s14477_s2 + $0x930] sm:$0xf0]  ;;  %v7027_v9 = vld [vmem:[%s14477_s2 + $0x7a0] sm:$0xf] }
  0x82   : > { %2507 = vmatpush.bf16.msrb.mxu1 %v6936_v6  ;;  %v9215_v6 = vld [vmem:[%s14477_s2 + $0x744] sm:$0xf0]  ;;  %v6704_v4 = vor.u32 %v9145_v59, %v6701_v60  ;;  %v6451_v54 = vld [vmem:[%s14477_s2 + $0x330] sm:$0xf]  ;;  %v6453_v59 = vld [vmem:[%s14477_s2 + $0x380] sm:$0xf0] }
  0x83   : > { %v6940_v15 = vor.u32 %v9215_v6, %v6939_v3  ;;  %v9256_v3 = vld [vmem:[%s14477_s2 + $0x88c] sm:$0xf0] }
  0x84   : > { %2484 = vmatpush.bf16.msra.mxu3 %v6692_v22  ;;  %v6125_v22 = vld [vmem:[%s14477_s2 + $0xf8] sm:$0xf0] }
  0x85   : > { %2417 = vmatpush.bf16.msrb.mxu2 %v6204_v7  ;;  %2443 = vmatpush.bf16.msra.mxu0 %v6208_v11  ;;  %v6128_v24 = vor.u32 %v9003_v19, %v6125_v22  ;;  %v9266_v7 = vld [vmem:[%s14477_s2 + $0x8e4] sm:$0xf]  ;;  %v9196_v22 = vld [vmem:[%s14477_s2 + $0x6ac] sm:$0xf0] }
  0x86   : > { %2508 = vmatpush.bf16.msrb.mxu1 %v6856_v20  ;;  %v6859_v20 = vld [vmem:[%s14477_s2 + $0x658] sm:$0xf]  ;;  %v7192_v11 = vor.u32 %v9266_v7, %v7189_v8  ;;  %v6792_v7 = vor.u32 %v9166_v62, %v6789_v63  ;;  %v9074_v8 = vld [vmem:[%s14477_s2 + $0x2dc] sm:$0xf0]  ;;  %v9135_v62 = vld [vmem:[%s14477_s2 + $0x4c4] sm:$0xf0] }
  0x87   : > { %2485 = vmatmul.bf16.vlgmr.msra.gmra.mxu3 %v9983_v2  ;;  %v6860_v28 = vor.u32 %v9195_v0, %v6859_v20  ;;  %v9226_v20 = vld [vmem:[%s14477_s2 + $0x7a4] sm:$0xf]  ;;  %v7029_v0 = vld [vmem:[%s14477_s2 + $0x7f0] sm:$0xf0] }
  0x88   : > { %2529 = vmatpush.bf16.msrb.mxu3 %v7260_v25  ;;  %v7024_v25 = vor.u32 %v9225_v13, %v7021_v14  ;;  %v9246_v13 = vld [vmem:[%s14477_s2 + $0x844] sm:$0xf]  ;;  %v7109_v14 = vld [vmem:[%s14477_s2 + $0x890] sm:$0xf0] }
  0x89   : > { %2418 = vmatpush.bf16.msrb.mxu2 %v6124_v21  ;;  %2444 = vmatpush.bf16.msra.mxu0 %v6128_v24  ;;  %v7112_v17 = vor.u32 %v9246_v13, %v7109_v14  ;;  %v6867_v21 = vld [vmem:[%s14477_s2 + $0x660] sm:$0xf]  ;;  %v7032_v24 = vor.u32 %v9226_v20, %v7029_v0  ;;  %v6709_v13 = vld [vmem:[%s14477_s2 + $0x570] sm:$0xf0]  ;;  %v9287_v14 = vld [vmem:[%s14477_s2 + $0x98c] sm:$0xf] }
  0x8a   : > { %2509 = vmatpush.bf16.msrb.mxu1 %v6776_v33  ;;  %v6779_v33 = vld [vmem:[%s14477_s2 + $0x5b8] sm:$0xf]  ;;  %v6291_v20 = vld [vmem:[%s14477_s2 + $0x1f0] sm:$0xf] }
  0x8b   : > { %v6780_v41 = vor.u32 %v9175_v34, %v6779_v33  ;;  %v6787_v33 = vld [vmem:[%s14477_s2 + $0x5c0] sm:$0xf]  ;;  %v9176_v34 = vld [vmem:[%s14477_s2 + $0x60c] sm:$0xf0] }
  0x8c   : > { %2530 = vmatpush.bf16.msrb.mxu3 %v7180_v39  ;;  %v6944_v39 = vor.u32 %v9205_v26, %v6941_v27  ;;  %v6611_v26 = vld [vmem:[%s14477_s2 + $0x470] sm:$0xf]  ;;  %v9134_v27 = vld [vmem:[%s14477_s2 + $0x4bc] sm:$0xf0]  ;;  %v6788_v43 = vor.u32 %v9176_v34, %v6787_v33  ;;  %v9024_v34 = vld [vmem:[%s14477_s2 + $0x154] sm:$0xf] }
  0x8d   : > { %2419 = vmatpush.bf16.msrb.mxu2 %v6044_v35  ;;  %2445 = vmatpush.bf16.msra.mxu0 %v6048_v38  ;;  %v6612_v37 = vor.u32 %v9134_v27, %v6611_v26  ;;  %v9267_v26 = vld [vmem:[%s14477_s2 + $0x8ec] sm:$0xf]  ;;  %v7197_v27 = vld [vmem:[%s14477_s2 + $0x938] sm:$0xf0]  ;;  %v9034_v33 = vld [vmem:[%s14477_s2 + $0x19c] sm:$0xf0] }
  0x8e   : > { %2510 = vmatpush.bf16.msrb.mxu1 %v6696_v47  ;;  %v7267_v47 = vld [vmem:[%s14477_s2 + $0x980] sm:$0xf] }
  0x8f   : > { %v7268_v55 = vor.u32 %v9296_v48, %v7267_v47  ;;  %v6869_v47 = vld [vmem:[%s14477_s2 + $0x6b0] sm:$0xf0]  ;;  %v6707_v48 = vld [vmem:[%s14477_s2 + $0x520] sm:$0xf] }
  0x90   : > { %2531 = vmatpush.bf16.msrb.mxu3 %v7100_v52  ;;  %v6700_v52 = vor.u32 %v9155_v46, %v6699_v45  ;;  %v6533_v45 = vld [vmem:[%s14477_s2 + $0x420] sm:$0xf0] }
  0x91   : > { %2511 = vmatmul.bf16.vlgmr.msrb.gmra.mxu1 %v9983_v2  ;;  %v9186_v46 = vld [vmem:[%s14477_s2 + $0x664] sm:$0xf] }
  0x92   : > { %2555 = vmatpush.bf16.msra.mxu1 %v7264_v49  ;;  %v390_v49 = vadd.f32 %v389_v44, %v341_v40  ;;  %v9114_v40 = vld [vmem:[%s14477_s2 + $0x41c] sm:$0xf0]  ;;  %v9104_v44 = vld [vmem:[%s14477_s2 + $0x3d4] sm:$0xf] }
  0x93   : > { %v6536_v53 = vor.u32 %v9104_v44, %v6533_v45  ;;  %v6131_v45 = vld [vmem:[%s14477_s2 + $0xb0] sm:$0xf] }
  0x94   : > { %2532 = vmatpush.bf16.msrb.mxu3 %v7020_v1  ;;  %391 = vst [vmem:[#allocation2] sm:$0x1] %v390_v49  ;;  %v7107_v1 = vld [vmem:[%s14477_s2 + $0x840] sm:$0xf]  ;;  %v9156_v49 = vld [vmem:[%s14477_s2 + $0x56c] sm:$0xf0] }
  0x95   : > { %v7108_v6 = vor.u32 %v9256_v3, %v7107_v1  ;;  %v7195_v1 = vld [vmem:[%s14477_s2 + $0x8e8] sm:$0xf]  ;;  %v9277_v3 = vld [vmem:[%s14477_s2 + $0x934] sm:$0xf0] }
  0x96   : > { %2556 = vmatpush.bf16.msra.mxu1 %v7184_v61  ;;  %v7188_v61 = vor.u32 %v9276_v57, %v7187_v56  ;;  %v6708_v56 = vor.u32 %v9156_v49, %v6707_v48  ;;  %v9094_v57 = vld [vmem:[%s14477_s2 + $0x37c] sm:$0xf0]  ;;  %v6133_v48 = vld [vmem:[%s14477_s2 + $0x100] sm:$0xf0] }
  0x98   : > { %2533 = vmatpush.bf16.msrb.mxu3 %v6940_v15  ;;  %v6947_v15 = vld [vmem:[%s14477_s2 + $0x700] sm:$0xf] }
  0x99   : > { %v6948_v19 = vor.u32 %v9216_v16, %v6947_v15  ;;  %v7277_v15 = vld [vmem:[%s14477_s2 + $0x9d8] sm:$0xf0]  ;;  %v7115_v16 = vld [vmem:[%s14477_s2 + $0x848] sm:$0xf] }
  0x9a   : > { %2557 = vmatpush.bf16.msra.mxu1 %v7104_v12  ;;  %v7028_v12 = vor.u32 %v9236_v10, %v7027_v9  ;;  %v9064_v9 = vld [vmem:[%s14477_s2 + $0x294] sm:$0xf]  ;;  %v6373_v10 = vld [vmem:[%s14477_s2 + $0x2e0] sm:$0xf0] }
  0x9c   : > { %2534 = vmatpush.bf16.msrb.mxu3 %v6860_v28  ;;  %v9124_v28 = vld [vmem:[%s14477_s2 + $0x474] sm:$0xf] }
  0x9d   : > { %v6616_v38 = vor.u32 %v9124_v28, %v6613_v29  ;;  %v7035_v28 = vld [vmem:[%s14477_s2 + $0x7a8] sm:$0xf]  ;;  %v9237_v29 = vld [vmem:[%s14477_s2 + $0x7f4] sm:$0xf0] }
  0x9e   : > { %2558 = vmatpush.bf16.msra.mxu1 %v7024_v25  ;;  %v6868_v25 = vor.u32 %v9196_v22, %v6867_v21  ;;  %v9054_v21 = vld [vmem:[%s14477_s2 + $0x23c] sm:$0xf0]  ;;  %v9044_v22 = vld [vmem:[%s14477_s2 + $0x1f4] sm:$0xf] }
  0x9f   : > { %v6292_v30 = vor.u32 %v9054_v21, %v6291_v20  ;;  %v6877_v20 = vld [vmem:[%s14477_s2 + $0x6b8] sm:$0xf0]  ;;  %v9157_v21 = vld [vmem:[%s14477_s2 + $0x574] sm:$0xf0] }
  0xa0   : > { %2535 = vmatpush.bf16.msrb.mxu3 %v6780_v41 }
  0xa2   : > { %2559 = vmatpush.bf16.msra.mxu1 %v6944_v39  ;;  %v6531_v39 = vld [vmem:[%s14477_s2 + $0x3d0] sm:$0xf] }
  0xa4   : > { %2536 = vmatpush.bf16.msrb.mxu3 %v6700_v52  ;;  %v6532_v52 = vor.u32 %v9114_v40, %v6531_v39  ;;  %v7117_v39 = vld [vmem:[%s14477_s2 + $0x898] sm:$0xf0]  ;;  %v6955_v40 = vld [vmem:[%s14477_s2 + $0x708] sm:$0xf] }
  0xa6   : > { %2560 = vmatpush.bf16.msra.mxu1 %v6864_v50  ;;  %v7275_v50 = vld [vmem:[%s14477_s2 + $0x988] sm:$0xf] }
  0xa7   : > { %2537 = vmatmul.bf16.vlgmr.msrb.gmra.mxu3 %v9983_v2 }
  0xa8   : > { %2581 = vmatpush.bf16.msra.mxu3 %v7268_v55  ;;  %v6872_v55 = vor.u32 %v9186_v46, %v6869_v47  ;;  %v9014_v46 = vld [vmem:[%s14477_s2 + $0xfc] sm:$0xf0]  ;;  %v9004_v47 = vld [vmem:[%s14477_s2 + $0xb4] sm:$0xf] }
  0xaa   : > { %2561 = vmatpush.bf16.msra.mxu1 %v6784_v58  ;;  %v359_v18 = vpop.f32.mrf.mxu0  ;;  %v9084_v58 = vld [vmem:[%s14477_s2 + $0x334] sm:$0xf] }
  0xab   : > { %v366_v23 = vadd.f32 %v9726_v51, %v359_v18  ;;  %v9297_v51 = vld [vmem:[%s14477_s2 + $0x9d4] sm:$0xf0] }
  0xac   : > { %2582 = vmatpush.bf16.msra.mxu3 %v7188_v61  ;;  %v7276_v61 = vor.u32 %v9297_v51, %v7275_v50  ;;  %v9227_v51 = vld [vmem:[%s14477_s2 + $0x7ac] sm:$0xf] }
  0xae   : > { %2562 = vmatpush.bf16.msra.mxu1 %v6704_v4  ;;  %v379_v31 = vpop.f32.mrf.mxu1  ;;  %v6452_v4 = vor.u32 %v9094_v57, %v6451_v54  ;;  %v9197_v54 = vld [vmem:[%s14477_s2 + $0x6b4] sm:$0xf0]  ;;  %v6051_v57 = vld [vmem:[%s14477_s2 + $0x10] sm:$0xf] }
  0xaf   : > { %v383_v35 = vadd.f32 %v379_v31, %v366_v23  ;;  %v6293_v23 = vld [vmem:[%s14477_s2 + $0x240] sm:$0xf0] }
  0xb0   : > { %2583 = vmatpush.bf16.msra.mxu3 %v7108_v6  ;;  %v6371_v6 = vld [vmem:[%s14477_s2 + $0x290] sm:$0xf]  ;;  %v6296_v31 = vor.u32 %v9044_v22, %v6293_v23  ;;  %v9298_v23 = vld [vmem:[%s14477_s2 + $0x9dc] sm:$0xf0] }
  0xb1   : > { %2563 = vmatmul.bf16.vlgmr.msra.gmra.mxu1 %v9983_v2  ;;  %v10671_v41 = vpack.c.bf16 %v383_v35, %v383_v35  ;;  %v6372_v18 = vor.u32 %v9074_v8, %v6371_v6  ;;  %v6213_v35 = vld [vmem:[%s14477_s2 + $0x1a0] sm:$0xf0]  ;;  %v6957_v6 = vld [vmem:[%s14477_s2 + $0x758] sm:$0xf0]  ;;  %v9177_v8 = vld [vmem:[%s14477_s2 + $0x614] sm:$0xf0] }
  0xb2   : > { %2607 = vmatpush.bf16.msrb.mxu1 %v7272_v5  ;;  %v361_v36 = vpop.f32.mrf.mxu0  ;;  %v6456_v5 = vor.u32 %v9084_v58, %v6453_v59  ;;  %v6216_v44 = vor.u32 %v9024_v34, %v6213_v35  ;;  %v8994_v58 = vld [vmem:[%s14477_s2 + $0x5c] sm:$0xf0]  ;;  %v8984_v59 = vld [vmem:[%s14477_s2 + $0x14] sm:$0xf]  ;;  %v7283_v22 = vld [vmem:[%s14477_s2 + $0x990] sm:$0xf] }
  0xb3   : > { %2368 = vmatmul.bf16.vlgmr.msra.gmra.mxu2 %v10671_v41  ;;  %2394 = vmatmul.bf16.vlgmr.msrb.gmra.mxu0 %v10671_v41  ;;  %v7200_v36 = vor.u32 %v9267_v26, %v7197_v27  ;;  %v6459_v26 = vld [vmem:[%s14477_s2 + $0x338] sm:$0xf]  ;;  %v6797_v34 = vld [vmem:[%s14477_s2 + $0x618] sm:$0xf0]  ;;  %v7203_v35 = vld [vmem:[%s14477_s2 + $0x8f0] sm:$0xf] }
  0xb4   : > { %2584 = vmatpush.bf16.msra.mxu3 %v7028_v12  ;;  %2464 = vmatpush.bf16.msra.mxu2 %v6612_v37  ;;  %v9146_v12 = vld [vmem:[%s14477_s2 + $0x524] sm:$0xf]  ;;  %v7036_v37 = vor.u32 %v9237_v29, %v7035_v28  ;;  %v9095_v29 = vld [vmem:[%s14477_s2 + $0x384] sm:$0xf0] }
  0xb5   : > { %2490 = vmatpush.bf16.msrb.mxu0 %v6616_v38  ;;  %v6712_v0 = vor.u32 %v9146_v12, %v6709_v13  ;;  %v9247_v38 = vld [vmem:[%s14477_s2 + $0x84c] sm:$0xf]  ;;  %v6539_v13 = vld [vmem:[%s14477_s2 + $0x3d8] sm:$0xf] }
  0xb6   : > { %2608 = vmatpush.bf16.msrb.mxu1 %v7192_v11  ;;  %v381_v60 = vpop.f32.mrf.mxu1  ;;  %v7196_v11 = vor.u32 %v9277_v3, %v7195_v1  ;;  %v7120_v49 = vor.u32 %v9247_v38, %v7117_v39  ;;  %v9125_v3 = vld [vmem:[%s14477_s2 + $0x47c] sm:$0xf]  ;;  %v6379_v39 = vld [vmem:[%s14477_s2 + $0x298] sm:$0xf] }
  0xb7   : > { %v6053_v60 = vld [vmem:[%s14477_s2 + $0x60] sm:$0xf0] }
  0xb8   : > { %2585 = vmatpush.bf16.msra.mxu3 %v6948_v19  ;;  %2465 = vmatpush.bf16.msra.mxu2 %v6532_v52  ;;  %v6376_v19 = vor.u32 %v9064_v9, %v6373_v10  ;;  %v7037_v52 = vld [vmem:[%s14477_s2 + $0x7f8] sm:$0xf0]  ;;  %v6052_v9 = vor.u32 %v8994_v58, %v6051_v57  ;;  %v6056_v10 = vor.u32 %v8984_v59, %v6053_v60  ;;  %v6301_v58 = vld [vmem:[%s14477_s2 + $0x248] sm:$0xf0] }
  0xb9   : > { %2491 = vmatpush.bf16.msrb.mxu0 %v6536_v53  ;;  %v6875_v53 = vld [vmem:[%s14477_s2 + $0x668] sm:$0xf]  ;;  %v7040_v63 = vor.u32 %v9227_v51, %v7037_v52  ;;  %v9258_v51 = vld [vmem:[%s14477_s2 + $0x89c] sm:$0xf0]  ;;  %v9045_v57 = vld [vmem:[%s14477_s2 + $0x1fc] sm:$0xf] }
  0xba   : > { %2609 = vmatpush.bf16.msrb.mxu1 %v7112_v17  ;;  %v9257_v17 = vld [vmem:[%s14477_s2 + $0x894] sm:$0xf0]  ;;  %v6876_v1 = vor.u32 %v9197_v54, %v6875_v53 }
  0xbb   : > { %v6299_v54 = vld [vmem:[%s14477_s2 + $0x1f8] sm:$0xf] }
  0xbc   : > { %2586 = vmatpush.bf16.msra.mxu3 %v6868_v25  ;;  %2466 = vmatpush.bf16.msra.mxu2 %v6452_v4  ;;  %v7116_v25 = vor.u32 %v9257_v17, %v7115_v16  ;;  %v6621_v4 = vld [vmem:[%s14477_s2 + $0x4c8] sm:$0xf0]  ;;  %v9105_v17 = vld [vmem:[%s14477_s2 + $0x3dc] sm:$0xf] }
  0xbd   : > { %2492 = vmatpush.bf16.msrb.mxu0 %v6456_v5  ;;  %v9207_v5 = vld [vmem:[%s14477_s2 + $0x70c] sm:$0xf]  ;;  %v6624_v12 = vor.u32 %v9125_v3, %v6621_v4  ;;  %v6304_v4 = vor.u32 %v9045_v57, %v6301_v58  ;;  %v7291_v57 = vld [vmem:[%s14477_s2 + $0x998] sm:$0xf]  ;;  %v9299_v58 = vld [vmem:[%s14477_s2 + $0x9e4] sm:$0xf0] }
  0xbe   : > { %2610 = vmatpush.bf16.msrb.mxu1 %v7032_v24  ;;  %v7280_v24 = vor.u32 %v9287_v14, %v7277_v15  ;;  %v9115_v14 = vld [vmem:[%s14477_s2 + $0x424] sm:$0xf0]  ;;  %v6960_v15 = vor.u32 %v9207_v5, %v6957_v6  ;;  %v6219_v5 = vld [vmem:[%s14477_s2 + $0x158] sm:$0xf] }
  0xbf   : > { %v9035_v6 = vld [vmem:[%s14477_s2 + $0x1a4] sm:$0xf0] }
  0xc0   : > { %2587 = vmatpush.bf16.msra.mxu3 %v6788_v43  ;;  %2467 = vmatpush.bf16.msra.mxu2 %v6372_v18  ;;  %v6212_v43 = vor.u32 %v9034_v33, %v6211_v32  ;;  %v6541_v18 = vld [vmem:[%s14477_s2 + $0x428] sm:$0xf0]  ;;  %v7284_v32 = vor.u32 %v9298_v23, %v7283_v22  ;;  %v9228_v22 = vld [vmem:[%s14477_s2 + $0x7b4] sm:$0xf]  ;;  %v7045_v23 = vld [vmem:[%s14477_s2 + $0x800] sm:$0xf0] }
  0xc1   : > { %2493 = vmatpush.bf16.msrb.mxu0 %v6376_v19  ;;  %v9187_v19 = vld [vmem:[%s14477_s2 + $0x66c] sm:$0xf] }
  0xc2   : > { %2611 = vmatpush.bf16.msrb.mxu1 %v6952_v42  ;;  %v9217_v42 = vld [vmem:[%s14477_s2 + $0x754] sm:$0xf0]  ;;  %v6880_v27 = vor.u32 %v9187_v19, %v6877_v20  ;;  %v9167_v33 = vld [vmem:[%s14477_s2 + $0x5cc] sm:$0xf]  ;;  %v9005_v19 = vld [vmem:[%s14477_s2 + $0xbc] sm:$0xf] }
  0xc3   : > { %2420 = vmatmul.bf16.vlgmr.msrb.gmra.mxu2 %v10671_v41  ;;  %2446 = vmatmul.bf16.vlgmr.msra.gmra.mxu0 %v10671_v41  ;;  %v6956_v50 = vor.u32 %v9217_v42, %v6955_v40  ;;  %v6800_v40 = vor.u32 %v9167_v33, %v6797_v34  ;;  %v9075_v42 = vld [vmem:[%s14477_s2 + $0x2e4] sm:$0xf0]  ;;  %v6141_v20 = vld [vmem:[%s14477_s2 + $0x108] sm:$0xf0]  ;;  %v9136_v33 = vld [vmem:[%s14477_s2 + $0x4cc] sm:$0xf0]  ;;  %v7048_v34 = vor.u32 %v9228_v22, %v7045_v23 }
  0xc4   : > { %2588 = vmatpush.bf16.msra.mxu3 %v6708_v56  ;;  %2468 = vmatpush.bf16.msra.mxu2 %v6292_v30  ;;  %v6136_v56 = vor.u32 %v9004_v47, %v6133_v48  ;;  %v9085_v30 = vld [vmem:[%s14477_s2 + $0x33c] sm:$0xf]  ;;  %v9288_v48 = vld [vmem:[%s14477_s2 + $0x994] sm:$0xf]  ;;  %v6380_v52 = vor.u32 %v9075_v42, %v6379_v39  ;;  %v6965_v39 = vld [vmem:[%s14477_s2 + $0x760] sm:$0xf0] }
  0xc5   : > { %2494 = vmatpush.bf16.msrb.mxu0 %v6296_v31  ;;  %v6461_v31 = vld [vmem:[%s14477_s2 + $0x388] sm:$0xf0]  ;;  %v6717_v47 = vld [vmem:[%s14477_s2 + $0x578] sm:$0xf0]  ;;  %v9178_v42 = vld [vmem:[%s14477_s2 + $0x61c] sm:$0xf0] }
  0xc6   : > { %2612 = vmatpush.bf16.msrb.mxu1 %v6872_v55  ;;  %v6132_v55 = vor.u32 %v9014_v46, %v6131_v45  ;;  %v6464_v38 = vor.u32 %v9085_v30, %v6461_v31  ;;  %v9147_v46 = vld [vmem:[%s14477_s2 + $0x52c] sm:$0xf]  ;;  %v8985_v30 = vld [vmem:[%s14477_s2 + $0x1c] sm:$0xf]  ;;  %v9259_v22 = vld [vmem:[%s14477_s2 + $0x8a4] sm:$0xf0] }
  0xc7   : > { %2589 = vmatmul.bf16.vlgmr.msra.gmra.mxu3 %v9983_v2  ;;  %v6061_v31 = vld [vmem:[%s14477_s2 + $0x68] sm:$0xf0] }
  0xc8   : > { %2633 = vmatpush.bf16.msrb.mxu3 %v7276_v61  ;;  %2469 = vmatpush.bf16.msra.mxu2 %v6212_v43  ;;  %v6619_v61 = vld [vmem:[%s14477_s2 + $0x478] sm:$0xf]  ;;  %v9065_v43 = vld [vmem:[%s14477_s2 + $0x29c] sm:$0xf] }
  0xc9   : > { %2495 = vmatpush.bf16.msrb.mxu0 %v6216_v44  ;;  %v6381_v44 = vld [vmem:[%s14477_s2 + $0x2e8] sm:$0xf0] }
  0xca   : > { %2613 = vmatpush.bf16.msrb.mxu1 %v6792_v7  ;;  %v6795_v7 = vld [vmem:[%s14477_s2 + $0x5c8] sm:$0xf]  ;;  %v6384_v53 = vor.u32 %v9065_v43, %v6381_v44  ;;  %v6064_v44 = vor.u32 %v8985_v30, %v6061_v31 }
  0xcb   : > { %v6796_v16 = vor.u32 %v9177_v8, %v6795_v7  ;;  %v9025_v7 = vld [vmem:[%s14477_s2 + $0x15c] sm:$0xf]  ;;  %v6221_v8 = vld [vmem:[%s14477_s2 + $0x1a8] sm:$0xf0] }
  0xcc   : > { %2634 = vmatpush.bf16.msrb.mxu3 %v7196_v11  ;;  %2470 = vmatpush.bf16.msra.mxu2 %v6132_v55  ;;  %v6620_v11 = vor.u32 %v9135_v62, %v6619_v61  ;;  %v6720_v55 = vor.u32 %v9147_v46, %v6717_v47  ;;  %v9268_v61 = vld [vmem:[%s14477_s2 + $0x8f4] sm:$0xf]  ;;  %v7205_v62 = vld [vmem:[%s14477_s2 + $0x940] sm:$0xf0]  ;;  %v6547_v47 = vld [vmem:[%s14477_s2 + $0x3e0] sm:$0xf] }
  0xcd   : > { %2496 = vmatpush.bf16.msrb.mxu0 %v6136_v56  ;;  %v9055_v56 = vld [vmem:[%s14477_s2 + $0x244] sm:$0xf0] }
  0xce   : > { %2614 = vmatpush.bf16.msrb.mxu1 %v6712_v0  ;;  %v6715_v0 = vld [vmem:[%s14477_s2 + $0x528] sm:$0xf]  ;;  %v6300_v3 = vor.u32 %v9055_v56, %v6299_v54  ;;  %v6885_v54 = vld [vmem:[%s14477_s2 + $0x6c0] sm:$0xf0]  ;;  %v9158_v56 = vld [vmem:[%s14477_s2 + $0x57c] sm:$0xf0] }
  0xcf   : > { %v6716_v28 = vor.u32 %v9157_v21, %v6715_v0 }
  0xd0   : > { %2635 = vmatpush.bf16.msrb.mxu3 %v7116_v25  ;;  %2471 = vmatpush.bf16.msra.mxu2 %v6052_v9  ;;  %v6544_v25 = vor.u32 %v9105_v17, %v6541_v18  ;;  %v7208_v9 = vor.u32 %v9268_v61, %v7205_v62  ;;  %v6139_v17 = vld [vmem:[%s14477_s2 + $0xb8] sm:$0xf]  ;;  %v9015_v18 = vld [vmem:[%s14477_s2 + $0x104] sm:$0xf0]  ;;  %v6467_v61 = vld [vmem:[%s14477_s2 + $0x340] sm:$0xf] }
  0xd1   : > { %2615 = vmatmul.bf16.vlgmr.msrb.gmra.mxu1 %v9983_v2  ;;  %2497 = vmatpush.bf16.msrb.mxu0 %v6056_v10 }
  0xd2   : > { %2659 = vmatpush.bf16.msra.mxu1 %v7280_v24  ;;  %v6540_v24 = vor.u32 %v9115_v14, %v6539_v13  ;;  %v6963_v13 = vld [vmem:[%s14477_s2 + $0x710] sm:$0xf]  ;;  %v9218_v14 = vld [vmem:[%s14477_s2 + $0x75c] sm:$0xf0] }
  0xd3   : > { %2472 = vmatmul.bf16.vlgmr.msra.gmra.mxu2 %v10671_v41  ;;  %v6964_v21 = vor.u32 %v9218_v14, %v6963_v13  ;;  %v9076_v14 = vld [vmem:[%s14477_s2 + $0x2ec] sm:$0xf0] }
  0xd4   : > { %2636 = vmatpush.bf16.msrb.mxu3 %v7036_v37  ;;  %2516 = vmatpush.bf16.msrb.mxu2 %v6620_v11  ;;  %v6460_v37 = vor.u32 %v9095_v29, %v6459_v26  ;;  %v9248_v11 = vld [vmem:[%s14477_s2 + $0x854] sm:$0xf]  ;;  %v6140_v26 = vor.u32 %v9015_v18, %v6139_v17  ;;  %v8995_v29 = vld [vmem:[%s14477_s2 + $0x64] sm:$0xf0] }
  0xd5   : > { %2542 = vmatpush.bf16.msra.mxu0 %v6624_v12  ;;  %v7125_v12 = vld [vmem:[%s14477_s2 + $0x8a0] sm:$0xf0]  ;;  %v9148_v18 = vld [vmem:[%s14477_s2 + $0x534] sm:$0xf] }
  0xd6   : > { %2660 = vmatpush.bf16.msra.mxu1 %v7200_v36  ;;  %2498 = vmatmul.bf16.vlgmr.msrb.gmra.mxu0 %v10671_v41  ;;  %v9278_v36 = vld [vmem:[%s14477_s2 + $0x93c] sm:$0xf0]  ;;  %v7128_v0 = vor.u32 %v9248_v11, %v7125_v12 }
  0xd7   : > { %v7204_v45 = vor.u32 %v9278_v36, %v7203_v35  ;;  %v9126_v36 = vld [vmem:[%s14477_s2 + $0x484] sm:$0xf]  ;;  %v6387_v12 = vld [vmem:[%s14477_s2 + $0x2a0] sm:$0xf] }
  0xd8   : > { %2637 = vmatpush.bf16.msrb.mxu3 %v6956_v50  ;;  %2517 = vmatpush.bf16.msrb.mxu2 %v6540_v24  ;;  %v7123_v50 = vld [vmem:[%s14477_s2 + $0x850] sm:$0xf]  ;;  %v6388_v23 = vor.u32 %v9076_v14, %v6387_v12  ;;  %v6973_v12 = vld [vmem:[%s14477_s2 + $0x768] sm:$0xf0]  ;;  %v9179_v14 = vld [vmem:[%s14477_s2 + $0x624] sm:$0xf0] }
  0xd9   : > { %2543 = vmatpush.bf16.msra.mxu0 %v6544_v25  ;;  %v7124_v60 = vor.u32 %v9258_v51, %v7123_v50  ;;  %v6883_v24 = vld [vmem:[%s14477_s2 + $0x670] sm:$0xf]  ;;  %v9198_v25 = vld [vmem:[%s14477_s2 + $0x6bc] sm:$0xf0]  ;;  %v9106_v51 = vld [vmem:[%s14477_s2 + $0x3e4] sm:$0xf] }
  0xda   : > { %2661 = vmatpush.bf16.msra.mxu1 %v7120_v49  ;;  %v7285_v49 = vld [vmem:[%s14477_s2 + $0x9e0] sm:$0xf0]  ;;  %v6884_v35 = vor.u32 %v9198_v25, %v6883_v24  ;;  %v6307_v25 = vld [vmem:[%s14477_s2 + $0x200] sm:$0xf] }
  0xdb   : > { %v7288_v59 = vor.u32 %v9288_v48, %v7285_v49  ;;  %v9116_v48 = vld [vmem:[%s14477_s2 + $0x42c] sm:$0xf0] }
  0xdc   : > { %2638 = vmatpush.bf16.msrb.mxu3 %v6876_v1  ;;  %2518 = vmatpush.bf16.msrb.mxu2 %v6460_v37  ;;  %v9238_v1 = vld [vmem:[%s14477_s2 + $0x7fc] sm:$0xf0]  ;;  %v6629_v37 = vld [vmem:[%s14477_s2 + $0x4d0] sm:$0xf0] }
  0xdd   : > { %2544 = vmatpush.bf16.msra.mxu0 %v6464_v38  ;;  %v9208_v38 = vld [vmem:[%s14477_s2 + $0x714] sm:$0xf]  ;;  %v6632_v46 = vor.u32 %v9126_v36, %v6629_v37 }
  0xde   : > { %2662 = vmatpush.bf16.msra.mxu1 %v7040_v63  ;;  %v7043_v63 = vld [vmem:[%s14477_s2 + $0x7b0] sm:$0xf]  ;;  %v6968_v49 = vor.u32 %v9208_v38, %v6965_v39  ;;  %v6227_v38 = vld [vmem:[%s14477_s2 + $0x160] sm:$0xf] }
  0xdf   : > { %v7044_v10 = vor.u32 %v9238_v1, %v7043_v63  ;;  %v9096_v1 = vld [vmem:[%s14477_s2 + $0x38c] sm:$0xf0] }
  0xe0   : > { %2639 = vmatpush.bf16.msrb.mxu3 %v6796_v16  ;;  %2519 = vmatpush.bf16.msrb.mxu2 %v6380_v52  ;;  %v6224_v16 = vor.u32 %v9025_v7, %v6221_v8  ;;  %v6549_v52 = vld [vmem:[%s14477_s2 + $0x430] sm:$0xf0]  ;;  %v6805_v7 = vld [vmem:[%s14477_s2 + $0x620] sm:$0xf0]  ;;  %v7211_v8 = vld [vmem:[%s14477_s2 + $0x8f8] sm:$0xf] }
  0xe1   : > { %2545 = vmatpush.bf16.msra.mxu0 %v6384_v53  ;;  %v9188_v53 = vld [vmem:[%s14477_s2 + $0x674] sm:$0xf]  ;;  %v9036_v39 = vld [vmem:[%s14477_s2 + $0x1ac] sm:$0xf0] }
  0xe2   : > { %2663 = vmatpush.bf16.msra.mxu1 %v6960_v15  ;;  %v6220_v15 = vor.u32 %v9035_v6, %v6219_v5  ;;  %v6888_v62 = vor.u32 %v9188_v53, %v6885_v54  ;;  %v7292_v5 = vor.u32 %v9299_v58, %v7291_v57  ;;  %v9168_v6 = vld [vmem:[%s14477_s2 + $0x5d4] sm:$0xf]  ;;  %v9006_v53 = vld [vmem:[%s14477_s2 + $0xc4] sm:$0xf]  ;;  %v9229_v57 = vld [vmem:[%s14477_s2 + $0x7bc] sm:$0xf] }
  0xe3   : > { %v6808_v13 = vor.u32 %v9168_v6, %v6805_v7  ;;  %v6149_v54 = vld [vmem:[%s14477_s2 + $0x110] sm:$0xf0]  ;;  %v7053_v58 = vld [vmem:[%s14477_s2 + $0x808] sm:$0xf0]  ;;  %v9137_v6 = vld [vmem:[%s14477_s2 + $0x4d4] sm:$0xf0] }
  0xe4   : > { %2640 = vmatpush.bf16.msrb.mxu3 %v6716_v28  ;;  %2520 = vmatpush.bf16.msrb.mxu2 %v6300_v3  ;;  %v6059_v28 = vld [vmem:[%s14477_s2 + $0x18] sm:$0xf]  ;;  %v9086_v3 = vld [vmem:[%s14477_s2 + $0x344] sm:$0xf]  ;;  %v7056_v7 = vor.u32 %v9229_v57, %v7053_v58  ;;  %v7139_v57 = vld [vmem:[%s14477_s2 + $0x860] sm:$0xf] }
  0xe5   : > { %2546 = vmatpush.bf16.msra.mxu0 %v6304_v4  ;;  %v6060_v43 = vor.u32 %v8995_v29, %v6059_v28  ;;  %v6469_v4 = vld [vmem:[%s14477_s2 + $0x390] sm:$0xf0]  ;;  %v9046_v28 = vld [vmem:[%s14477_s2 + $0x204] sm:$0xf]  ;;  %v9260_v58 = vld [vmem:[%s14477_s2 + $0x8ac] sm:$0xf0] }
  0xe6   : > { %2664 = vmatpush.bf16.msra.mxu1 %v6880_v27  ;;  %v6144_v27 = vor.u32 %v9005_v19, %v6141_v20  ;;  %v6472_v11 = vor.u32 %v9086_v3, %v6469_v4  ;;  %v6725_v19 = vld [vmem:[%s14477_s2 + $0x580] sm:$0xf0]  ;;  %v9289_v20 = vld [vmem:[%s14477_s2 + $0x99c] sm:$0xf]  ;;  %v6309_v29 = vld [vmem:[%s14477_s2 + $0x250] sm:$0xf0] }
  0xe7   : > { %2641 = vmatmul.bf16.vlgmr.msrb.gmra.mxu3 %v9983_v2  ;;  %v6312_v37 = vor.u32 %v9046_v28, %v6309_v29  ;;  %v8986_v3 = vld [vmem:[%s14477_s2 + $0x24] sm:$0xf]  ;;  %v6069_v4 = vld [vmem:[%s14477_s2 + $0x70] sm:$0xf0]  ;;  %v7299_v28 = vld [vmem:[%s14477_s2 + $0x9a0] sm:$0xf] }
  0xe8   : > { %2685 = vmatpush.bf16.msra.mxu3 %v7284_v32  ;;  %2521 = vmatpush.bf16.msrb.mxu2 %v6220_v15  ;;  %v6627_v32 = vld [vmem:[%s14477_s2 + $0x480] sm:$0xf]  ;;  %v9066_v15 = vld [vmem:[%s14477_s2 + $0x2a4] sm:$0xf]  ;;  %v9300_v29 = vld [vmem:[%s14477_s2 + $0x9ec] sm:$0xf0] }
  0xe9   : > { %2547 = vmatpush.bf16.msra.mxu0 %v6224_v16  ;;  %v6389_v16 = vld [vmem:[%s14477_s2 + $0x2f0] sm:$0xf0] }
  0xea   : > { %2665 = vmatpush.bf16.msra.mxu1 %v6800_v40  ;;  %v6803_v40 = vld [vmem:[%s14477_s2 + $0x5d0] sm:$0xf]  ;;  %v6392_v24 = vor.u32 %v9066_v15, %v6389_v16  ;;  %v6072_v16 = vor.u32 %v8986_v3, %v6069_v4  ;;  %v9047_v3 = vld [vmem:[%s14477_s2 + $0x20c] sm:$0xf]  ;;  %v6317_v4 = vld [vmem:[%s14477_s2 + $0x258] sm:$0xf0] }
  0xeb   : > { %v6804_v50 = vor.u32 %v9178_v42, %v6803_v40  ;;  %v9026_v40 = vld [vmem:[%s14477_s2 + $0x164] sm:$0xf]  ;;  %v6229_v42 = vld [vmem:[%s14477_s2 + $0x1b0] sm:$0xf0] }
  0xec   : > { %2686 = vmatpush.bf16.msra.mxu3 %v7204_v45  ;;  %2522 = vmatpush.bf16.msrb.mxu2 %v6140_v26  ;;  %v6628_v45 = vor.u32 %v9136_v33, %v6627_v32  ;;  %v6728_v26 = vor.u32 %v9148_v18, %v6725_v19  ;;  %v9269_v32 = vld [vmem:[%s14477_s2 + $0x8fc] sm:$0xf]  ;;  %v7213_v33 = vld [vmem:[%s14477_s2 + $0x948] sm:$0xf0]  ;;  %v6555_v19 = vld [vmem:[%s14477_s2 + $0x3e8] sm:$0xf] }
  0xed   : > { %2548 = vmatpush.bf16.msra.mxu0 %v6144_v27  ;;  %v9056_v27 = vld [vmem:[%s14477_s2 + $0x24c] sm:$0xf0] }
  0xee   : > { %2666 = vmatpush.bf16.msra.mxu1 %v6720_v55  ;;  %v6723_v55 = vld [vmem:[%s14477_s2 + $0x530] sm:$0xf]  ;;  %v6308_v36 = vor.u32 %v9056_v27, %v6307_v25  ;;  %v6893_v25 = vld [vmem:[%s14477_s2 + $0x6c8] sm:$0xf0]  ;;  %v9159_v27 = vld [vmem:[%s14477_s2 + $0x584] sm:$0xf0] }
  0xef   : > { %v6724_v63 = vor.u32 %v9158_v56, %v6723_v55 }
  0xf0   : > { %2687 = vmatpush.bf16.msra.mxu3 %v7124_v60  ;;  %2523 = vmatpush.bf16.msrb.mxu2 %v6060_v43  ;;  %v6552_v60 = vor.u32 %v9106_v51, %v6549_v52  ;;  %v7216_v43 = vor.u32 %v9269_v32, %v7213_v33  ;;  %v6147_v51 = vld [vmem:[%s14477_s2 + $0xc0] sm:$0xf]  ;;  %v9016_v52 = vld [vmem:[%s14477_s2 + $0x10c] sm:$0xf0]  ;;  %v6475_v32 = vld [vmem:[%s14477_s2 + $0x348] sm:$0xf] }
  0xf1   : > { %2667 = vmatmul.bf16.vlgmr.msra.gmra.mxu1 %v9983_v2  ;;  %2549 = vmatpush.bf16.msra.mxu0 %v6064_v44 }
  0xf2   : > { %2711 = vmatpush.bf16.msrb.mxu1 %v7288_v59  ;;  %v6548_v59 = vor.u32 %v9116_v48, %v6547_v47  ;;  %v6971_v47 = vld [vmem:[%s14477_s2 + $0x718] sm:$0xf]  ;;  %v9219_v48 = vld [vmem:[%s14477_s2 + $0x764] sm:$0xf0] }
  0xf3   : > { %2524 = vmatmul.bf16.vlgmr.msrb.gmra.mxu2 %v10671_v41  ;;  %v6972_v56 = vor.u32 %v9219_v48, %v6971_v47  ;;  %v9077_v48 = vld [vmem:[%s14477_s2 + $0x2f4] sm:$0xf0] }
  0xf4   : > { %2688 = vmatpush.bf16.msra.mxu3 %v7044_v10  ;;  %2568 = vmatpush.bf16.msra.mxu2 %v6628_v45  ;;  %v6468_v10 = vor.u32 %v9096_v1, %v6467_v61  ;;  %v9249_v45 = vld [vmem:[%s14477_s2 + $0x85c] sm:$0xf]  ;;  %v6148_v61 = vor.u32 %v9016_v52, %v6147_v51  ;;  %v8996_v1 = vld [vmem:[%s14477_s2 + $0x6c] sm:$0xf0] }
  0xf5   : > { %2594 = vmatpush.bf16.msrb.mxu0 %v6632_v46  ;;  %v7133_v46 = vld [vmem:[%s14477_s2 + $0x8a8] sm:$0xf0]  ;;  %v9149_v52 = vld [vmem:[%s14477_s2 + $0x53c] sm:$0xf] }
  0xf6   : > { %2712 = vmatpush.bf16.msrb.mxu1 %v7208_v9  ;;  %2550 = vmatmul.bf16.vlgmr.msra.gmra.mxu0 %v10671_v41  ;;  %v9279_v9 = vld [vmem:[%s14477_s2 + $0x944] sm:$0xf0]  ;;  %v7136_v55 = vor.u32 %v9249_v45, %v7133_v46 }
  0xf7   : > { %v7212_v17 = vor.u32 %v9279_v9, %v7211_v8  ;;  %v9127_v9 = vld [vmem:[%s14477_s2 + $0x48c] sm:$0xf]  ;;  %v6395_v46 = vld [vmem:[%s14477_s2 + $0x2a8] sm:$0xf] }
  0xf8   : > { %2689 = vmatpush.bf16.msra.mxu3 %v6964_v21  ;;  %2569 = vmatpush.bf16.msra.mxu2 %v6548_v59  ;;  %v7131_v21 = vld [vmem:[%s14477_s2 + $0x858] sm:$0xf] }
  0xf9   : > { %2595 = vmatpush.bf16.msrb.mxu0 %v6552_v60  ;;  %v7132_v31 = vor.u32 %v9259_v22, %v7131_v21  ;;  %v6891_v59 = vld [vmem:[%s14477_s2 + $0x678] sm:$0xf]  ;;  %v9199_v60 = vld [vmem:[%s14477_s2 + $0x6c4] sm:$0xf0]  ;;  %v9107_v22 = vld [vmem:[%s14477_s2 + $0x3ec] sm:$0xf] }
  0xfa   : > { %2713 = vmatpush.bf16.msrb.mxu1 %v7128_v0  ;;  %v7293_v0 = vld [vmem:[%s14477_s2 + $0x9e8] sm:$0xf0]  ;;  %v6892_v8 = vor.u32 %v9199_v60, %v6891_v59  ;;  %v11345_v59 = vpop.f32.mrf.mxu1  ;;  %v6396_v60 = vor.u32 %v9077_v48, %v6395_v46  ;;  %v6645_v48 = vld [vmem:[%s14477_s2 + $0x4e0] sm:$0xf0] }
  0xfb   : > { %v7296_v30 = vor.u32 %v9289_v20, %v7293_v0  ;;  %v9117_v20 = vld [vmem:[%s14477_s2 + $0x434] sm:$0xf0] }
  0xfc   : > { %2690 = vmatpush.bf16.msra.mxu3 %v6884_v35  ;;  %2570 = vmatpush.bf16.msra.mxu2 %v6468_v10  ;;  %v9239_v35 = vld [vmem:[%s14477_s2 + $0x804] sm:$0xf0]  ;;  %v6637_v10 = vld [vmem:[%s14477_s2 + $0x4d8] sm:$0xf0] }
  0xfd   : > { %2596 = vmatpush.bf16.msrb.mxu0 %v6472_v11  ;;  %v9209_v11 = vld [vmem:[%s14477_s2 + $0x71c] sm:$0xf]  ;;  %v6640_v18 = vor.u32 %v9127_v9, %v6637_v10  ;;  %v7059_v9 = vld [vmem:[%s14477_s2 + $0x7c0] sm:$0xf]  ;;  %v9240_v10 = vld [vmem:[%s14477_s2 + $0x80c] sm:$0xf0] }
  0xfe   : > { %2714 = vmatpush.bf16.msrb.mxu1 %v7048_v34  ;;  %v7051_v34 = vld [vmem:[%s14477_s2 + $0x7b8] sm:$0xf]  ;;  %v6976_v0 = vor.u32 %v9209_v11, %v6973_v12  ;;  %v6320_v12 = vor.u32 %v9047_v3, %v6317_v4  ;;  %v6565_v3 = vld [vmem:[%s14477_s2 + $0x440] sm:$0xf0] }
  0xff   : > { %v7052_v44 = vor.u32 %v9239_v35, %v7051_v34  ;;  %v9097_v35 = vld [vmem:[%s14477_s2 + $0x394] sm:$0xf0]  ;;  %v9190_v4 = vld [vmem:[%s14477_s2 + $0x684] sm:$0xf] }
 0x100   : > { %2691 = vmatpush.bf16.msra.mxu3 %v6804_v50  ;;  %2571 = vmatpush.bf16.msra.mxu2 %v6388_v23  ;;  %v6232_v50 = vor.u32 %v9026_v40, %v6229_v42  ;;  %v6557_v23 = vld [vmem:[%s14477_s2 + $0x438] sm:$0xf0]  ;;  %v6813_v40 = vld [vmem:[%s14477_s2 + $0x628] sm:$0xf0]  ;;  %v7219_v42 = vld [vmem:[%s14477_s2 + $0x900] sm:$0xf] }
 0x101   : > { %2597 = vmatpush.bf16.msrb.mxu0 %v6392_v24  ;;  %v9189_v24 = vld [vmem:[%s14477_s2 + $0x67c] sm:$0xf] }
 0x102   : > { %2715 = vmatpush.bf16.msrb.mxu1 %v6968_v49  ;;  %v6228_v49 = vor.u32 %v9036_v39, %v6227_v38  ;;  %v6896_v33 = vor.u32 %v9189_v24, %v6893_v25  ;;  %v7300_v38 = vor.u32 %v9300_v29, %v7299_v28  ;;  %v9169_v39 = vld [vmem:[%s14477_s2 + $0x5dc] sm:$0xf]  ;;  %v9007_v28 = vld [vmem:[%s14477_s2 + $0xcc] sm:$0xf] }
 0x103   : > { %v6816_v47 = vor.u32 %v9169_v39, %v6813_v40  ;;  %v6157_v29 = vld [vmem:[%s14477_s2 + $0x118] sm:$0xf0]  ;;  %v8997_v39 = vld [vmem:[%s14477_s2 + $0x74] sm:$0xf0]  ;;  %v8987_v40 = vld [vmem:[%s14477_s2 + $0x2c] sm:$0xf] }
 0x104   : > { %2692 = vmatpush.bf16.msra.mxu3 %v6724_v63  ;;  %2572 = vmatpush.bf16.msra.mxu2 %v6308_v36  ;;  %v6067_v63 = vld [vmem:[%s14477_s2 + $0x20] sm:$0xf]  ;;  %v9087_v36 = vld [vmem:[%s14477_s2 + $0x34c] sm:$0xf] }
 0x105   : > { %2598 = vmatpush.bf16.msrb.mxu0 %v6312_v37  ;;  %v6068_v15 = vor.u32 %v8996_v1, %v6067_v63  ;;  %v6477_v37 = vld [vmem:[%s14477_s2 + $0x398] sm:$0xf0]  ;;  %v9057_v1 = vld [vmem:[%s14477_s2 + $0x254] sm:$0xf0] }
 0x106   : > { %2716 = vmatpush.bf16.msrb.mxu1 %v6888_v62  ;;  %v6152_v62 = vor.u32 %v9006_v53, %v6149_v54  ;;  %v6480_v45 = vor.u32 %v9087_v36, %v6477_v37  ;;  %v6733_v53 = vld [vmem:[%s14477_s2 + $0x588] sm:$0xf0]  ;;  %v9290_v54 = vld [vmem:[%s14477_s2 + $0x9a4] sm:$0xf]  ;;  %v6160_v37 = vor.u32 %v9007_v28, %v6157_v29  ;;  %v6403_v28 = vld [vmem:[%s14477_s2 + $0x2b0] sm:$0xf] }
 0x107   : > { %2693 = vmatmul.bf16.vlgmr.msra.gmra.mxu3 %v9983_v2  ;;  %v6736_v63 = vor.u32 %v9149_v52, %v6733_v53  ;;  %v9180_v52 = vld [vmem:[%s14477_s2 + $0x62c] sm:$0xf0] }
 0x108   : > { %2737 = vmatpush.bf16.msrb.mxu3 %v7292_v5  ;;  %2573 = vmatpush.bf16.msra.mxu2 %v6228_v49  ;;  %v6635_v5 = vld [vmem:[%s14477_s2 + $0x488] sm:$0xf]  ;;  %v9067_v49 = vld [vmem:[%s14477_s2 + $0x2ac] sm:$0xf] }
 0x109   : > { %2599 = vmatpush.bf16.msrb.mxu0 %v6232_v50  ;;  %v6397_v50 = vld [vmem:[%s14477_s2 + $0x2f8] sm:$0xf0] }
 0x10a   : > { %2717 = vmatpush.bf16.msrb.mxu1 %v6808_v13  ;;  %v6811_v13 = vld [vmem:[%s14477_s2 + $0x5d8] sm:$0xf] }
 0x10b   : > { %v6812_v21 = vor.u32 %v9179_v14, %v6811_v13  ;;  %v6235_v13 = vld [vmem:[%s14477_s2 + $0x168] sm:$0xf]  ;;  %v9037_v14 = vld [vmem:[%s14477_s2 + $0x1b4] sm:$0xf0] }
 0x10c   : > { %2738 = vmatpush.bf16.msrb.mxu3 %v7212_v17  ;;  %2574 = vmatpush.bf16.msra.mxu2 %v6148_v61  ;;  %v6636_v17 = vor.u32 %v9137_v6, %v6635_v5  ;;  %v6400_v61 = vor.u32 %v9067_v49, %v6397_v50  ;;  %v7140_v6 = vor.u32 %v9260_v58, %v7139_v57  ;;  %v9210_v49 = vld [vmem:[%s14477_s2 + $0x724] sm:$0xf]  ;;  %v6981_v50 = vld [vmem:[%s14477_s2 + $0x770] sm:$0xf0] }
 0x10d   : > { %2600 = vmatpush.bf16.msrb.mxu0 %v6152_v62  ;;  %v6315_v62 = vld [vmem:[%s14477_s2 + $0x208] sm:$0xf]  ;;  %v6236_v24 = vor.u32 %v9037_v14, %v6235_v13  ;;  %v6483_v13 = vld [vmem:[%s14477_s2 + $0x350] sm:$0xf]  ;;  %v9098_v14 = vld [vmem:[%s14477_s2 + $0x39c] sm:$0xf0] }
 0x10e   : > { %2718 = vmatpush.bf16.msrb.mxu1 %v6728_v26  ;;  %v6731_v26 = vld [vmem:[%s14477_s2 + $0x538] sm:$0xf]  ;;  %v6316_v11 = vor.u32 %v9057_v1, %v6315_v62  ;;  %v6984_v62 = vor.u32 %v9210_v49, %v6981_v50  ;;  %v9108_v1 = vld [vmem:[%s14477_s2 + $0x3f4] sm:$0xf]  ;;  %v6325_v50 = vld [vmem:[%s14477_s2 + $0x260] sm:$0xf0] }
 0x10f   : > { %v6732_v34 = vor.u32 %v9159_v27, %v6731_v26  ;;  %v6155_v26 = vld [vmem:[%s14477_s2 + $0xc8] sm:$0xf]  ;;  %v9017_v27 = vld [vmem:[%s14477_s2 + $0x114] sm:$0xf0]  ;;  %v9048_v49 = vld [vmem:[%s14477_s2 + $0x214] sm:$0xf] }
 0x110   : > { %2739 = vmatpush.bf16.msrb.mxu3 %v7132_v31  ;;  %2575 = vmatpush.bf16.msra.mxu2 %v6068_v15  ;;  %v6560_v31 = vor.u32 %v9107_v22, %v6557_v23  ;;  %v9027_v15 = vld [vmem:[%s14477_s2 + $0x16c] sm:$0xf]  ;;  %v9220_v22 = vld [vmem:[%s14477_s2 + $0x76c] sm:$0xf0]  ;;  %v2410_v23 = vpop.f32.mrf.mxu1  ;;  %v6156_v36 = vor.u32 %v9017_v27, %v6155_v26 }
 0x111   : > { %2719 = vmatmul.bf16.vlgmr.msrb.gmra.mxu1 %v9983_v2  ;;  %2601 = vmatpush.bf16.msrb.mxu0 %v6072_v16  ;;  %v6237_v16 = vld [vmem:[%s14477_s2 + $0x1b8] sm:$0xf0]  ;;  %v7227_v23 = vld [vmem:[%s14477_s2 + $0x908] sm:$0xf] }
 0x112   : > { %2763 = vmatpush.bf16.msra.mxu1 %v7296_v30  ;;  %v6556_v30 = vor.u32 %v9117_v20, %v6555_v19  ;;  %v9250_v19 = vld [vmem:[%s14477_s2 + $0x864] sm:$0xf]  ;;  %v6240_v25 = vor.u32 %v9027_v15, %v6237_v16 }
 0x113   : > { %2576 = vmatmul.bf16.vlgmr.msra.gmra.mxu2 %v10671_v41 }
 0x114   : > { %2740 = vmatpush.bf16.msrb.mxu3 %v7052_v44  ;;  %2620 = vmatpush.bf16.msrb.mxu2 %v6636_v17  ;;  %v6476_v44 = vor.u32 %v9097_v35, %v6475_v32  ;;  %v9230_v32 = vld [vmem:[%s14477_s2 + $0x7c4] sm:$0xf]  ;;  %v9200_v35 = vld [vmem:[%s14477_s2 + $0x6cc] sm:$0xf0] }
 0x115   : > { %2646 = vmatpush.bf16.msra.mxu0 %v6640_v18  ;;  %v7060_v18 = vor.u32 %v9240_v10, %v7059_v9  ;;  %v9301_v9 = vld [vmem:[%s14477_s2 + $0x9f4] sm:$0xf0] }
 0x116   : > { %2764 = vmatpush.bf16.msra.mxu1 %v7216_v43  ;;  %2602 = vmatmul.bf16.vlgmr.msrb.gmra.mxu0 %v10671_v41  ;;  %v9280_v43 = vld [vmem:[%s14477_s2 + $0x94c] sm:$0xf0] }
 0x117   : > { %v7220_v51 = vor.u32 %v9280_v43, %v7219_v42  ;;  %v6077_v42 = vld [vmem:[%s14477_s2 + $0x78] sm:$0xf0]  ;;  %v6643_v43 = vld [vmem:[%s14477_s2 + $0x490] sm:$0xf] }
 0x118   : > { %2741 = vmatpush.bf16.msrb.mxu3 %v6972_v56  ;;  %2621 = vmatpush.bf16.msrb.mxu2 %v6556_v30  ;;  %v7301_v56 = vld [vmem:[%s14477_s2 + $0x9f0] sm:$0xf0]  ;;  %v11457_v53 = vpop.f32.mrf.mxu1 }
 0x119   : > { %2647 = vmatpush.bf16.msra.mxu0 %v6560_v31  ;;  %v7304_v5 = vor.u32 %v9290_v54, %v7301_v56  ;;  %v6080_v56 = vor.u32 %v8987_v40, %v6077_v42 }
 0x11a   : > { %2765 = vmatpush.bf16.msra.mxu1 %v7136_v55  ;;  %v11334_v55 = vpop.f32.mrf.mxu3 }
 0x11c   : > { %2742 = vmatpush.bf16.msrb.mxu3 %v6892_v8  ;;  %2622 = vmatpush.bf16.msrb.mxu2 %v6476_v44  ;;  %v7221_v8 = vld [vmem:[%s14477_s2 + $0x950] sm:$0xf0]  ;;  %v9138_v44 = vld [vmem:[%s14477_s2 + $0x4dc] sm:$0xf0] }
 0x11d   : > { %2648 = vmatpush.bf16.msra.mxu0 %v6480_v45  ;;  %v6644_v57 = vor.u32 %v9138_v44, %v6643_v43 }
 0x11e   : > { %2766 = vmatpush.bf16.msra.mxu1 %v7056_v7  ;;  %v9270_v7 = vld [vmem:[%s14477_s2 + $0x904] sm:$0xf] }
 0x11f   : > { %v7224_v17 = vor.u32 %v9270_v7, %v7221_v8  ;;  %v9160_v7 = vld [vmem:[%s14477_s2 + $0x58c] sm:$0xf0]  ;;  %v7307_v8 = vld [vmem:[%s14477_s2 + $0x9a8] sm:$0xf] }
 0x120   : > { %2743 = vmatpush.bf16.msrb.mxu3 %v6812_v21  ;;  %2623 = vmatpush.bf16.msrb.mxu2 %v6396_v60  ;;  %v6979_v21 = vld [vmem:[%s14477_s2 + $0x720] sm:$0xf]  ;;  %v6563_v60 = vld [vmem:[%s14477_s2 + $0x3f0] sm:$0xf] }
 0x121   : > { %2649 = vmatpush.bf16.msra.mxu0 %v6400_v61  ;;  %v6980_v31 = vor.u32 %v9220_v22, %v6979_v21  ;;  %v9118_v61 = vld [vmem:[%s14477_s2 + $0x43c] sm:$0xf0]  ;;  %v6821_v21 = vld [vmem:[%s14477_s2 + $0x630] sm:$0xf0]  ;;  %v2462_v22 = vpop.f32.mrf.mxu1 }
 0x122   : > { %2767 = vmatpush.bf16.msra.mxu1 %v6976_v0  ;;  %v2384_v20 = vpop.f32.mrf.mxu3  ;;  %v7141_v0 = vld [vmem:[%s14477_s2 + $0x8b0] sm:$0xf0] }
 0x123   : > { %v7144_v30 = vor.u32 %v9250_v19, %v7141_v0  ;;  %v11506_v19 = vld [vmem:[%s14478_s3] sm:$0xff]  ;;  %v7308_v20 = vor.u32 %v9301_v9, %v7307_v8 }
 0x124   : > { %2744 = vmatpush.bf16.msrb.mxu3 %v6732_v34  ;;  %2624 = vmatpush.bf16.msrb.mxu2 %v6316_v11  ;;  %v6899_v34 = vld [vmem:[%s14477_s2 + $0x680] sm:$0xf]  ;;  %v6564_v11 = vor.u32 %v9118_v61, %v6563_v60  ;;  %v9170_v0 = vld [vmem:[%s14477_s2 + $0x5e4] sm:$0xf]  ;;  %v721_v27 = vperm.slane %v11506_v19, 1 }
 0x125   : > { %2650 = vmatpush.bf16.msra.mxu0 %v6320_v12  ;;  %v6900_v46 = vor.u32 %v9200_v35, %v6899_v34  ;;  %v6568_v12 = vor.u32 %v9108_v1, %v6565_v3  ;;  %v6824_v29 = vor.u32 %v9170_v0, %v6821_v21  ;;  %v9150_v34 = vld [vmem:[%s14477_s2 + $0x544] sm:$0xf]  ;;  %v6741_v35 = vld [vmem:[%s14477_s2 + $0x590] sm:$0xf0]  ;;  %v9241_v60 = vld [vmem:[%s14477_s2 + $0x814] sm:$0xf0] }
 0x126   : > { %2768 = vmatpush.bf16.msra.mxu1 %v6896_v33  ;;  %v7061_v33 = vld [vmem:[%s14477_s2 + $0x810] sm:$0xf0]  ;;  %v6243_v1 = vld [vmem:[%s14477_s2 + $0x170] sm:$0xf]  ;;  %v9018_v0 = vld [vmem:[%s14477_s2 + $0x11c] sm:$0xf0] }
 0x127   : > { %2745 = vmatmul.bf16.vlgmr.msrb.gmra.mxu3 %v9983_v2  ;;  %v7064_v45 = vor.u32 %v9230_v32, %v7061_v33  ;;  %v6405_v32 = vld [vmem:[%s14477_s2 + $0x300] sm:$0xf0]  ;;  %v9008_v21 = vld [vmem:[%s14477_s2 + $0xd4] sm:$0xf] }
 0x128   : > { %2789 = vmatpush.bf16.msra.mxu3 %v7300_v38  ;;  %2625 = vmatpush.bf16.msrb.mxu2 %v6236_v24  ;;  %v6075_v38 = vld [vmem:[%s14477_s2 + $0x28] sm:$0xf]  ;;  %v9281_v24 = vld [vmem:[%s14477_s2 + $0x954] sm:$0xf0] }
 0x129   : > { %2651 = vmatpush.bf16.msra.mxu0 %v6240_v25  ;;  %v6076_v54 = vor.u32 %v8997_v39, %v6075_v38  ;;  %v6484_v25 = vor.u32 %v9098_v14, %v6483_v13  ;;  %v7228_v33 = vor.u32 %v9281_v24, %v7227_v23  ;;  %v7147_v38 = vld [vmem:[%s14477_s2 + $0x868] sm:$0xf]  ;;  %v9261_v39 = vld [vmem:[%s14477_s2 + $0x8b4] sm:$0xf0]  ;;  %v11579_v61 = vpop.f32.mrf.mxu1  ;;  %v6165_v24 = vld [vmem:[%s14477_s2 + $0x120] sm:$0xf0] }
 0x12a   : > { %2769 = vmatpush.bf16.msra.mxu1 %v6816_v47  ;;  %v9128_v47 = vld [vmem:[%s14477_s2 + $0x494] sm:$0xf]  ;;  %v11489_v10 = vpop.f32.mrf.mxu3  ;;  %v6987_v13 = vld [vmem:[%s14477_s2 + $0x728] sm:$0xf]  ;;  %v9221_v14 = vld [vmem:[%s14477_s2 + $0x774] sm:$0xf0] }
 0x12b   : > { %v6648_v58 = vor.u32 %v9128_v47, %v6645_v48  ;;  %v6744_v47 = vor.u32 %v9150_v34, %v6741_v35  ;;  %v9058_v48 = vld [vmem:[%s14477_s2 + $0x25c] sm:$0xf0]  ;;  %v6168_v34 = vor.u32 %v9008_v21, %v6165_v24  ;;  %v6083_v35 = vld [vmem:[%s14477_s2 + $0x30] sm:$0xf]  ;;  %v9099_v24 = vld [vmem:[%s14477_s2 + $0x3a4] sm:$0xf0] }
 0x12c   : > { %2790 = vmatpush.bf16.msra.mxu3 %v7220_v51  ;;  %v6819_v51 = vld [vmem:[%s14477_s2 + $0x5e0] sm:$0xf]  ;;  %2626 = vmatpush.bf16.msrb.mxu2 %v6156_v36  ;;  %v9291_v36 = vld [vmem:[%s14477_s2 + $0x9ac] sm:$0xf] }
 0x12d   : > { %2652 = vmatpush.bf16.msra.mxu0 %v6160_v37  ;;  %v7309_v37 = vld [vmem:[%s14477_s2 + $0x9f8] sm:$0xf0] }
 0x12e   : > { %2770 = vmatpush.bf16.msra.mxu1 %v6736_v63  ;;  %v6820_v63 = vor.u32 %v9180_v52, %v6819_v51  ;;  %v7312_v51 = vor.u32 %v9291_v36, %v7309_v37  ;;  %v7148_v52 = vor.u32 %v9261_v39, %v7147_v38  ;;  %v8998_v36 = vld [vmem:[%s14477_s2 + $0x7c] sm:$0xf0]  ;;  %v8988_v37 = vld [vmem:[%s14477_s2 + $0x34] sm:$0xf] }
 0x130   : > { %2791 = vmatpush.bf16.msra.mxu3 %v7140_v6  ;;  %v6739_v6 = vld [vmem:[%s14477_s2 + $0x540] sm:$0xf]  ;;  %2627 = vmatpush.bf16.msrb.mxu2 %v6076_v54  ;;  %v2395_v42 = vpop.f32.mrf.mxu0  ;;  %v720_v54 = vperm.slane %v11506_v19, 0 }
 0x131   : > { %2771 = vmatmul.bf16.vlgmr.msra.gmra.mxu1 %v9983_v2  ;;  %2653 = vmatpush.bf16.msra.mxu0 %v6080_v56  ;;  %v6740_v16 = vor.u32 %v9160_v7, %v6739_v6  ;;  %v9271_v56 = vld [vmem:[%s14477_s2 + $0x90c] sm:$0xf]  ;;  %v6245_v6 = vld [vmem:[%s14477_s2 + $0x1c0] sm:$0xf0] }
 0x132   : > { %2815 = vmatpush.bf16.msrb.mxu1 %v7304_v5  ;;  %v6901_v5 = vld [vmem:[%s14477_s2 + $0x6d0] sm:$0xf0]  ;;  %v2436_v40 = vpop.f32.mrf.mxu3 }
 0x133   : > { %v6904_v15 = vor.u32 %v9190_v4, %v6901_v5  ;;  %2628 = vmatmul.bf16.vlgmr.msrb.gmra.mxu2 %v10671_v41  ;;  %v9038_v4 = vld [vmem:[%s14477_s2 + $0x1bc] sm:$0xf0]  ;;  %v9028_v5 = vld [vmem:[%s14477_s2 + $0x174] sm:$0xf]  ;;  %v6085_v40 = vld [vmem:[%s14477_s2 + $0x80] sm:$0xf0] }
 0x134   : > { %2792 = vmatpush.bf16.msra.mxu3 %v7060_v18  ;;  %2672 = vmatpush.bf16.msra.mxu2 %v6644_v57  ;;  %v6485_v18 = vld [vmem:[%s14477_s2 + $0x3a0] sm:$0xf0]  ;;  %v7229_v57 = vld [vmem:[%s14477_s2 + $0x958] sm:$0xf0] }
 0x135   : > { %2698 = vmatpush.bf16.msrb.mxu0 %v6648_v58  ;;  %v7067_v58 = vld [vmem:[%s14477_s2 + $0x7c8] sm:$0xf]  ;;  %v7232_v8 = vor.u32 %v9271_v56, %v7229_v57 }
 0x136   : > { %2816 = vmatpush.bf16.msrb.mxu1 %v7224_v17  ;;  %v9088_v17 = vld [vmem:[%s14477_s2 + $0x354] sm:$0xf]  ;;  %2654 = vmatmul.bf16.vlgmr.msra.gmra.mxu0 %v10671_v41  ;;  %v2369_v7 = vpop.f32.mrf.mxu2  ;;  %v7068_v9 = vor.u32 %v9241_v60, %v7067_v58  ;;  %v6084_v58 = vor.u32 %v8998_v36, %v6083_v35  ;;  %v6088_v60 = vor.u32 %v8988_v37, %v6085_v40 }
 0x137   : > { %v6488_v26 = vor.u32 %v9088_v17, %v6485_v18  ;;  %v6244_v17 = vor.u32 %v9038_v4, %v6243_v1  ;;  %v6248_v18 = vor.u32 %v9028_v5, %v6245_v6  ;;  %v6571_v4 = vld [vmem:[%s14477_s2 + $0x3f8] sm:$0xf]  ;;  %v9119_v5 = vld [vmem:[%s14477_s2 + $0x444] sm:$0xf0] }
 0x138   : > { %2793 = vmatpush.bf16.msra.mxu3 %v6980_v31  ;;  %2673 = vmatpush.bf16.msra.mxu2 %v6564_v11  ;;  %v9068_v31 = vld [vmem:[%s14477_s2 + $0x2b4] sm:$0xf]  ;;  %v2370_v11 = vadd.f32 %v2369_v7, %v720_v54  ;;  %v9181_v54 = vld [vmem:[%s14477_s2 + $0x634] sm:$0xf0] }
 0x139   : > { %2699 = vmatpush.bf16.msrb.mxu0 %v6568_v12  ;;  %v6408_v44 = vor.u32 %v9068_v31, %v6405_v32  ;;  %v7149_v12 = vld [vmem:[%s14477_s2 + $0x8b8] sm:$0xf0]  ;;  %v9201_v31 = vld [vmem:[%s14477_s2 + $0x6d4] sm:$0xf0]  ;;  %v2514_v32 = vpop.f32.mrf.mxu1 }
 0x13a   : > { %2817 = vmatpush.bf16.msrb.mxu1 %v7144_v30  ;;  %v9078_v30 = vld [vmem:[%s14477_s2 + $0x2fc] sm:$0xf0]  ;;  %v2383_v23 = vadd.f32 %v11334_v55, %v2370_v11  ;;  %v6907_v55 = vld [vmem:[%s14477_s2 + $0x688] sm:$0xf]  ;;  %v6909_v11 = vld [vmem:[%s14477_s2 + $0x6d8] sm:$0xf0] }
 0x13b   : > { %v6404_v43 = vor.u32 %v9078_v30, %v6403_v28  ;;  %v7069_v28 = vld [vmem:[%s14477_s2 + $0x818] sm:$0xf0]  ;;  %v723_v30 = vperm.slane %v11506_v19, 3  ;;  %v6411_v32 = vld [vmem:[%s14477_s2 + $0x2b8] sm:$0xf] }
 0x13c   : > { %2794 = vmatpush.bf16.msra.mxu3 %v6900_v46  ;;  %2674 = vmatpush.bf16.msra.mxu2 %v6484_v25  ;;  %v2396_v46 = vadd.f32 %v2395_v42, %v721_v27  ;;  %v9231_v25 = vld [vmem:[%s14477_s2 + $0x7cc] sm:$0xf]  ;;  %v6988_v27 = vor.u32 %v9221_v14, %v6987_v13  ;;  %vm2880_vm3 = vcmp.gt.f32.partialorder %v2383_v23, 0.0  ;;  %v6651_v42 = vld [vmem:[%s14477_s2 + $0x498] sm:$0xf] }
 0x13d   : > { %2700 = vmatpush.bf16.msrb.mxu0 %v6488_v26  ;;  %v9161_v13 = vld [vmem:[%s14477_s2 + $0x594] sm:$0xf0]  ;;  %v9316_v14 = vld [vmem:[%s14481_s6 + $0x74] sm:$0xf] }
 0x13e   : > { %2818 = vmatpush.bf16.msrb.mxu1 %v7064_v45  ;;  %v6323_v45 = vld [vmem:[%s14477_s2 + $0x210] sm:$0xf]  ;;  %v2409_v3 = vadd.f32 %v11345_v59, %v2396_v46  ;;  %v9251_v59 = vld [vmem:[%s14477_s2 + $0x86c] sm:$0xf]  ;;  %v7072_v46 = vor.u32 %v9231_v25, %v7069_v28 }
 0x13f   : > { %v7152_v26 = vor.u32 %v9251_v59, %v7149_v12  ;;  %v9191_v59 = vld [vmem:[%s14477_s2 + $0x68c] sm:$0xf]  ;;  %v6747_v12 = vld [vmem:[%s14477_s2 + $0x548] sm:$0xf] }
 0x140   : > { %2795 = vmatpush.bf16.msra.mxu3 %v6820_v63  ;;  %2675 = vmatpush.bf16.msra.mxu2 %v6404_v43  ;;  %v6328_v63 = vor.u32 %v9048_v49, %v6325_v50  ;;  %v2901_v22 = vmul.f32 0.01, %v2409_v3  ;;  %vm2881_vm2 = vcmp.gt.f32.partialorder %v2409_v3, 0.0  ;;  %v9139_v43 = vld [vmem:[%s14477_s2 + $0x4e4] sm:$0xf0] }
 0x141   : > { %2701 = vmatpush.bf16.msrb.mxu0 %v6408_v44  ;;  %v6653_v49 = vld [vmem:[%s14477_s2 + $0x4e8] sm:$0xf0] }
 0x142   : > { %2819 = vmatpush.bf16.msrb.mxu1 %v6984_v62  ;;  %v6324_v62 = vor.u32 %v9058_v48, %v6323_v45  ;;  %v2921_v38 = vsel %vm2881_vm2, %v2409_v3, %v2901_v22  ;;  %v2371_v45 = vpop.f32.mrf.mxu2  ;;  %v9129_v48 = vld [vmem:[%s14477_s2 + $0x49c] sm:$0xf]  ;;  %v9211_v50 = vld [vmem:[%s14477_s2 + $0x72c] sm:$0xf]  ;;  %v722_v3 = vperm.slane %v11506_v19, 2  ;;  %v6912_v22 = vor.u32 %v9191_v59, %v6909_v11 }
 0x143   : > { %v6656_v1 = vor.u32 %v9129_v48, %v6653_v49  ;;  %v6493_v25 = vld [vmem:[%s14477_s2 + $0x3a8] sm:$0xf0]  ;;  %v9349_v48 = vld [vmem:[%s14479_s4 + $0xf4] sm:$0xf0]  ;;  %v9312_v49 = vld [vmem:[%s14481_s6 + $0x54] sm:$0xf] }
 0x144   : > { %2796 = vmatpush.bf16.msra.mxu3 %v6740_v16  ;;  %2676 = vmatpush.bf16.msra.mxu2 %v6324_v62  ;;  %v2397_v16 = vpop.f32.mrf.mxu0  ;;  %v9171_v28 = vld [vmem:[%s14477_s2 + $0x5ec] sm:$0xf]  ;;  %v9310_v59 = vld [vmem:[%s14481_s6 + $0x44] sm:$0xf] }
 0x145   : > { %2702 = vmatpush.bf16.msrb.mxu0 %v6328_v63  ;;  %v6652_v63 = vor.u32 %v9139_v43, %v6651_v42  ;;  %v7373_v16 = vld [vmem:[%s14481_s6 + $0x78] sm:$0xf0]  ;;  %v7349_v11 = vld [vmem:[%s14481_s6 + $0x48] sm:$0xf0] }
 0x146   : > { %2820 = vmatpush.bf16.msrb.mxu1 %v6904_v15  ;;  %v11606_v15 = vpop.f32.mrf.mxu3  ;;  %v6749_v42 = vld [vmem:[%s14477_s2 + $0x598] sm:$0xf0] }
 0x147   : > { %2797 = vmatmul.bf16.vlgmr.msra.gmra.mxu3 %v9983_v2 }
 0x148   : > { %2841 = vmatpush.bf16.msrb.mxu3 %v7308_v20  ;;  %v6163_v20 = vld [vmem:[%s14477_s2 + $0xd0] sm:$0xf]  ;;  %2677 = vmatpush.bf16.msra.mxu2 %v6244_v17 }
 0x149   : > { %2703 = vmatpush.bf16.msrb.mxu0 %v6248_v18  ;;  %v6572_v18 = vor.u32 %v9119_v5, %v6571_v4 }
 0x14a   : > { %2821 = vmatpush.bf16.msrb.mxu1 %v6824_v29  ;;  %v2900_v29 = vmul.f32 0.01, %v2383_v23  ;;  %v2421_v21 = vpop.f32.mrf.mxu2 }
 0x14c   : > { %2842 = vmatpush.bf16.msrb.mxu3 %v7228_v33  ;;  %v6164_v33 = vor.u32 %v9018_v0, %v6163_v20  ;;  %v2920_v39 = vsel %vm2880_vm3, %v2383_v23, %v2900_v29  ;;  %v2447_v57 = vpop.f32.mrf.mxu0  ;;  %v6491_v0 = vld [vmem:[%s14477_s2 + $0x358] sm:$0xf]  ;;  %v6748_v23 = vor.u32 %v9161_v13, %v6747_v12  ;;  %v9314_v29 = vld [vmem:[%s14481_s6 + $0x64] sm:$0xf] }
 0x14d   : > { %v11654_v44 = vpack.c.bf16 %v2921_v38, %v2920_v39  ;;  %2704 = vmatpush.bf16.msrb.mxu0 %v6168_v34  ;;  %v2448_v62 = vadd.f32 %v2447_v57, %v723_v30  ;;  %v6492_v36 = vor.u32 %v9099_v24, %v6491_v0  ;;  %v9069_v38 = vld [vmem:[%s14477_s2 + $0x2bc] sm:$0xf]  ;;  %v6413_v39 = vld [vmem:[%s14477_s2 + $0x308] sm:$0xf0]  ;;  %v6331_v57 = vld [vmem:[%s14477_s2 + $0x218] sm:$0xf] }
 0x14e   : > { %2822 = vmatpush.bf16.msrb.mxu1 %v6744_v47  ;;  %v6908_v47 = vor.u32 %v9201_v31, %v6907_v55  ;;  %v2488_v56 = vpop.f32.mrf.mxu3  ;;  %2678 = vmatpush.bf16.msra.mxu2 %v6164_v33  ;;  %v6829_v55 = vld [vmem:[%s14477_s2 + $0x638] sm:$0xf0]  ;;  %v7365_v31 = vld [vmem:[%s14481_s6 + $0x68] sm:$0xf0]  ;;  %v9079_v33 = vld [vmem:[%s14477_s2 + $0x304] sm:$0xf0] }
 0x14f   : > { %v2461_v17 = vadd.f32 %v11457_v53, %v2448_v62  ;;  %v9089_v53 = vld [vmem:[%s14477_s2 + $0x35c] sm:$0xf]  ;;  %v6832_v40 = vor.u32 %v9171_v28, %v6829_v55  ;;  %v7368_v45 = vor.u32 %v9314_v29, %v7365_v31  ;;  %v6416_v56 = vor.u32 %v9069_v38, %v6413_v39  ;;  %v7483_v24 = vld [vmem:[%s14479_s4 + $0xd0] sm:$0xf]  ;;  %v6171_v55 = vld [vmem:[%s14477_s2 + $0xd8] sm:$0xf] }
 0x150   : > { %2843 = vmatpush.bf16.msrb.mxu3 %v7148_v52  ;;  %v6827_v52 = vld [vmem:[%s14477_s2 + $0x5e8] sm:$0xf]  ;;  %v6496_v37 = vor.u32 %v9089_v53, %v6493_v25  ;;  %v9345_v53 = vld [vmem:[%s14479_s4 + $0xd4] sm:$0xf0]  ;;  %v9308_v25 = vld [vmem:[%s14481_s6 + $0x34] sm:$0xf] }
 0x151   : > { %2823 = vmatmul.bf16.vlgmr.msrb.gmra.mxu1 %v9983_v2  ;;  %v6828_v7 = vor.u32 %v9181_v54, %v6827_v52  ;;  %2705 = vmatpush.bf16.msrb.mxu0 %v6088_v60  ;;  %v2903_v34 = vmul.f32 0.01, %v2461_v17  ;;  %vm2883_vm4 = vcmp.gt.f32.partialorder %v2461_v17, 0.0  ;;  %v725_v54 = vperm.slane %v11506_v19, 5  ;;  %v9019_v29 = vld [vmem:[%s14477_s2 + $0x124] sm:$0xf0] }
 0x152   : > { %2867 = vmatpush.bf16.msra.mxu1 %v7312_v51  ;;  %v6989_v51 = vld [vmem:[%s14477_s2 + $0x778] sm:$0xf0]  ;;  %2679 = vmatpush.bf16.msra.mxu2 %v6084_v58  ;;  %v2423_v60 = vpop.f32.mrf.mxu2  ;;  %v9306_v38 = vld [vmem:[%s14481_s6 + $0x24] sm:$0xf]  ;;  %v7333_v39 = vld [vmem:[%s14481_s6 + $0x28] sm:$0xf0] }
 0x153   : > { %v6992_v6 = vor.u32 %v9211_v50, %v6989_v51  ;;  %v7357_v50 = vld [vmem:[%s14481_s6 + $0x58] sm:$0xf0]  ;;  %v2923_v51 = vsel %vm2883_vm4, %v2461_v17, %v2903_v34  ;;  %v9039_v17 = vld [vmem:[%s14477_s2 + $0x1c4] sm:$0xf0]  ;;  %v7467_v60 = vld [vmem:[%s14479_s4 + $0xb0] sm:$0xf] }
 0x154   : > { %2844 = vmatpush.bf16.msrb.mxu3 %v7068_v9  ;;  %v6573_v9 = vld [vmem:[%s14477_s2 + $0x448] sm:$0xf0]  ;;  %2706 = vmatmul.bf16.vlgmr.msrb.gmra.mxu0 %v10671_v41  ;;  %v2449_v30 = vpop.f32.mrf.mxu0  ;;  %v7360_v5 = vor.u32 %v9312_v49, %v7357_v50  ;;  %v9343_v34 = vld [vmem:[%s14479_s4 + $0xc4] sm:$0xf0]  ;;  %v6659_v50 = vld [vmem:[%s14477_s2 + $0x4a0] sm:$0xf] }
 0x155   : > { %2750 = vmatpush.bf16.msra.mxu0 %v6656_v1  ;;  %2680 = vmatmul.bf16.vlgmr.msra.gmra.mxu2 %v10671_v41  ;;  %v9049_v1 = vld [vmem:[%s14477_s2 + $0x21c] sm:$0xf] }
 0x156   : > { %2868 = vmatpush.bf16.msra.mxu1 %v7232_v8  ;;  %v9109_v8 = vld [vmem:[%s14477_s2 + $0x3fc] sm:$0xf]  ;;  %2724 = vmatpush.bf16.msrb.mxu2 %v6652_v63  ;;  %v9059_v63 = vld [vmem:[%s14477_s2 + $0x264] sm:$0xf0] }
 0x157   : > { %v6576_v20 = vor.u32 %v9109_v8, %v6573_v9  ;;  %v9347_v9 = vld [vmem:[%s14479_s4 + $0xe4] sm:$0xf0]  ;;  %v6332_v13 = vor.u32 %v9059_v63, %v6331_v57  ;;  %v9009_v30 = vld [vmem:[%s14477_s2 + $0xdc] sm:$0xf]  ;;  %v7336_v57 = vor.u32 %v9306_v38, %v7333_v39  ;;  %v9341_v63 = vld [vmem:[%s14479_s4 + $0xb4] sm:$0xf0] }
 0x158   : > { %2845 = vmatpush.bf16.msrb.mxu3 %v6988_v27  ;;  %v7376_v27 = vor.u32 %v9316_v14, %v7373_v16  ;;  %v6251_v16 = vld [vmem:[%s14477_s2 + $0x178] sm:$0xf]  ;;  %v6419_v39 = vld [vmem:[%s14477_s2 + $0x2c0] sm:$0xf] }
 0x159   : > { %2751 = vmatpush.bf16.msra.mxu0 %v6576_v20  ;;  %v6253_v20 = vld [vmem:[%s14477_s2 + $0x1c8] sm:$0xf0] }
 0x15a   : > { %2869 = vmatpush.bf16.msra.mxu1 %v7152_v26  ;;  %v2422_v26 = vadd.f32 %v2421_v21, %v722_v3  ;;  %2725 = vmatpush.bf16.msrb.mxu2 %v6572_v18  ;;  %v6333_v3 = vld [vmem:[%s14477_s2 + $0x268] sm:$0xf0]  ;;  %v9029_v18 = vld [vmem:[%s14477_s2 + $0x17c] sm:$0xf]  ;;  %v2473_v31 = vpop.f32.mrf.mxu2 }
 0x15b   : > { %v6336_v14 = vor.u32 %v9049_v1, %v6333_v3  ;;  %v6256_v28 = vor.u32 %v9029_v18, %v6253_v20  ;;  %v9304_v1 = vld [vmem:[%s14481_s6 + $0x14] sm:$0xf]  ;;  %v7325_v3 = vld [vmem:[%s14481_s6 + $0x18] sm:$0xf0]  ;;  %v9110_v18 = vld [vmem:[%s14477_s2 + $0x404] sm:$0xf] }
 0x15c   : > { %2846 = vmatpush.bf16.msrb.mxu3 %v6908_v47  ;;  %v2435_v35 = vadd.f32 %v11489_v10, %v2422_v26  ;;  %v9151_v10 = vld [vmem:[%s14477_s2 + $0x54c] sm:$0xf]  ;;  %v6412_v47 = vor.u32 %v9079_v33, %v6411_v32  ;;  %v2499_v8 = vpop.f32.mrf.mxu0  ;;  %v11819_v26 = vpop.f32.mrf.mxu3  ;;  %v7475_v33 = vld [vmem:[%s14479_s4 + $0xc0] sm:$0xf]  ;;  %v6581_v20 = vld [vmem:[%s14477_s2 + $0x450] sm:$0xf0] }
 0x15d   : > { %2752 = vmatpush.bf16.msra.mxu0 %v6496_v37  ;;  %v6752_v62 = vor.u32 %v9151_v10, %v6749_v42  ;;  %v2500_v12 = vadd.f32 %v2499_v8, %v725_v54  ;;  %v6173_v32 = vld [vmem:[%s14477_s2 + $0x128] sm:$0xf0] }
 0x15e   : > { %2870 = vmatpush.bf16.msra.mxu1 %v7072_v46  ;;  %vm2882_vm5 = vcmp.gt.f32.partialorder %v2435_v35, 0.0  ;;  %v2902_v43 = vmul.f32 0.01, %v2435_v35  ;;  %v7499_v46 = vld [vmem:[%s14479_s4 + $0xf0] sm:$0xf]  ;;  %2726 = vmatpush.bf16.msrb.mxu2 %v6492_v36  ;;  %v7484_v36 = vor.u32 %v9345_v53, %v7483_v24  ;;  %v6176_v49 = vor.u32 %v9009_v30, %v6173_v32 }
 0x15f   : > { %v7500_v4 = vor.u32 %v9349_v48, %v7499_v46  ;;  %v2513_v0 = vadd.f32 %v11579_v61, %v2500_v12  ;;  %v7341_v61 = vld [vmem:[%s14481_s6 + $0x38] sm:$0xf0]  ;;  %v6172_v48 = vor.u32 %v9019_v29, %v6171_v55  ;;  %v7627_v24 = vld [vmem:[%s14479_s4 + $0x1f0] sm:$0xf]  ;;  %v9381_v53 = vld [vmem:[%s14479_s4 + $0x1f4] sm:$0xf0] }
 0x160   : > { %2847 = vmatpush.bf16.msrb.mxu3 %v6828_v7  ;;  %v2922_v52 = vsel %vm2882_vm5, %v2435_v35, %v2902_v43  ;;  %v11782_v7 = vpop.f32.mrf.mxu1  ;;  %v7344_v37 = vor.u32 %v9308_v25, %v7341_v61  ;;  %v8989_v43 = vld [vmem:[%s14477_s2 + $0x3c] sm:$0xf]  ;;  %v6584_v61 = vor.u32 %v9110_v18, %v6581_v20  ;;  %v9100_v29 = vld [vmem:[%s14477_s2 + $0x3ac] sm:$0xf0]  ;;  %v9090_v30 = vld [vmem:[%s14477_s2 + $0x364] sm:$0xf]  ;;  %v7628_v32 = vor.u32 %v9381_v53, %v7627_v24 }
 0x161   : > { %v11767_v58 = vpack.c.bf16 %v2923_v51, %v2922_v52  ;;  %2753 = vmatpush.bf16.msra.mxu0 %v6416_v56  ;;  %v2905_v46 = vmul.f32 0.01, %v2513_v0  ;;  %v9140_v51 = vld [vmem:[%s14477_s2 + $0x4ec] sm:$0xf0]  ;;  %vm2885_vm6 = vcmp.gt.f32.partialorder %v2513_v0, 0.0  ;;  %v7476_v56 = vor.u32 %v9343_v34, %v7475_v33 }
 0x162   : > { %2871 = vmatpush.bf16.msra.mxu1 %v6992_v6  ;;  %v7491_v6 = vld [vmem:[%s14479_s4 + $0xe0] sm:$0xf]  ;;  %2727 = vmatpush.bf16.msrb.mxu2 %v6412_v47  ;;  %v9130_v52 = vld [vmem:[%s14477_s2 + $0x4a4] sm:$0xf]  ;;  %v7451_v33 = vld [vmem:[%s14479_s4 + $0x90] sm:$0xf] }
 0x163   : > { %v7492_v21 = vor.u32 %v9347_v9, %v7491_v6  ;;  %v9337_v34 = vld [vmem:[%s14479_s4 + $0x94] sm:$0xf0]  ;;  %v6259_v18 = vld [vmem:[%s14477_s2 + $0x180] sm:$0xf]  ;;  %v9040_v20 = vld [vmem:[%s14477_s2 + $0x1cc] sm:$0xf0] }
 0x164   : > { %2848 = vmatpush.bf16.msrb.mxu3 %v6748_v23  ;;  %v7352_v23 = vor.u32 %v9310_v59, %v7349_v11  ;;  %v2501_v42 = vpop.f32.mrf.mxu0  ;;  %v2475_v59 = vpop.f32.mrf.mxu2  ;;  %v6660_v11 = vor.u32 %v9140_v51, %v6659_v50  ;;  %v9377_v50 = vld [vmem:[%s14479_s4 + $0x1d4] sm:$0xf0]  ;;  %v727_v51 = vperm.slane %v11506_v19, 7  ;;  %v6261_v24 = vld [vmem:[%s14477_s2 + $0x1d0] sm:$0xf0] }
 0x165   : > { %2754 = vmatpush.bf16.msra.mxu0 %v6336_v14  ;;  %v9120_v14 = vld [vmem:[%s14477_s2 + $0x44c] sm:$0xf0]  ;;  %v9070_v42 = vld [vmem:[%s14477_s2 + $0x2c4] sm:$0xf]  ;;  %v9375_v59 = vld [vmem:[%s14479_s4 + $0x1c4] sm:$0xf0] }
 0x166   : > { %2872 = vmatpush.bf16.msra.mxu1 %v6912_v22  ;;  %v724_v22 = vperm.slane %v11506_v19, 4  ;;  %2728 = vmatpush.bf16.msrb.mxu2 %v6332_v13  ;;  %v6579_v13 = vld [vmem:[%s14477_s2 + $0x400] sm:$0xf]  ;;  %v9344_v53 = vld [vmem:[%s14479_s4 + $0xd4] sm:$0xf] }
 0x167   : > { %2849 = vmatmul.bf16.vlgmr.msrb.gmra.mxu3 %v9983_v2  ;;  %v6580_v25 = vor.u32 %v9120_v14, %v6579_v13 }
 0x168   : > { %3074 = vmatpush.bf16.msra.mxu3 %v7376_v27  ;;  %v6252_v27 = vor.u32 %v9039_v17, %v6251_v16  ;;  %v2474_v35 = vadd.f32 %v2473_v31, %v724_v22  ;;  %v2566_v10 = vpop.f32.mrf.mxu1  ;;  %v7468_v16 = vor.u32 %v9341_v63, %v7467_v60  ;;  %v7328_v17 = vor.u32 %v9304_v1, %v7325_v3  ;;  %v9302_v22 = vld [vmem:[%s14481_s6 + $0x4] sm:$0xf]  ;;  %v6501_v31 = vld [vmem:[%s14477_s2 + $0x3b0] sm:$0xf0]  ;;  %v9060_v60 = vld [vmem:[%s14477_s2 + $0x26c] sm:$0xf0] }
 0x169   : > { %2755 = vmatpush.bf16.msra.mxu0 %v6256_v28  ;;  %v6504_v38 = vor.u32 %v9090_v30, %v6501_v31  ;;  %v9080_v10 = vld [vmem:[%s14477_s2 + $0x30c] sm:$0xf0]  ;;  %v9050_v1 = vld [vmem:[%s14477_s2 + $0x224] sm:$0xf]  ;;  %v6341_v3 = vld [vmem:[%s14477_s2 + $0x270] sm:$0xf0] }
 0x16a   : > { %2873 = vmatpush.bf16.msra.mxu1 %v6832_v40  ;;  %v6091_v40 = vld [vmem:[%s14477_s2 + $0x38] sm:$0xf]  ;;  %v2487_v47 = vadd.f32 %v11606_v15, %v2474_v35  ;;  %2729 = vmatpush.bf16.msrb.mxu2 %v6252_v27  ;;  %v6661_v15 = vld [vmem:[%s14477_s2 + $0x4f0] sm:$0xf0]  ;;  %v6499_v27 = vld [vmem:[%s14477_s2 + $0x360] sm:$0xf] }
 0x16b   : > { %v6664_v12 = vor.u32 %v9130_v52, %v6661_v15  ;;  %v7619_v35 = vld [vmem:[%s14479_s4 + $0x1e0] sm:$0xf]  ;;  %v6420_v52 = vor.u32 %v9080_v10, %v6419_v39  ;;  %v9020_v30 = vld [vmem:[%s14477_s2 + $0x12c] sm:$0xf0]  ;;  %v9010_v31 = vld [vmem:[%s14477_s2 + $0xe4] sm:$0xf] }
 0x16c   : > { %3075 = vmatpush.bf16.msra.mxu3 %v7368_v45  ;;  %v6093_v45 = vld [vmem:[%s14477_s2 + $0x88] sm:$0xf0]  ;;  %vm2884_vm7 = vcmp.gt.f32.partialorder %v2487_v47, 0.0  ;;  %v2904_v54 = vmul.f32 0.01, %v2487_v47 }
 0x16d   : > { %2756 = vmatpush.bf16.msra.mxu0 %v6176_v49  ;;  %v6096_v8 = vor.u32 %v8989_v43, %v6093_v45  ;;  %v7443_v45 = vld [vmem:[%s14479_s4 + $0x80] sm:$0xf]  ;;  %v7611_v49 = vld [vmem:[%s14479_s4 + $0x1d0] sm:$0xf] }
 0x16e   : > { %2874 = vmatpush.bf16.msra.mxu1 %v6752_v62  ;;  %v2924_v6 = vsel %vm2884_vm7, %v2487_v47, %v2904_v54  ;;  %2730 = vmatpush.bf16.msrb.mxu2 %v6172_v48  ;;  %v9348_v47 = vld [vmem:[%s14479_s4 + $0xf4] sm:$0xf]  ;;  %v7501_v48 = vld [vmem:[%s14479_s4 + $0xf8] sm:$0xf0]  ;;  %v7612_v63 = vor.u32 %v9377_v50, %v7611_v49  ;;  %v6099_v10 = vld [vmem:[%s14477_s2 + $0x40] sm:$0xf] }
 0x16f   : > { %v6667_v50 = vld [vmem:[%s14477_s2 + $0x4a8] sm:$0xf] }
 0x170   : > { %3076 = vmatpush.bf16.msra.mxu3 %v7360_v5  ;;  %v2925_v5 = vsel %vm2885_vm6, %v2513_v0, %v2905_v46  ;;  %v7459_v0 = vld [vmem:[%s14479_s4 + $0xa0] sm:$0xf]  ;;  %v9335_v46 = vld [vmem:[%s14479_s4 + $0x84] sm:$0xf0] }
 0x171   : > { %2875 = vmatmul.bf16.vlgmr.msra.gmra.mxu1 %v9983_v2  ;;  %v8999_v2 = vld [vmem:[%s14477_s2 + $0x84] sm:$0xf0]  ;;  %v11883_v9 = vpack.c.bf16 %v2925_v5, %v2924_v6  ;;  %2757 = vmatpush.bf16.msra.mxu0 %v6096_v8  ;;  %v7444_v54 = vor.u32 %v9335_v46, %v7443_v45  ;;  %v7493_v6 = vld [vmem:[%s14479_s4 + $0xe8] sm:$0xf0]  ;;  %v7603_v8 = vld [vmem:[%s14479_s4 + $0x1c0] sm:$0xf] }
 0x172   : > { %3505 = vmatpush.bf16.msrb.mxu1 %v7500_v4  ;;  %v6092_v62 = vor.u32 %v8999_v2, %v6091_v40  ;;  %v2540_v4 = vpop.f32.mrf.mxu3  ;;  %v7452_v40 = vor.u32 %v9337_v34, %v7451_v33  ;;  %v6421_v2 = vld [vmem:[%s14477_s2 + $0x310] sm:$0xf0] }
 0x173   : > { %v6424_v15 = vor.u32 %v9070_v42, %v6421_v2  ;;  %v9346_v4 = vld [vmem:[%s14479_s4 + $0xe4] sm:$0xf]  ;;  %v2551_v5 = vpop.f32.mrf.mxu0  ;;  %v9000_v42 = vld [vmem:[%s14477_s2 + $0x8c] sm:$0xf0] }
 0x174   : > { %3077 = vmatpush.bf16.msra.mxu3 %v7352_v23  ;;  %v7317_v23 = vld [vmem:[%s14481_s6 + $0x8] sm:$0xf0]  ;;  %2731 = vmatpush.bf16.msrb.mxu2 %v6092_v62  ;;  %v7504_v62 = vor.u32 %v9348_v47, %v7501_v48  ;;  %v8990_v47 = vld [vmem:[%s14477_s2 + $0x44] sm:$0xf]  ;;  %v6101_v48 = vld [vmem:[%s14477_s2 + $0x90] sm:$0xf0] }
 0x175   : > { %2802 = vmatpush.bf16.msrb.mxu0 %v6664_v12  ;;  %v7320_v55 = vor.u32 %v9302_v22, %v7317_v23  ;;  %v2552_v12 = vadd.f32 %v2551_v5, %v727_v51  ;;  %v7496_v22 = vor.u32 %v9346_v4, %v7493_v6  ;;  %v7604_v23 = vor.u32 %v9375_v59, %v7603_v8  ;;  %v7579_v4 = vld [vmem:[%s14479_s4 + $0x190] sm:$0xf]  ;;  %v9369_v5 = vld [vmem:[%s14479_s4 + $0x194] sm:$0xf0] }
 0x176   : > { %3506 = vmatpush.bf16.msrb.mxu1 %v7492_v21  ;;  %v9339_v21 = vld [vmem:[%s14479_s4 + $0xa4] sm:$0xf0]  ;;  %2758 = vmatmul.bf16.vlgmr.msra.gmra.mxu0 %v10671_v41  ;;  %v6104_v59 = vor.u32 %v8990_v47, %v6101_v48  ;;  %v9071_v48 = vld [vmem:[%s14477_s2 + $0x2cc] sm:$0xf] }
 0x177   : > { %v7460_v28 = vor.u32 %v9339_v21, %v7459_v0  ;;  %2732 = vmatmul.bf16.vlgmr.msrb.gmra.mxu2 %v10671_v41  ;;  %v2565_v21 = vadd.f32 %v11782_v7, %v2552_v12  ;;  %v7485_v7 = vld [vmem:[%s14479_s4 + $0xd8] sm:$0xf0] }
 0x178   : > { %3078 = vmatpush.bf16.msra.mxu3 %v7344_v37  ;;  %2776 = vmatpush.bf16.msra.mxu2 %v6660_v11  ;;  %v6500_v37 = vor.u32 %v9100_v29, %v6499_v27  ;;  %v11998_v11 = vpop.f32.mrf.mxu1  ;;  %v6260_v27 = vor.u32 %v9040_v20, %v6259_v18  ;;  %v7488_v34 = vor.u32 %v9344_v53, %v7485_v7  ;;  %v9121_v18 = vld [vmem:[%s14477_s2 + $0x454] sm:$0xf0]  ;;  %v9111_v20 = vld [vmem:[%s14477_s2 + $0x40c] sm:$0xf]  ;;  %v9367_v53 = vld [vmem:[%s14479_s4 + $0x184] sm:$0xf0] }
 0x179   : > { %2803 = vmatpush.bf16.msrb.mxu0 %v6584_v61  ;;  %v9373_v61 = vld [vmem:[%s14479_s4 + $0x1b4] sm:$0xf0]  ;;  %vm2887_vm8 = vcmp.gt.f32.partialorder %v2565_v21, 0.0 }
 0x17a   : > { %3507 = vmatpush.bf16.msrb.mxu1 %v7484_v36  ;;  %v9379_v36 = vld [vmem:[%s14479_s4 + $0x1e4] sm:$0xf0]  ;;  %v12009_v0 = vpop.f32.mrf.mxu3 }
 0x17b   : > { %v7620_v43 = vor.u32 %v9379_v36, %v7619_v35  ;;  %v9342_v36 = vld [vmem:[%s14479_s4 + $0xc4] sm:$0xf]  ;;  %v2553_v39 = vpop.f32.mrf.mxu0 }
 0x17c   : > { %3079 = vmatpush.bf16.msra.mxu3 %v7336_v57  ;;  %2777 = vmatpush.bf16.msra.mxu2 %v6580_v25  ;;  %v6339_v57 = vld [vmem:[%s14477_s2 + $0x220] sm:$0xf]  ;;  %v7595_v25 = vld [vmem:[%s14479_s4 + $0x1b0] sm:$0xf]  ;;  %v12153_v39 = vld [vmem:[%s14478_s3 + $0x8] sm:$0xff] }
 0x17d   : > { %2804 = vmatpush.bf16.msrb.mxu0 %v6504_v38  ;;  %v6340_v13 = vor.u32 %v9060_v60, %v6339_v57  ;;  %v7596_v35 = vor.u32 %v9373_v61, %v7595_v25  ;;  %v7587_v38 = vld [vmem:[%s14479_s4 + $0x1a0] sm:$0xf]  ;;  %v6669_v57 = vld [vmem:[%s14477_s2 + $0x4f8] sm:$0xf0]  ;;  %v9340_v60 = vld [vmem:[%s14479_s4 + $0xb4] sm:$0xf] }
 0x17e   : > { %3508 = vmatpush.bf16.msrb.mxu1 %v7476_v56  ;;  %v3161_v56 = vunpack.c.h.b16 %v11654_v44  ;;  %v9380_v61 = vld [vmem:[%s14479_s4 + $0x1f4] sm:$0xf]  ;;  %v729_v47 = vperm.slane %v12153_v39, 1 }
 0x180   : > { %3080 = vmatpush.bf16.msra.mxu3 %v7328_v17  ;;  %2778 = vmatpush.bf16.msra.mxu2 %v6500_v37  ;;  %v12000_v14 = vpack.c.b16 %v3161_v56, %v3161_v56  ;;  %v726_v17 = vperm.slane %v11506_v19, 6  ;;  %v9030_v19 = vld [vmem:[%s14477_s2 + $0x184] sm:$0xf]  ;;  %v7477_v37 = vld [vmem:[%s14479_s4 + $0xc8] sm:$0xf0]  ;;  %v2618_v2 = vpop.f32.mrf.mxu1 }
 0x181   : > { %2805 = vmatpush.bf16.msrb.mxu0 %v6424_v15  ;;  %v6264_v29 = vor.u32 %v9030_v19, %v6261_v24  ;;  %v7480_v15 = vor.u32 %v9342_v36, %v7477_v37  ;;  %v9131_v56 = vld [vmem:[%s14477_s2 + $0x4ac] sm:$0xf]  ;;  %v7571_v24 = vld [vmem:[%s14479_s4 + $0x180] sm:$0xf]  ;;  %v3163_v36 = vunpack.c.h.b16 %v11767_v58  ;;  %v9336_v37 = vld [vmem:[%s14479_s4 + $0x94] sm:$0xf] }
 0x182   : > { %3509 = vmatpush.bf16.msrb.mxu1 %v7468_v16  ;;  %v6344_v16 = vor.u32 %v9050_v1, %v6341_v3  ;;  %v2592_v51 = vpop.f32.mrf.mxu3  ;;  %v6100_v3 = vor.u32 %v9000_v42, %v6099_v10  ;;  %v7461_v19 = vld [vmem:[%s14479_s4 + $0xa8] sm:$0xf0]  ;;  %v9378_v10 = vld [vmem:[%s14479_s4 + $0x1e4] sm:$0xf] }
 0x183   : > { %v7621_v42 = vld [vmem:[%s14479_s4 + $0x1e8] sm:$0xf0]  ;;  %v9334_v51 = vld [vmem:[%s14479_s4 + $0x84] sm:$0xf] }
 0x184   : > { %3081 = vmatpush.bf16.msra.mxu3 %v7320_v55  ;;  %2779 = vmatpush.bf16.msra.mxu2 %v6420_v52  ;;  %v2525_v55 = vpop.f32.mrf.mxu2 }
 0x185   : > { %2806 = vmatpush.bf16.msrb.mxu0 %v6344_v16  ;;  %v2526_v33 = vadd.f32 %v2525_v55, %v726_v17  ;;  %v6587_v17 = vld [vmem:[%s14477_s2 + $0x408] sm:$0xf] }
 0x186   : > { %3510 = vmatpush.bf16.msrb.mxu1 %v7460_v28  ;;  %v6179_v28 = vld [vmem:[%s14477_s2 + $0xe0] sm:$0xf]  ;;  %v6588_v25 = vor.u32 %v9121_v18, %v6587_v17 }
 0x187   : > { %3082 = vmatmul.bf16.vlgmr.msra.gmra.mxu3 %v10671_v41  ;;  %v2539_v45 = vadd.f32 %v11819_v26, %v2526_v33  ;;  %v6180_v46 = vor.u32 %v9020_v30, %v6179_v28  ;;  %v9141_v26 = vld [vmem:[%s14477_s2 + $0x4f4] sm:$0xf0]  ;;  %v6507_v30 = vld [vmem:[%s14477_s2 + $0x368] sm:$0xf]  ;;  %v9091_v33 = vld [vmem:[%s14477_s2 + $0x36c] sm:$0xf] }
 0x188   : > { %3531 = vmatpush.bf16.msrb.mxu3 %v7628_v32  ;;  %2780 = vmatpush.bf16.msra.mxu2 %v6340_v13  ;;  %v6181_v32 = vld [vmem:[%s14477_s2 + $0x130] sm:$0xf0]  ;;  %v6668_v12 = vor.u32 %v9141_v26, %v6667_v50  ;;  %v6672_v13 = vor.u32 %v9131_v56, %v6669_v57  ;;  %v12119_v7 = vpop.f32.mrf.mxu1  ;;  %v12174_v50 = vpack.c.b16 %v3163_v36, %v3163_v36  ;;  %v9413_v57 = vld [vmem:[%s14479_s4 + $0x2f4] sm:$0xf0]  ;;  %v7811_v17 = vld [vmem:[%s14479_s4 + $0x2e0] sm:$0xf] }
 0x189   : > { %2807 = vmatpush.bf16.msrb.mxu0 %v6264_v29  ;;  %v6184_v49 = vor.u32 %v9010_v31, %v6181_v32  ;;  %vm2886_vm9 = vcmp.gt.f32.partialorder %v2539_v45, 0.0  ;;  %v2906_v52 = vmul.f32 0.01, %v2539_v45  ;;  %v9101_v31 = vld [vmem:[%s14477_s2 + $0x3b4] sm:$0xf0]  ;;  %v7572_v32 = vor.u32 %v9367_v53, %v7571_v24 }
 0x18a   : > { %3511 = vmatpush.bf16.msrb.mxu1 %v7452_v40  ;;  %v9371_v40 = vld [vmem:[%s14479_s4 + $0x1a4] sm:$0xf0]  ;;  %v12127_v28 = vpop.f32.mrf.mxu3  ;;  %v7624_v26 = vor.u32 %v9378_v10, %v7621_v42  ;;  %v9041_v53 = vld [vmem:[%s14477_s2 + $0x1d4] sm:$0xf0]  ;;  %v9011_v10 = vld [vmem:[%s14477_s2 + $0xec] sm:$0xf] }
 0x18b   : > { %v2926_v1 = vsel %vm2886_vm9, %v2539_v45, %v2906_v52  ;;  %v9081_v45 = vld [vmem:[%s14477_s2 + $0x314] sm:$0xf0]  ;;  %v7445_v52 = vld [vmem:[%s14479_s4 + $0x88] sm:$0xf0]  ;;  %v6267_v24 = vld [vmem:[%s14477_s2 + $0x188] sm:$0xf] }
 0x18c   : > { %3532 = vmatpush.bf16.msrb.mxu3 %v7620_v43  ;;  %v2907_v43 = vmul.f32 0.01, %v2565_v21  ;;  %2781 = vmatpush.bf16.msra.mxu2 %v6260_v27  ;;  %v2527_v8 = vpop.f32.mrf.mxu2  ;;  %v7629_v27 = vld [vmem:[%s14479_s4 + $0x1f8] sm:$0xf0] }
 0x18d   : > { %2808 = vmatpush.bf16.msrb.mxu0 %v6184_v49  ;;  %v6429_v49 = vld [vmem:[%s14477_s2 + $0x318] sm:$0xf0]  ;;  %v9051_v8 = vld [vmem:[%s14477_s2 + $0x22c] sm:$0xf] }
 0x18e   : > { %3512 = vmatpush.bf16.msrb.mxu1 %v7444_v54  ;;  %v7588_v54 = vor.u32 %v9371_v40, %v7587_v38  ;;  %v7453_v38 = vld [vmem:[%s14479_s4 + $0x98] sm:$0xf0]  ;;  %v6508_v40 = vor.u32 %v9101_v31, %v6507_v30  ;;  %v7803_v31 = vld [vmem:[%s14479_s4 + $0x2d0] sm:$0xf] }
 0x190   : > { %3533 = vmatpush.bf16.msrb.mxu3 %v7612_v63  ;;  %v2927_v63 = vsel %vm2887_vm8, %v2565_v21, %v2907_v43  ;;  %2782 = vmatpush.bf16.msra.mxu2 %v6180_v46  ;;  %v7580_v21 = vor.u32 %v9369_v5, %v7579_v4  ;;  %v6427_v43 = vld [vmem:[%s14477_s2 + $0x2c8] sm:$0xf]  ;;  %v7456_v46 = vor.u32 %v9336_v37, %v7453_v38  ;;  %v9061_v4 = vld [vmem:[%s14477_s2 + $0x274] sm:$0xf0] }
 0x191   : > { %3513 = vmatmul.bf16.vlgmr.msrb.gmra.mxu1 %v12000_v14  ;;  %v12093_v6 = vpack.c.bf16 %v2927_v63, %v2926_v1  ;;  %2809 = vmatpush.bf16.msrb.mxu0 %v6104_v59  ;;  %v6428_v56 = vor.u32 %v9081_v45, %v6427_v43  ;;  %v6432_v1 = vor.u32 %v9071_v48, %v6429_v49  ;;  %v6349_v59 = vld [vmem:[%s14477_s2 + $0x278] sm:$0xf0]  ;;  %v6187_v38 = vld [vmem:[%s14477_s2 + $0xe8] sm:$0xf]  ;;  %v7795_v43 = vld [vmem:[%s14479_s4 + $0x2c0] sm:$0xf] }
 0x192   : > { %3557 = vmatpush.bf16.msra.mxu1 %v7504_v62  ;;  %v7469_v62 = vld [vmem:[%s14479_s4 + $0xb8] sm:$0xf0]  ;;  %v2644_v63 = vpop.f32.mrf.mxu3  ;;  %v7448_v5 = vor.u32 %v9334_v51, %v7445_v52  ;;  %v9407_v45 = vld [vmem:[%s14479_s4 + $0x2c4] sm:$0xf0]  ;;  %v9370_v49 = vld [vmem:[%s14479_s4 + $0x1a4] sm:$0xf] }
 0x193   : > { %v7472_v16 = vor.u32 %v9340_v60, %v7469_v62  ;;  %v9376_v60 = vld [vmem:[%s14479_s4 + $0x1d4] sm:$0xf]  ;;  %v7613_v62 = vld [vmem:[%s14479_s4 + $0x1d8] sm:$0xf0]  ;;  %v6107_v51 = vld [vmem:[%s14477_s2 + $0x48] sm:$0xf] }
 0x194   : > { %3534 = vmatpush.bf16.msrb.mxu3 %v7604_v23  ;;  %v9338_v23 = vld [vmem:[%s14479_s4 + $0xa4] sm:$0xf]  ;;  %2783 = vmatpush.bf16.msra.mxu2 %v6100_v3  ;;  %v6347_v3 = vld [vmem:[%s14477_s2 + $0x228] sm:$0xf] }
 0x195   : > { %2854 = vmatpush.bf16.msra.mxu0 %v6672_v13  ;;  %v7464_v29 = vor.u32 %v9338_v23, %v7461_v19  ;;  %v7605_v23 = vld [vmem:[%s14479_s4 + $0x1c8] sm:$0xf0]  ;;  %v6352_v19 = vor.u32 %v9051_v8, %v6349_v59  ;;  %v9333_v8 = vld [vmem:[%s14479_s4 + $0x74] sm:$0xf0]  ;;  %v7787_v59 = vld [vmem:[%s14479_s4 + $0x2b0] sm:$0xf] }
 0x196   : > { %3558 = vmatpush.bf16.msra.mxu1 %v7496_v22  ;;  %v6589_v22 = vld [vmem:[%s14477_s2 + $0x458] sm:$0xf0]  ;;  %2810 = vmatmul.bf16.vlgmr.msrb.gmra.mxu0 %v10671_v41  ;;  %v2577_v36 = vpop.f32.mrf.mxu2 }
 0x197   : > { %v6592_v55 = vor.u32 %v9111_v20, %v6589_v22  ;;  %2784 = vmatmul.bf16.vlgmr.msra.gmra.mxu2 %v10671_v41  ;;  %v6348_v20 = vor.u32 %v9061_v4, %v6347_v3  ;;  %v9374_v22 = vld [vmem:[%s14479_s4 + $0x1c4] sm:$0xf]  ;;  %v7796_v3 = vor.u32 %v9407_v45, %v7795_v43  ;;  %v7419_v45 = vld [vmem:[%s14479_s4 + $0x50] sm:$0xf] }
 0x198   : > { %3535 = vmatpush.bf16.msrb.mxu3 %v7596_v35  ;;  %2828 = vmatpush.bf16.msrb.mxu2 %v6668_v12  ;;  %v7632_v35 = vor.u32 %v9380_v61, %v7629_v27  ;;  %v2603_v12 = vpop.f32.mrf.mxu0  ;;  %v728_v61 = vperm.slane %v12153_v39, 0  ;;  %v9031_v27 = vld [vmem:[%s14477_s2 + $0x18c] sm:$0xf]  ;;  %v7608_v30 = vor.u32 %v9374_v22, %v7605_v23 }
 0x199   : > { %2855 = vmatpush.bf16.msra.mxu0 %v6592_v55  ;;  %v2604_v18 = vadd.f32 %v2603_v12, %v729_v47  ;;  %v6269_v55 = vld [vmem:[%s14477_s2 + $0x1d8] sm:$0xf0] }
 0x19a   : > { %3559 = vmatpush.bf16.msra.mxu1 %v7488_v34  ;;  %v6509_v34 = vld [vmem:[%s14477_s2 + $0x3b8] sm:$0xf0]  ;;  %v6272_v37 = vor.u32 %v9031_v27, %v6269_v55  ;;  %v9315_v27 = vld [vmem:[%s14481_s6 + $0x64] sm:$0xf0] }
 0x19b   : > { %v6512_v2 = vor.u32 %v9091_v33, %v6509_v34  ;;  %v9372_v33 = vld [vmem:[%s14479_s4 + $0x1b4] sm:$0xf]  ;;  %v7597_v34 = vld [vmem:[%s14479_s4 + $0x1b8] sm:$0xf0] }
 0x19c   : > { %3536 = vmatpush.bf16.msrb.mxu3 %v7588_v54  ;;  %2829 = vmatpush.bf16.msrb.mxu2 %v6588_v25  ;;  %v2670_v54 = vpop.f32.mrf.mxu1  ;;  %v2617_v25 = vadd.f32 %v11998_v11, %v2604_v18  ;;  %v6268_v11 = vor.u32 %v9041_v53, %v6267_v24  ;;  %v7600_v48 = vor.u32 %v9372_v33, %v7597_v34  ;;  %v9368_v18 = vld [vmem:[%s14479_s4 + $0x194] sm:$0xf]  ;;  %v9366_v33 = vld [vmem:[%s14479_s4 + $0x184] sm:$0xf]  ;;  %v7573_v34 = vld [vmem:[%s14479_s4 + $0x188] sm:$0xf0] }
 0x19d   : > { %2856 = vmatpush.bf16.msra.mxu0 %v6512_v2  ;;  %v2578_v2 = vadd.f32 %v2577_v36, %v728_v61  ;;  %v7363_v61 = vld [vmem:[%s14481_s6 + $0x60] sm:$0xf]  ;;  %v7576_v43 = vor.u32 %v9366_v33, %v7573_v34 }
 0x19e   : > { %3560 = vmatpush.bf16.msra.mxu1 %v7480_v15  ;;  %v7819_v15 = vld [vmem:[%s14479_s4 + $0x2f0] sm:$0xf]  ;;  %v2909_v52 = vmul.f32 0.01, %v2617_v25  ;;  %vm2889_vm10 = vcmp.gt.f32.partialorder %v2617_v25, 0.0  ;;  %v2579_v23 = vpop.f32.mrf.mxu2  ;;  %v7364_v36 = vor.u32 %v9315_v27, %v7363_v61 }
 0x19f   : > { %v7820_v13 = vor.u32 %v9413_v57, %v7819_v15  ;;  %v2591_v15 = vadd.f32 %v12009_v0, %v2578_v2  ;;  %v8991_v57 = vld [vmem:[%s14477_s2 + $0x4c] sm:$0xf]  ;;  %v7371_v0 = vld [vmem:[%s14481_s6 + $0x70] sm:$0xf]  ;;  %v9313_v2 = vld [vmem:[%s14481_s6 + $0x54] sm:$0xf0] }
 0x1a0   : > { %3537 = vmatpush.bf16.msrb.mxu3 %v7580_v21  ;;  %2830 = vmatpush.bf16.msrb.mxu2 %v6508_v40  ;;  %v9411_v21 = vld [vmem:[%s14479_s4 + $0x2e4] sm:$0xf0]  ;;  %v9021_v40 = vld [vmem:[%s14477_s2 + $0x134] sm:$0xf0]  ;;  %v2929_v12 = vsel %vm2889_vm10, %v2617_v25, %v2909_v52  ;;  %v7939_v52 = vld [vmem:[%s14479_s4 + $0x3e0] sm:$0xf] }
 0x1a1   : > { %2857 = vmatpush.bf16.msra.mxu0 %v6432_v1  ;;  %v6188_v54 = vor.u32 %v9021_v40, %v6187_v38  ;;  %vm2888_vm11 = vcmp.gt.f32.partialorder %v2591_v15, 0.0  ;;  %v2908_v63 = vmul.f32 0.01, %v2591_v15  ;;  %v9317_v1 = vld [vmem:[%s14481_s6 + $0x74] sm:$0xf0] }
 0x1a2   : > { %3561 = vmatpush.bf16.msra.mxu1 %v7472_v16  ;;  %v7616_v16 = vor.u32 %v9376_v60, %v7613_v62  ;;  %v6109_v62 = vld [vmem:[%s14477_s2 + $0x98] sm:$0xf0]  ;;  %v7372_v24 = vor.u32 %v9317_v1, %v7371_v0  ;;  %v9445_v38 = vld [vmem:[%s14479_s4 + $0x3f4] sm:$0xf0]  ;;  %v731_v0 = vperm.slane %v12153_v39, 3 }
 0x1a3   : > { %v9327_v1 = vld [vmem:[%s14479_s4 + $0x44] sm:$0xf0]  ;;  %v7403_v23 = vld [vmem:[%s14479_s4 + $0x30] sm:$0xf]  ;;  %v9410_v61 = vld [vmem:[%s14479_s4 + $0x2e4] sm:$0xf] }
 0x1a4   : > { %3538 = vmatpush.bf16.msrb.mxu3 %v7572_v32  ;;  %2831 = vmatpush.bf16.msrb.mxu2 %v6428_v56  ;;  %v9409_v32 = vld [vmem:[%s14479_s4 + $0x2d4] sm:$0xf0]  ;;  %v12257_v42 = vpop.f32.mrf.mxu1  ;;  %v7331_v34 = vld [vmem:[%s14481_s6 + $0x20] sm:$0xf] }
 0x1a5   : > { %2858 = vmatpush.bf16.msra.mxu0 %v6352_v19  ;;  %v7804_v47 = vor.u32 %v9409_v32, %v7803_v31  ;;  %v9001_v56 = vld [vmem:[%s14477_s2 + $0x94] sm:$0xf0]  ;;  %v6112_v19 = vor.u32 %v8991_v57, %v6109_v62  ;;  %v9331_v31 = vld [vmem:[%s14479_s4 + $0x64] sm:$0xf0]  ;;  %v7347_v57 = vld [vmem:[%s14481_s6 + $0x40] sm:$0xf] }
 0x1a6   : > { %3562 = vmatpush.bf16.msra.mxu1 %v7464_v29  ;;  %v7812_v29 = vor.u32 %v9411_v21, %v7811_v17  ;;  %v9405_v17 = vld [vmem:[%s14479_s4 + $0x2b4] sm:$0xf0]  ;;  %v9403_v32 = vld [vmem:[%s14479_s4 + $0x2a4] sm:$0xf0] }
 0x1a7   : > { %3539 = vmatmul.bf16.vlgmr.msrb.gmra.mxu3 %v12174_v50  ;;  %v7788_v55 = vor.u32 %v9405_v17, %v7787_v59 }
 0x1a8   : > { %3583 = vmatpush.bf16.msra.mxu3 %v7632_v35  ;;  %2832 = vmatpush.bf16.msrb.mxu2 %v6348_v20  ;;  %v12245_v35 = vpop.f32.mrf.mxu3  ;;  %v7581_v20 = vld [vmem:[%s14479_s4 + $0x198] sm:$0xf0] }
 0x1a9   : > { %2859 = vmatpush.bf16.msra.mxu0 %v6272_v37  ;;  %v7947_v37 = vld [vmem:[%s14479_s4 + $0x3f0] sm:$0xf] }
 0x1aa   : > { %3563 = vmatpush.bf16.msra.mxu1 %v7456_v46  ;;  %v2605_v46 = vpop.f32.mrf.mxu0 }
 0x1ab   : > { %v9329_v46 = vld [vmem:[%s14479_s4 + $0x54] sm:$0xf0] }
 0x1ac   : > { %3584 = vmatpush.bf16.msra.mxu3 %v7624_v26  ;;  %v7589_v26 = vld [vmem:[%s14479_s4 + $0x1a8] sm:$0xf0]  ;;  %2833 = vmatpush.bf16.msrb.mxu2 %v6268_v11  ;;  %v2722_v53 = vpop.f32.mrf.mxu1  ;;  %v7779_v11 = vld [vmem:[%s14479_s4 + $0x2a0] sm:$0xf] }
 0x1ad   : > { %v7592_v4 = vor.u32 %v9370_v49, %v7589_v26  ;;  %v9401_v49 = vld [vmem:[%s14479_s4 + $0x294] sm:$0xf0] }
 0x1ae   : > { %3564 = vmatpush.bf16.msra.mxu1 %v7448_v5  ;;  %v7435_v5 = vld [vmem:[%s14479_s4 + $0x70] sm:$0xf] }
 0x1af   : > { %v7436_v25 = vor.u32 %v9333_v8, %v7435_v5  ;;  %v9399_v5 = vld [vmem:[%s14479_s4 + $0x284] sm:$0xf0]  ;;  %v9412_v8 = vld [vmem:[%s14479_s4 + $0x2f4] sm:$0xf] }
 0x1b0   : > { %3585 = vmatpush.bf16.msra.mxu3 %v7616_v16  ;;  %2834 = vmatpush.bf16.msrb.mxu2 %v6188_v54  ;;  %v6108_v16 = vor.u32 %v9001_v56, %v6107_v51  ;;  %v2696_v21 = vpop.f32.mrf.mxu3  ;;  %v7420_v56 = vor.u32 %v9329_v46, %v7419_v45  ;;  %v7805_v46 = vld [vmem:[%s14479_s4 + $0x2d8] sm:$0xf0] }
 0x1b1   : > { %3565 = vmatmul.bf16.vlgmr.msra.gmra.mxu1 %v12000_v14  ;;  %v6189_v14 = vld [vmem:[%s14477_s2 + $0x138] sm:$0xf0] }
 0x1b2   : > { %4031 = vmatpush.bf16.msrb.mxu1 %v7820_v13  ;;  %v6192_v60 = vor.u32 %v9011_v10, %v6189_v14  ;;  %v2928_v13 = vsel %vm2888_vm11, %v2591_v15, %v2908_v63  ;;  %v7355_v10 = vld [vmem:[%s14481_s6 + $0x50] sm:$0xf]  ;;  %v7780_v14 = vor.u32 %v9403_v32, %v7779_v11  ;;  %v9443_v15 = vld [vmem:[%s14479_s4 + $0x3e4] sm:$0xf0]  ;;  %v7411_v63 = vld [vmem:[%s14479_s4 + $0x40] sm:$0xf] }
 0x1b3   : > { %v12311_v22 = vpack.c.bf16 %v2929_v12, %v2928_v13  ;;  %v7356_v51 = vor.u32 %v9313_v2, %v7355_v10  ;;  %v7821_v12 = vld [vmem:[%s14479_s4 + $0x2f8] sm:$0xf0]  ;;  %v7931_v13 = vld [vmem:[%s14479_s4 + $0x3d0] sm:$0xf]  ;;  %v7412_v17 = vor.u32 %v9327_v1, %v7411_v63  ;;  %v9439_v11 = vld [vmem:[%s14479_s4 + $0x3c4] sm:$0xf0] }
 0x1b4   : > { %3586 = vmatpush.bf16.msra.mxu3 %v7608_v30  ;;  %2860 = vmatpush.bf16.msra.mxu0 %v6192_v60  ;;  %v7427_v30 = vld [vmem:[%s14479_s4 + $0x60] sm:$0xf]  ;;  %v12371_v54 = vpop.f32.mrf.mxu1  ;;  %v9311_v60 = vld [vmem:[%s14481_s6 + $0x44] sm:$0xf0]  ;;  %v7824_v53 = vor.u32 %v9412_v8, %v7821_v12 }
 0x1b5   : > { %2835 = vmatpush.bf16.msrb.mxu2 %v6108_v16  ;;  %v7428_v40 = vor.u32 %v9331_v31, %v7427_v30  ;;  %v7348_v59 = vor.u32 %v9311_v60, %v7347_v57  ;;  %v9441_v16 = vld [vmem:[%s14479_s4 + $0x3d4] sm:$0xf0]  ;;  %v7813_v30 = vld [vmem:[%s14479_s4 + $0x2e8] sm:$0xf0]  ;;  %v7923_v31 = vld [vmem:[%s14479_s4 + $0x3c0] sm:$0xf] }
 0x1b6   : > { %4032 = vmatpush.bf16.msrb.mxu1 %v7812_v29  ;;  %v7584_v29 = vor.u32 %v9368_v18, %v7581_v20  ;;  %v7339_v18 = vld [vmem:[%s14481_s6 + $0x30] sm:$0xf]  ;;  %v9309_v20 = vld [vmem:[%s14481_s6 + $0x34] sm:$0xf0]  ;;  %v9323_v10 = vld [vmem:[%s14479_s4 + $0x24] sm:$0xf0] }
 0x1b7   : > { %v9321_v60 = vld [vmem:[%s14479_s4 + $0x14] sm:$0xf0]  ;;  %v7315_v8 = vld [vmem:[%s14481_s6] sm:$0xf] }
 0x1b8   : > { %3587 = vmatpush.bf16.msra.mxu3 %v7600_v48  ;;  %2861 = vmatpush.bf16.msra.mxu0 %v6112_v19  ;;  %v7771_v48 = vld [vmem:[%s14479_s4 + $0x290] sm:$0xf]  ;;  %v12363_v26 = vpop.f32.mrf.mxu3  ;;  %v9325_v19 = vld [vmem:[%s14479_s4 + $0x34] sm:$0xf0] }
 0x1b9   : > { %3061 = vmatpush.bf16.msra.mxu2 %v7372_v24  ;;  %v7772_v62 = vor.u32 %v9401_v49, %v7771_v48  ;;  %v2655_v24 = vpop.f32.mrf.mxu0  ;;  %v7404_v33 = vor.u32 %v9325_v19, %v7403_v23  ;;  %v9437_v48 = vld [vmem:[%s14479_s4 + $0x3b4] sm:$0xf0]  ;;  %v2629_v49 = vpop.f32.mrf.mxu2 }
 0x1ba   : > { %4033 = vmatpush.bf16.msrb.mxu1 %v7804_v47  ;;  %2836 = vmatmul.bf16.vlgmr.msrb.gmra.mxu2 %v10671_v41  ;;  %v7948_v47 = vor.u32 %v9445_v38, %v7947_v37  ;;  %v730_v38 = vperm.slane %v12153_v39, 2  ;;  %v9365_v23 = vld [vmem:[%s14479_s4 + $0x174] sm:$0xf0] }
 0x1bb   : > { %2862 = vmatmul.bf16.vlgmr.msra.gmra.mxu0 %v10671_v41 }
 0x1bc   : > { %3588 = vmatpush.bf16.msra.mxu3 %v7592_v4  ;;  %3492 = vmatpush.bf16.msrb.mxu0 %v7436_v25  ;;  %v7763_v4 = vld [vmem:[%s14479_s4 + $0x280] sm:$0xf]  ;;  %v7932_v25 = vor.u32 %v9441_v16, %v7931_v13  ;;  %v2774_v32 = vpop.f32.mrf.mxu1  ;;  %v2630_v57 = vadd.f32 %v2629_v49, %v730_v38  ;;  %v9303_v16 = vld [vmem:[%s14481_s6 + $0x4] sm:$0xf0]  ;;  %v3160_v38 = vunpack.c.l.b16 %v11654_v44  ;;  %v7429_v44 = vld [vmem:[%s14479_s4 + $0x68] sm:$0xf0] }
 0x1bd   : > { %3062 = vmatpush.bf16.msra.mxu2 %v7364_v36  ;;  %v7764_v21 = vor.u32 %v9399_v5, %v7763_v4  ;;  %v9307_v36 = vld [vmem:[%s14481_s6 + $0x24] sm:$0xf0]  ;;  %v7907_v4 = vld [vmem:[%s14479_s4 + $0x3a0] sm:$0xf] }
 0x1be   : > { %4034 = vmatpush.bf16.msrb.mxu1 %v7796_v3  ;;  %v7940_v3 = vor.u32 %v9443_v15, %v7939_v52  ;;  %v7332_v45 = vor.u32 %v9307_v36, %v7331_v34  ;;  %v7323_v52 = vld [vmem:[%s14481_s6 + $0x10] sm:$0xf]  ;;  %v9305_v15 = vld [vmem:[%s14481_s6 + $0x14] sm:$0xf0]  ;;  %v9435_v5 = vld [vmem:[%s14479_s4 + $0x3a4] sm:$0xf0]  ;;  %v2643_v12 = vadd.f32 %v12127_v28, %v2630_v57 }
 0x1bf   : > { %v7324_v13 = vor.u32 %v9305_v15, %v7323_v52  ;;  %v7563_v28 = vld [vmem:[%s14479_s4 + $0x170] sm:$0xf]  ;;  %v9431_v49 = vld [vmem:[%s14479_s4 + $0x384] sm:$0xf0]  ;;  %v9444_v52 = vld [vmem:[%s14479_s4 + $0x3f4] sm:$0xf] }
 0x1c0   : > { %3589 = vmatpush.bf16.msra.mxu3 %v7584_v29  ;;  %3493 = vmatpush.bf16.msrb.mxu0 %v7428_v40  ;;  %v2748_v27 = vpop.f32.mrf.mxu3  ;;  %v7340_v29 = vor.u32 %v9309_v20, %v7339_v18  ;;  %v7395_v40 = vld [vmem:[%s14479_s4 + $0x20] sm:$0xf]  ;;  %v9319_v20 = vld [vmem:[%s14479_s4 + $0x4] sm:$0xf0]  ;;  %vm2890_vm13 = vcmp.gt.f32.partialorder %v2643_v12, 0.0  ;;  %v7564_v36 = vor.u32 %v9365_v23, %v7563_v28  ;;  %v733_v23 = vperm.slane %v12153_v39, 5 }
 0x1c1   : > { %3063 = vmatpush.bf16.msra.mxu2 %v7356_v51  ;;  %v7396_v51 = vor.u32 %v9323_v10, %v7395_v40  ;;  %v2657_v63 = vpop.f32.mrf.mxu0  ;;  %v7555_v40 = vld [vmem:[%s14479_s4 + $0x160] sm:$0xf]  ;;  %v9363_v10 = vld [vmem:[%s14479_s4 + $0x164] sm:$0xf0]  ;;  %v7949_v15 = vld [vmem:[%s14479_s4 + $0x3f8] sm:$0xf0] }
 0x1c2   : > { %4035 = vmatpush.bf16.msrb.mxu1 %v7788_v55  ;;  %v2656_v55 = vadd.f32 %v2655_v24, %v731_v0  ;;  %v7797_v0 = vld [vmem:[%s14479_s4 + $0x2c8] sm:$0xf0]  ;;  %v9332_v24 = vld [vmem:[%s14479_s4 + $0x74] sm:$0xf] }
 0x1c4   : > { %3590 = vmatpush.bf16.msra.mxu3 %v7576_v43  ;;  %3494 = vmatpush.bf16.msrb.mxu0 %v7420_v56  ;;  %v2669_v37 = vadd.f32 %v12119_v7, %v2656_v55  ;;  %v7924_v43 = vor.u32 %v9439_v11, %v7923_v31  ;;  %v9408_v7 = vld [vmem:[%s14479_s4 + $0x2d4] sm:$0xf]  ;;  %v7387_v56 = vld [vmem:[%s14479_s4 + $0x10] sm:$0xf]  ;;  %v7316_v55 = vor.u32 %v9303_v16, %v7315_v8  ;;  %v9433_v31 = vld [vmem:[%s14479_s4 + $0x394] sm:$0xf0] }
 0x1c5   : > { %3064 = vmatpush.bf16.msra.mxu2 %v7348_v59  ;;  %v7808_v1 = vor.u32 %v9408_v7, %v7805_v46  ;;  %v7388_v18 = vor.u32 %v9321_v60, %v7387_v56  ;;  %v9402_v46 = vld [vmem:[%s14479_s4 + $0x2a4] sm:$0xf]  ;;  %v12557_v56 = vpack.c.b16 %v3160_v38, %v3160_v38  ;;  %v7547_v60 = vld [vmem:[%s14479_s4 + $0x150] sm:$0xf]  ;;  %v9400_v8 = vld [vmem:[%s14479_s4 + $0x294] sm:$0xf] }
 0x1c6   : > { %4036 = vmatpush.bf16.msrb.mxu1 %v7780_v14  ;;  %v7816_v14 = vor.u32 %v9410_v61, %v7813_v30  ;;  %v2911_v59 = vmul.f32 0.01, %v2669_v37  ;;  %vm2891_vm12 = vcmp.gt.f32.partialorder %v2669_v37, 0.0  ;;  %v7899_v30 = vld [vmem:[%s14479_s4 + $0x390] sm:$0xf] }
 0x1c7   : > { %3591 = vmatmul.bf16.vlgmr.msra.gmra.mxu3 %v12174_v50  ;;  %v3687_v50 = vunpack.c.h.b16 %v11883_v9  ;;  %v7900_v7 = vor.u32 %v9433_v31, %v7899_v30  ;;  %v9442_v16 = vld [vmem:[%s14479_s4 + $0x3e4] sm:$0xf]  ;;  %v9440_v30 = vld [vmem:[%s14479_s4 + $0x3d4] sm:$0xf]  ;;  %v7933_v31 = vld [vmem:[%s14479_s4 + $0x3d8] sm:$0xf0] }
 0x1c8   : > { %4057 = vmatpush.bf16.msrb.mxu3 %v7948_v47  ;;  %3495 = vmatpush.bf16.msrb.mxu0 %v7412_v17  ;;  %v7915_v47 = vld [vmem:[%s14479_s4 + $0x3b0] sm:$0xf]  ;;  %v7379_v17 = vld [vmem:[%s14479_s4] sm:$0xf]  ;;  %v2931_v61 = vsel %vm2891_vm12, %v2669_v37, %v2911_v59  ;;  %v7773_v59 = vld [vmem:[%s14479_s4 + $0x298] sm:$0xf0] }
 0x1c9   : > { %v12444_v2 = vpack.c.b16 %v3687_v50, %v3687_v50  ;;  %3065 = vmatpush.bf16.msra.mxu2 %v7340_v29  ;;  %v7908_v50 = vor.u32 %v9435_v5, %v7907_v4  ;;  %v7789_v29 = vld [vmem:[%s14479_s4 + $0x2b8] sm:$0xf0]  ;;  %v7380_v34 = vor.u32 %v9319_v20, %v7379_v17  ;;  %v3689_v4 = vunpack.c.h.b16 %v12093_v6  ;;  %v9359_v20 = vld [vmem:[%s14479_s4 + $0x144] sm:$0xf0]  ;;  %v9324_v38 = vld [vmem:[%s14479_s4 + $0x34] sm:$0xf] }
 0x1ca   : > { %4037 = vmatpush.bf16.msrb.mxu1 %v7772_v62  ;;  %v9406_v62 = vld [vmem:[%s14479_s4 + $0x2c4] sm:$0xf]  ;;  %v12520_v11 = vpop.f32.mrf.mxu3  ;;  %v7952_v5 = vor.u32 %v9444_v52, %v7949_v15  ;;  %v7523_v52 = vld [vmem:[%s14479_s4 + $0x120] sm:$0xf]  ;;  %v9355_v15 = vld [vmem:[%s14479_s4 + $0x124] sm:$0xf0] }
 0x1cb   : > { %v7800_v19 = vor.u32 %v9406_v62, %v7797_v0  ;;  %v9361_v62 = vld [vmem:[%s14479_s4 + $0x154] sm:$0xf0] }
 0x1cc   : > { %4058 = vmatpush.bf16.msrb.mxu3 %v7940_v3  ;;  %3496 = vmatpush.bf16.msrb.mxu0 %v7404_v33  ;;  %v7916_v3 = vor.u32 %v9437_v48, %v7915_v47  ;;  %v2631_v33 = vpop.f32.mrf.mxu2  ;;  %v7781_v47 = vld [vmem:[%s14479_s4 + $0x2a8] sm:$0xf0]  ;;  %v7891_v48 = vld [vmem:[%s14479_s4 + $0x380] sm:$0xf] }
 0x1cd   : > { %3066 = vmatpush.bf16.msra.mxu2 %v7332_v45  ;;  %v9330_v45 = vld [vmem:[%s14479_s4 + $0x64] sm:$0xf]  ;;  %v7784_v0 = vor.u32 %v9402_v46, %v7781_v47  ;;  %v7892_v63 = vor.u32 %v9431_v49, %v7891_v48  ;;  %v9475_v47 = vld [vmem:[%s14479_s4 + $0x4e4] sm:$0xf0]  ;;  %v7925_v49 = vld [vmem:[%s14479_s4 + $0x3c8] sm:$0xf0] }
 0x1ce   : > { %4038 = vmatpush.bf16.msrb.mxu1 %v7764_v21  ;;  %v2910_v21 = vmul.f32 0.01, %v2643_v12  ;;  %v7432_v57 = vor.u32 %v9330_v45, %v7429_v44  ;;  %v8131_v45 = vld [vmem:[%s14479_s4 + $0x4e0] sm:$0xf]  ;;  %v9438_v48 = vld [vmem:[%s14479_s4 + $0x3c4] sm:$0xf] }
 0x1d0   : > { %4059 = vmatpush.bf16.msrb.mxu3 %v7932_v25  ;;  %3497 = vmatpush.bf16.msrb.mxu0 %v7396_v51  ;;  %v9404_v25 = vld [vmem:[%s14479_s4 + $0x2b4] sm:$0xf]  ;;  %v2930_v27 = vsel %vm2890_vm13, %v2643_v12, %v2910_v21  ;;  %v7556_v51 = vor.u32 %v9363_v10, %v7555_v40  ;;  %v7776_v21 = vor.u32 %v9400_v8, %v7773_v59  ;;  %v7405_v40 = vld [vmem:[%s14479_s4 + $0x38] sm:$0xf0] }
 0x1d1   : > { %4039 = vmatmul.bf16.vlgmr.msrb.gmra.mxu1 %v12444_v2  ;;  %3067 = vmatpush.bf16.msra.mxu2 %v7324_v13  ;;  %v12522_v32 = vpack.c.bf16 %v2931_v61, %v2930_v27  ;;  %v7548_v13 = vor.u32 %v9361_v62, %v7547_v60  ;;  %v7765_v61 = vld [vmem:[%s14479_s4 + $0x288] sm:$0xf0]  ;;  %v8139_v27 = vld [vmem:[%s14479_s4 + $0x4f0] sm:$0xf]  ;;  %v2707_v10 = vpop.f32.mrf.mxu0  ;;  %v732_v60 = vperm.slane %v12153_v39, 4 }
 0x1d2   : > { %4083 = vmatpush.bf16.msra.mxu1 %v7824_v53  ;;  %v7437_v53 = vld [vmem:[%s14479_s4 + $0x78] sm:$0xf0]  ;;  %v2800_v12 = vpop.f32.mrf.mxu3  ;;  %v2708_v44 = vadd.f32 %v2707_v10, %v733_v23  ;;  %v9322_v62 = vld [vmem:[%s14479_s4 + $0x24] sm:$0xf]  ;;  %v8107_v10 = vld [vmem:[%s14479_s4 + $0x4b0] sm:$0xf] }
 0x1d3   : > { %v7440_v37 = vor.u32 %v9332_v24, %v7437_v53  ;;  %v12599_v24 = vpack.c.b16 %v3689_v4, %v3689_v4  ;;  %v9473_v4 = vld [vmem:[%s14479_s4 + $0x4d4] sm:$0xf0]  ;;  %v7917_v8 = vld [vmem:[%s14479_s4 + $0x3b8] sm:$0xf0] }
 0x1d4   : > { %4060 = vmatpush.bf16.msrb.mxu3 %v7924_v43  ;;  %3498 = vmatpush.bf16.msrb.mxu0 %v7388_v18  ;;  %v7792_v43 = vor.u32 %v9404_v25, %v7789_v29  ;;  %v7539_v18 = vld [vmem:[%s14479_s4 + $0x140] sm:$0xf]  ;;  %v9398_v25 = vld [vmem:[%s14479_s4 + $0x284] sm:$0xf]  ;;  %v9477_v29 = vld [vmem:[%s14479_s4 + $0x4f4] sm:$0xf0] }
 0x1d5   : > { %3068 = vmatpush.bf16.msra.mxu2 %v7316_v55  ;;  %v7540_v55 = vor.u32 %v9359_v20, %v7539_v18  ;;  %v8115_v18 = vld [vmem:[%s14479_s4 + $0x4c0] sm:$0xf]  ;;  %v9471_v20 = vld [vmem:[%s14479_s4 + $0x4c4] sm:$0xf0] }
 0x1d6   : > { %4084 = vmatpush.bf16.msra.mxu1 %v7816_v14  ;;  %v12531_v14 = vpop.f32.mrf.mxu1 }
 0x1d8   : > { %4061 = vmatpush.bf16.msrb.mxu3 %v7916_v3  ;;  %3499 = vmatpush.bf16.msrb.mxu0 %v7380_v34  ;;  %v7421_v3 = vld [vmem:[%s14479_s4 + $0x58] sm:$0xf0]  ;;  %v7531_v34 = vld [vmem:[%s14479_s4 + $0x130] sm:$0xf]  ;;  %v2681_v59 = vpop.f32.mrf.mxu2 }
 0x1d9   : > { %3518 = vmatpush.bf16.msrb.mxu2 %v7564_v36  ;;  %v9357_v36 = vld [vmem:[%s14479_s4 + $0x134] sm:$0xf0] }
 0x1da   : > { %4085 = vmatpush.bf16.msra.mxu1 %v7808_v1  ;;  %v9328_v1 = vld [vmem:[%s14479_s4 + $0x54] sm:$0xf]  ;;  %3069 = vmatmul.bf16.vlgmr.msra.gmra.mxu2 %v10671_v41  ;;  %v7941_v41 = vld [vmem:[%s14479_s4 + $0x3e8] sm:$0xf0]  ;;  %v7532_v46 = vor.u32 %v9357_v36, %v7531_v34  ;;  %v7565_v34 = vld [vmem:[%s14479_s4 + $0x178] sm:$0xf0]  ;;  %v8116_v36 = vor.u32 %v9471_v20, %v8115_v18 }
 0x1db   : > { %3500 = vmatmul.bf16.vlgmr.msrb.gmra.mxu0 %v12557_v56  ;;  %v7424_v17 = vor.u32 %v9328_v1, %v7421_v3  ;;  %v7944_v53 = vor.u32 %v9442_v16, %v7941_v41  ;;  %v7928_v1 = vor.u32 %v9438_v48, %v7925_v49  ;;  %v8123_v3 = vld [vmem:[%s14479_s4 + $0x4d0] sm:$0xf]  ;;  %v9353_v16 = vld [vmem:[%s14479_s4 + $0x114] sm:$0xf0]  ;;  %v9320_v41 = vld [vmem:[%s14479_s4 + $0x14] sm:$0xf] }
 0x1dc   : > { %4062 = vmatpush.bf16.msrb.mxu3 %v7908_v50  ;;  %3544 = vmatpush.bf16.msra.mxu0 %v7440_v37  ;;  %v7413_v50 = vld [vmem:[%s14479_s4 + $0x48] sm:$0xf0]  ;;  %v7768_v37 = vor.u32 %v9398_v25, %v7765_v61  ;;  %v7549_v18 = vld [vmem:[%s14479_s4 + $0x158] sm:$0xf0] }
 0x1dd   : > { %3519 = vmatpush.bf16.msrb.mxu2 %v7556_v51  ;;  %v7408_v51 = vor.u32 %v9324_v38, %v7405_v40  ;;  %v7755_v38 = vld [vmem:[%s14479_s4 + $0x270] sm:$0xf]  ;;  %v9397_v40 = vld [vmem:[%s14479_s4 + $0x274] sm:$0xf0] }
 0x1de   : > { %4086 = vmatpush.bf16.msra.mxu1 %v7800_v19  ;;  %v2826_v28 = vpop.f32.mrf.mxu1  ;;  %v9326_v19 = vld [vmem:[%s14479_s4 + $0x44] sm:$0xf] }
 0x1df   : > { %v7416_v33 = vor.u32 %v9326_v19, %v7413_v50  ;;  %v2709_v28 = vpop.f32.mrf.mxu0  ;;  %v9434_v19 = vld [vmem:[%s14479_s4 + $0x3a4] sm:$0xf]  ;;  %v7909_v50 = vld [vmem:[%s14479_s4 + $0x3a8] sm:$0xf0] }
 0x1e0   : > { %4063 = vmatpush.bf16.msrb.mxu3 %v7900_v7  ;;  %3545 = vmatpush.bf16.msra.mxu0 %v7432_v57  ;;  %v7936_v7 = vor.u32 %v9440_v30, %v7933_v31  ;;  %v2721_v57 = vadd.f32 %v12257_v42, %v2708_v44  ;;  %v7524_v42 = vor.u32 %v9355_v15, %v7523_v52  ;;  %v7381_v31 = vld [vmem:[%s14479_s4 + $0x8] sm:$0xf0]  ;;  %v9469_v44 = vld [vmem:[%s14479_s4 + $0x4b4] sm:$0xf0] }
 0x1e1   : > { %3520 = vmatpush.bf16.msrb.mxu2 %v7548_v13  ;;  %v7515_v13 = vld [vmem:[%s14479_s4 + $0x110] sm:$0xf] }
 0x1e2   : > { %4087 = vmatpush.bf16.msra.mxu1 %v7792_v43  ;;  %v8140_v43 = vor.u32 %v9477_v29, %v8139_v27  ;;  %v2913_v25 = vmul.f32 0.01, %v2721_v57  ;;  %v7516_v27 = vor.u32 %v9353_v16, %v7515_v13  ;;  %v9318_v29 = vld [vmem:[%s14479_s4 + $0x4] sm:$0xf]  ;;  %vm2893_vm14 = vcmp.gt.f32.partialorder %v2721_v57, 0.0 }
 0x1e3   : > { %v7384_v52 = vor.u32 %v9318_v29, %v7381_v31  ;;  %v8267_v13 = vld [vmem:[%s14479_s4 + $0x5f0] sm:$0xf]  ;;  %v9509_v16 = vld [vmem:[%s14479_s4 + $0x5f4] sm:$0xf0]  ;;  %v9358_v29 = vld [vmem:[%s14479_s4 + $0x144] sm:$0xf] }
 0x1e4   : > { %4064 = vmatpush.bf16.msrb.mxu3 %v7892_v63  ;;  %3546 = vmatpush.bf16.msra.mxu0 %v7424_v17  ;;  %v8132_v63 = vor.u32 %v9475_v47, %v8131_v45  ;;  %v2682_v17 = vadd.f32 %v2681_v59, %v732_v60  ;;  %v7901_v47 = vld [vmem:[%s14479_s4 + $0x398] sm:$0xf0]  ;;  %v3162_v60 = vunpack.c.l.b16 %v11767_v58  ;;  %v9395_v58 = vld [vmem:[%s14479_s4 + $0x264] sm:$0xf0]  ;;  %v7893_v59 = vld [vmem:[%s14479_s4 + $0x388] sm:$0xf0] }
 0x1e5   : > { %3521 = vmatpush.bf16.msrb.mxu2 %v7540_v55  ;;  %v9351_v55 = vld [vmem:[%s14479_s4 + $0x104] sm:$0xf0] }
 0x1e6   : > { %4088 = vmatpush.bf16.msra.mxu1 %v7784_v0  ;;  %v7397_v0 = vld [vmem:[%s14479_s4 + $0x28] sm:$0xf0]  ;;  %v2695_v61 = vadd.f32 %v12245_v35, %v2682_v17  ;;  %v9364_v35 = vld [vmem:[%s14479_s4 + $0x174] sm:$0xf] }
 0x1e7   : > { %4065 = vmatmul.bf16.vlgmr.msrb.gmra.mxu3 %v12599_v24  ;;  %v7400_v12 = vor.u32 %v9322_v62, %v7397_v0  ;;  %v7568_v15 = vor.u32 %v9364_v35, %v7565_v34  ;;  %v9362_v62 = vld [vmem:[%s14479_s4 + $0x164] sm:$0xf]  ;;  %v7557_v0 = vld [vmem:[%s14479_s4 + $0x168] sm:$0xf0]  ;;  %v7731_v34 = vld [vmem:[%s14479_s4 + $0x240] sm:$0xf] }
 0x1e8   : > { %4109 = vmatpush.bf16.msra.mxu3 %v7952_v5  ;;  %3547 = vmatpush.bf16.msra.mxu0 %v7416_v33  ;;  %v9436_v5 = vld [vmem:[%s14479_s4 + $0x3b4] sm:$0xf]  ;;  %vm2892_vm15 = vcmp.gt.f32.partialorder %v2695_v61, 0.0  ;;  %v2912_v33 = vmul.f32 0.01, %v2695_v61 }
 0x1e9   : > { %3522 = vmatpush.bf16.msrb.mxu2 %v7532_v46  ;;  %v7920_v23 = vor.u32 %v9436_v5, %v7917_v8  ;;  %v9432_v46 = vld [vmem:[%s14479_s4 + $0x394] sm:$0xf]  ;;  %v9467_v5 = vld [vmem:[%s14479_s4 + $0x4a4] sm:$0xf0]  ;;  %v9430_v8 = vld [vmem:[%s14479_s4 + $0x384] sm:$0xf] }
 0x1ea   : > { %4089 = vmatpush.bf16.msra.mxu1 %v7776_v21  ;;  %v8124_v21 = vor.u32 %v9473_v4, %v8123_v3  ;;  %v12732_v48 = vpop.f32.mrf.mxu3  ;;  %v7904_v3 = vor.u32 %v9432_v46, %v7901_v47  ;;  %v8099_v4 = vld [vmem:[%s14479_s4 + $0x4a0] sm:$0xf]  ;;  %v7896_v28 = vor.u32 %v9430_v8, %v7893_v59  ;;  %v9356_v46 = vld [vmem:[%s14479_s4 + $0x134] sm:$0xf]  ;;  %v7533_v47 = vld [vmem:[%s14479_s4 + $0x138] sm:$0xf0] }
 0x1eb   : > { %v8100_v20 = vor.u32 %v9467_v5, %v8099_v4  ;;  %v9503_v4 = vld [vmem:[%s14479_s4 + $0x5c4] sm:$0xf0]  ;;  %v9354_v8 = vld [vmem:[%s14479_s4 + $0x124] sm:$0xf]  ;;  %v7525_v59 = vld [vmem:[%s14479_s4 + $0x128] sm:$0xf0] }
 0x1ec   : > { %4110 = vmatpush.bf16.msra.mxu3 %v7944_v53  ;;  %3548 = vmatpush.bf16.msra.mxu0 %v7408_v51  ;;  %v7507_v53 = vld [vmem:[%s14479_s4 + $0x100] sm:$0xf]  ;;  %v2683_v51 = vpop.f32.mrf.mxu2 }
 0x1ed   : > { %3523 = vmatpush.bf16.msrb.mxu2 %v7524_v42  ;;  %v7508_v45 = vor.u32 %v9351_v55, %v7507_v53  ;;  %v7747_v42 = vld [vmem:[%s14479_s4 + $0x260] sm:$0xf]  ;;  %v9465_v53 = vld [vmem:[%s14479_s4 + $0x494] sm:$0xf0] }
 0x1ee   : > { %4090 = vmatpush.bf16.msra.mxu1 %v7768_v37  ;;  %v7912_v37 = vor.u32 %v9434_v19, %v7909_v50  ;;  %v7748_v17 = vor.u32 %v9395_v58, %v7747_v42  ;;  %v8268_v19 = vor.u32 %v9509_v16, %v8267_v13  ;;  %v8091_v50 = vld [vmem:[%s14479_s4 + $0x490] sm:$0xf]  ;;  %v8133_v42 = vld [vmem:[%s14479_s4 + $0x4e8] sm:$0xf0]  ;;  %v8243_v58 = vld [vmem:[%s14479_s4 + $0x5c0] sm:$0xf] }
 0x1ef   : > { %v8092_v35 = vor.u32 %v9465_v53, %v8091_v50  ;;  %v9747_v13 = vld [vmem:[%s14478_s3 + $0x8] sm:$0xff]  ;;  %v9501_v50 = vld [vmem:[%s14479_s4 + $0x5b4] sm:$0xf0] }
 0x1f0   : > { %4111 = vmatpush.bf16.msra.mxu3 %v7936_v7  ;;  %3549 = vmatpush.bf16.msra.mxu0 %v7400_v12  ;;  %v2932_v7 = vsel %vm2892_vm15, %v2695_v61, %v2912_v33  ;;  %v7560_v12 = vor.u32 %v9362_v62, %v7557_v0  ;;  %v735_v33 = vperm.slane %v12153_v39, 7  ;;  %v9476_v39 = vld [vmem:[%s14479_s4 + $0x4f4] sm:$0xf]  ;;  %v9474_v0 = vld [vmem:[%s14479_s4 + $0x4e4] sm:$0xf]  ;;  %v734_v16 = vperm.slane %v9747_v13, 6 }
 0x1f1   : > { %4091 = vmatmul.bf16.vlgmr.msra.gmra.mxu1 %v12444_v2  ;;  %v7389_v2 = vld [vmem:[%s14479_s4 + $0x18] sm:$0xf0]  ;;  %3524 = vmatpush.bf16.msrb.mxu2 %v7516_v27  ;;  %v8259_v27 = vld [vmem:[%s14479_s4 + $0x5e0] sm:$0xf]  ;;  %v3686_v13 = vunpack.c.l.b16 %v11883_v9  ;;  %v7749_v9 = vld [vmem:[%s14479_s4 + $0x268] sm:$0xf0] }
 0x1f2   : > { %4557 = vmatpush.bf16.msrb.mxu1 %v8140_v43  ;;  %v7392_v30 = vor.u32 %v9320_v41, %v7389_v2  ;;  %v2933_v43 = vsel %vm2893_vm14, %v2721_v57, %v2913_v25  ;;  %v7756_v57 = vor.u32 %v9397_v40, %v7755_v38  ;;  %v12769_v41 = vpack.c.b16 %v3162_v60, %v3162_v60  ;;  %v9360_v2 = vld [vmem:[%s14479_s4 + $0x154] sm:$0xf]  ;;  %v2852_v25 = vpop.f32.mrf.mxu3  ;;  %v8083_v38 = vld [vmem:[%s14479_s4 + $0x480] sm:$0xf]  ;;  %v9463_v40 = vld [vmem:[%s14479_s4 + $0x484] sm:$0xf0] }
 0x1f3   : > { %v12734_v49 = vpack.c.bf16 %v2933_v43, %v2932_v7  ;;  %v7552_v61 = vor.u32 %v9360_v2, %v7549_v18  ;;  %v8141_v43 = vld [vmem:[%s14479_s4 + $0x4f8] sm:$0xf0]  ;;  %v8251_v7 = vld [vmem:[%s14479_s4 + $0x5d0] sm:$0xf]  ;;  %v8084_v51 = vor.u32 %v9463_v40, %v8083_v38  ;;  %v9387_v2 = vld [vmem:[%s14479_s4 + $0x224] sm:$0xf0] }
 0x1f4   : > { %4112 = vmatpush.bf16.msra.mxu3 %v7928_v1  ;;  %3550 = vmatpush.bf16.msra.mxu0 %v7392_v30  ;;  %v8108_v1 = vor.u32 %v9469_v44, %v8107_v10  ;;  %v7541_v30 = vld [vmem:[%s14479_s4 + $0x148] sm:$0xf0]  ;;  %v8144_v60 = vor.u32 %v9476_v39, %v8141_v43  ;;  %v9350_v38 = vld [vmem:[%s14479_s4 + $0x104] sm:$0xf] }
 0x1f5   : > { %3525 = vmatpush.bf16.msrb.mxu2 %v7508_v45  ;;  %v7544_v10 = vor.u32 %v9358_v29, %v7541_v30  ;;  %v9505_v45 = vld [vmem:[%s14479_s4 + $0x5d4] sm:$0xf0]  ;;  %v9470_v30 = vld [vmem:[%s14479_s4 + $0x4c4] sm:$0xf]  ;;  %v7509_v43 = vld [vmem:[%s14479_s4 + $0x108] sm:$0xf0] }
 0x1f6   : > { %4558 = vmatpush.bf16.msrb.mxu1 %v8132_v63  ;;  %v12743_v63 = vpop.f32.mrf.mxu1  ;;  %v8252_v62 = vor.u32 %v9505_v45, %v8251_v7  ;;  %v9385_v29 = vld [vmem:[%s14479_s4 + $0x214] sm:$0xf0]  ;;  %v7699_v7 = vld [vmem:[%s14479_s4 + $0x200] sm:$0xf] }
 0x1f8   : > { %4113 = vmatpush.bf16.msra.mxu3 %v7920_v23  ;;  %3551 = vmatpush.bf16.msra.mxu0 %v7384_v52  ;;  %v9393_v23 = vld [vmem:[%s14479_s4 + $0x254] sm:$0xf0]  ;;  %v7723_v52 = vld [vmem:[%s14479_s4 + $0x230] sm:$0xf] }
 0x1f9   : > { %3570 = vmatpush.bf16.msra.mxu2 %v7568_v15  ;;  %v9389_v15 = vld [vmem:[%s14479_s4 + $0x234] sm:$0xf0] }
 0x1fa   : > { %4559 = vmatpush.bf16.msrb.mxu1 %v8124_v21  ;;  %v7739_v21 = vld [vmem:[%s14479_s4 + $0x250] sm:$0xf]  ;;  %3526 = vmatmul.bf16.vlgmr.msrb.gmra.mxu2 %v12769_v41  ;;  %v7724_v5 = vor.u32 %v9389_v15, %v7723_v52  ;;  %v2733_v53 = vpop.f32.mrf.mxu2  ;;  %v9396_v15 = vld [vmem:[%s14479_s4 + $0x274] sm:$0xf] }
 0x1fb   : > { %3552 = vmatmul.bf16.vlgmr.msra.gmra.mxu0 %v12557_v56  ;;  %v9507_v56 = vld [vmem:[%s14479_s4 + $0x5e4] sm:$0xf0]  ;;  %v7740_v55 = vor.u32 %v9393_v23, %v7739_v21  ;;  %v7528_v21 = vor.u32 %v9354_v8, %v7525_v59  ;;  %v8125_v23 = vld [vmem:[%s14479_s4 + $0x4d8] sm:$0xf0] }
 0x1fc   : > { %4114 = vmatpush.bf16.msra.mxu3 %v7912_v37  ;;  %4018 = vmatpush.bf16.msrb.mxu0 %v7756_v57  ;;  %v8260_v37 = vor.u32 %v9507_v56, %v8259_v27  ;;  %v2759_v57 = vpop.f32.mrf.mxu0  ;;  %v7517_v27 = vld [vmem:[%s14479_s4 + $0x118] sm:$0xf0]  ;;  %v7707_v56 = vld [vmem:[%s14479_s4 + $0x210] sm:$0xf] }
 0x1fd   : > { %3571 = vmatpush.bf16.msra.mxu2 %v7560_v12  ;;  %v7708_v45 = vor.u32 %v9385_v29, %v7707_v56  ;;  %v9425_v29 = vld [vmem:[%s14479_s4 + $0x354] sm:$0xf0] }
 0x1fe   : > { %4560 = vmatpush.bf16.msrb.mxu1 %v8116_v36  ;;  %v2878_v31 = vpop.f32.mrf.mxu1  ;;  %v9391_v36 = vld [vmem:[%s14479_s4 + $0x244] sm:$0xf0] }
 0x1ff   : > { %v7732_v44 = vor.u32 %v9391_v36, %v7731_v34  ;;  %v8117_v31 = vld [vmem:[%s14479_s4 + $0x4c8] sm:$0xf0]  ;;  %v8227_v36 = vld [vmem:[%s14479_s4 + $0x5a0] sm:$0xf] }
 0x200   : > { %4115 = vmatpush.bf16.msra.mxu3 %v7904_v3  ;;  %4019 = vmatpush.bf16.msrb.mxu0 %v7748_v17  ;;  %v7536_v3 = vor.u32 %v9356_v46, %v7533_v47  ;;  %v7715_v17 = vld [vmem:[%s14479_s4 + $0x220] sm:$0xf]  ;;  %v9429_v47 = vld [vmem:[%s14479_s4 + $0x374] sm:$0xf0] }
 0x201   : > { %3572 = vmatpush.bf16.msra.mxu2 %v7552_v61  ;;  %v7716_v25 = vor.u32 %v9387_v2, %v7715_v17  ;;  %v9352_v61 = vld [vmem:[%s14479_s4 + $0x114] sm:$0xf]  ;;  %v7875_v17 = vld [vmem:[%s14479_s4 + $0x360] sm:$0xf]  ;;  %v9427_v2 = vld [vmem:[%s14479_s4 + $0x364] sm:$0xf0] }
 0x202   : > { %4561 = vmatpush.bf16.msrb.mxu1 %v8108_v1  ;;  %v2760_v1 = vadd.f32 %v2759_v57, %v735_v33  ;;  %v9468_v57 = vld [vmem:[%s14479_s4 + $0x4b4] sm:$0xf]  ;;  %v2735_v8 = vpop.f32.mrf.mxu2 }
 0x204   : > { %4116 = vmatpush.bf16.msra.mxu3 %v7896_v28  ;;  %4020 = vmatpush.bf16.msrb.mxu0 %v7740_v55  ;;  %v2773_v12 = vadd.f32 %v12371_v54, %v2760_v1  ;;  %v8244_v54 = vor.u32 %v9503_v4, %v8243_v58  ;;  %v9472_v28 = vld [vmem:[%s14479_s4 + $0x4d4] sm:$0xf]  ;;  %v2734_v55 = vadd.f32 %v2733_v53, %v734_v16  ;;  %v9497_v58 = vld [vmem:[%s14479_s4 + $0x594] sm:$0xf0] }
 0x205   : > { %3573 = vmatpush.bf16.msra.mxu2 %v7544_v10  ;;  %v8128_v33 = vor.u32 %v9472_v28, %v8125_v23  ;;  %v7520_v10 = vor.u32 %v9352_v61, %v7517_v27  ;;  %v7512_v1 = vor.u32 %v9350_v38, %v7509_v43  ;;  %v9394_v28 = vld [vmem:[%s14479_s4 + $0x264] sm:$0xf]  ;;  %v8101_v23 = vld [vmem:[%s14479_s4 + $0x4a8] sm:$0xf0]  ;;  %v7876_v53 = vor.u32 %v9427_v2, %v7875_v17  ;;  %v8269_v61 = vld [vmem:[%s14479_s4 + $0x5f8] sm:$0xf0] }
 0x206   : > { %4562 = vmatpush.bf16.msrb.mxu1 %v8100_v20  ;;  %v8136_v20 = vor.u32 %v9474_v0, %v8133_v42  ;;  %v2915_v40 = vmul.f32 0.01, %v2773_v12  ;;  %v2747_v39 = vadd.f32 %v12363_v26, %v2734_v55  ;;  %vm2895_vm0 = vcmp.gt.f32.partialorder %v2773_v12, 0.0  ;;  %v7883_v26 = vld [vmem:[%s14479_s4 + $0x370] sm:$0xf] }
 0x207   : > { %4117 = vmatmul.bf16.vlgmr.msra.gmra.mxu3 %v12599_v24  ;;  %v4213_v24 = vunpack.c.h.b16 %v12311_v22  ;;  %v8219_v42 = vld [vmem:[%s14479_s4 + $0x590] sm:$0xf]  ;;  %v12983_v27 = vpack.c.b16 %v3686_v13, %v3686_v13  ;;  %v7752_v56 = vor.u32 %v9394_v28, %v7749_v9  ;;  %v9464_v38 = vld [vmem:[%s14479_s4 + $0x494] sm:$0xf]  ;;  %v9506_v43 = vld [vmem:[%s14479_s4 + $0x5e4] sm:$0xf] }
 0x208   : > { %4583 = vmatpush.bf16.msrb.mxu3 %v8268_v19  ;;  %4021 = vmatpush.bf16.msrb.mxu0 %v7732_v44  ;;  %v8235_v19 = vld [vmem:[%s14479_s4 + $0x5b0] sm:$0xf]  ;;  %v9383_v44 = vld [vmem:[%s14479_s4 + $0x204] sm:$0xf0]  ;;  %vm2894_vm1 = vcmp.gt.f32.partialorder %v2747_v39, 0.0 }
 0x209   : > { %v12870_v18 = vpack.c.b16 %v4213_v24, %v4213_v24  ;;  %3574 = vmatpush.bf16.msra.mxu2 %v7536_v3  ;;  %v8236_v34 = vor.u32 %v9501_v50, %v8235_v19  ;;  %v2914_v46 = vmul.f32 0.01, %v2747_v39  ;;  %v7757_v24 = vld [vmem:[%s14479_s4 + $0x278] sm:$0xf0]  ;;  %v7700_v59 = vor.u32 %v9383_v44, %v7699_v7  ;;  %v8211_v19 = vld [vmem:[%s14479_s4 + $0x580] sm:$0xf] }
 0x20a   : > { %4563 = vmatpush.bf16.msrb.mxu1 %v8092_v35  ;;  %v2761_v35 = vpop.f32.mrf.mxu0  ;;  %v12937_v0 = vpop.f32.mrf.mxu3  ;;  %v8109_v3 = vld [vmem:[%s14479_s4 + $0x4b8] sm:$0xf0]  ;;  %v7760_v16 = vor.u32 %v9396_v15, %v7757_v24  ;;  %v9495_v50 = vld [vmem:[%s14479_s4 + $0x584] sm:$0xf0]  ;;  %v7867_v55 = vld [vmem:[%s14479_s4 + $0x350] sm:$0xf] }
 0x20b   : > { %v9392_v35 = vld [vmem:[%s14479_s4 + $0x254] sm:$0xf]  ;;  %v9423_v44 = vld [vmem:[%s14479_s4 + $0x344] sm:$0xf0]  ;;  %v9462_v24 = vld [vmem:[%s14479_s4 + $0x484] sm:$0xf] }
 0x20c   : > { %4584 = vmatpush.bf16.msrb.mxu3 %v8260_v37  ;;  %4022 = vmatpush.bf16.msrb.mxu0 %v7724_v5  ;;  %v9499_v37 = vld [vmem:[%s14479_s4 + $0x5a4] sm:$0xf0]  ;;  %v7725_v17 = vld [vmem:[%s14479_s4 + $0x238] sm:$0xf0] }
 0x20d   : > { %3575 = vmatpush.bf16.msra.mxu2 %v7528_v21  ;;  %v8228_v52 = vor.u32 %v9499_v37, %v8227_v36  ;;  %v9466_v21 = vld [vmem:[%s14479_s4 + $0x4a4] sm:$0xf] }
 0x20e   : > { %4564 = vmatpush.bf16.msrb.mxu1 %v8084_v51  ;;  %v8120_v51 = vor.u32 %v9470_v30, %v8117_v31  ;;  %v12950_v5 = vpop.f32.mrf.mxu1  ;;  %v8104_v30 = vor.u32 %v9466_v21, %v8101_v23  ;;  %v8212_v31 = vor.u32 %v9495_v50, %v8211_v19  ;;  %v9539_v21 = vld [vmem:[%s14479_s4 + $0x6e4] sm:$0xf0]  ;;  %v9502_v23 = vld [vmem:[%s14479_s4 + $0x5c4] sm:$0xf]  ;;  %v8245_v19 = vld [vmem:[%s14479_s4 + $0x5c8] sm:$0xf0] }
 0x210   : > { %4585 = vmatpush.bf16.msrb.mxu3 %v8252_v62  ;;  %4023 = vmatpush.bf16.msrb.mxu0 %v7716_v25  ;;  %v2934_v62 = vsel %vm2894_vm1, %v2747_v39, %v2914_v46  ;;  %v9508_v25 = vld [vmem:[%s14479_s4 + $0x5f4] sm:$0xf]  ;;  %v13021_v46 = vld [vmem:[%s14478_s3 + $0x10] sm:$0xf] }
 0x211   : > { %4565 = vmatmul.bf16.vlgmr.msrb.gmra.mxu1 %v12870_v18  ;;  %3576 = vmatpush.bf16.msra.mxu2 %v7520_v10  ;;  %v8272_v37 = vor.u32 %v9508_v25, %v8269_v61  ;;  %v7868_v10 = vor.u32 %v9425_v29, %v7867_v55  ;;  %v7843_v25 = vld [vmem:[%s14479_s4 + $0x320] sm:$0xf]  ;;  %v9419_v61 = vld [vmem:[%s14479_s4 + $0x324] sm:$0xf0]  ;;  %v9386_v55 = vld [vmem:[%s14479_s4 + $0x224] sm:$0xf] }
 0x212   : > { %4609 = vmatpush.bf16.msra.mxu1 %v8144_v60  ;;  %v2935_v60 = vsel %vm2895_vm0, %v2773_v12, %v2915_v40  ;;  %v7884_v12 = vor.u32 %v9429_v47, %v7883_v26  ;;  %v3085_v36 = vpop.f32.mrf.mxu3  ;;  %v8093_v40 = vld [vmem:[%s14479_s4 + $0x498] sm:$0xf0]  ;;  %v9390_v47 = vld [vmem:[%s14479_s4 + $0x244] sm:$0xf]  ;;  %v7717_v29 = vld [vmem:[%s14479_s4 + $0x228] sm:$0xf0] }
 0x213   : > { %v12948_v4 = vpack.c.bf16 %v2935_v60, %v2934_v62  ;;  %v8096_v26 = vor.u32 %v9464_v38, %v8093_v40  ;;  %v8459_v60 = vld [vmem:[%s14479_s4 + $0x6f0] sm:$0xf]  ;;  %v2811_v28 = vpop.f32.mrf.mxu0  ;;  %v9537_v36 = vld [vmem:[%s14479_s4 + $0x6d4] sm:$0xf0]  ;;  %v8237_v38 = vld [vmem:[%s14479_s4 + $0x5b8] sm:$0xf0] }
 0x214   : > { %4586 = vmatpush.bf16.msrb.mxu3 %v8244_v54  ;;  %4024 = vmatpush.bf16.msrb.mxu0 %v7708_v45  ;;  %v8220_v54 = vor.u32 %v9497_v58, %v8219_v42  ;;  %v7859_v45 = vld [vmem:[%s14479_s4 + $0x340] sm:$0xf]  ;;  %v8253_v42 = vld [vmem:[%s14479_s4 + $0x5d8] sm:$0xf0]  ;;  %v737_v58 = vperm.slane %v13021_v46, 1 }
 0x215   : > { %3577 = vmatpush.bf16.msra.mxu2 %v7512_v1  ;;  %v7860_v62 = vor.u32 %v9423_v44, %v7859_v45  ;;  %v9541_v1 = vld [vmem:[%s14479_s4 + $0x6f4] sm:$0xf0]  ;;  %v9535_v45 = vld [vmem:[%s14479_s4 + $0x6c4] sm:$0xf0] }
 0x216   : > { %4610 = vmatpush.bf16.msra.mxu1 %v8136_v20  ;;  %v8112_v20 = vor.u32 %v9468_v57, %v8109_v3  ;;  %v3516_v39 = vpop.f32.mrf.mxu1  ;;  %v8085_v57 = vld [vmem:[%s14479_s4 + $0x488] sm:$0xf0]  ;;  %v9504_v3 = vld [vmem:[%s14479_s4 + $0x5d4] sm:$0xf]  ;;  %v8460_v2 = vor.u32 %v9541_v1, %v8459_v60  ;;  %v2812_v50 = vadd.f32 %v2811_v28, %v737_v58  ;;  %v9415_v1 = vld [vmem:[%s14479_s4 + $0x304] sm:$0xf0] }
 0x217   : > { %v8088_v13 = vor.u32 %v9462_v24, %v8085_v57  ;;  %v7720_v39 = vor.u32 %v9386_v55, %v7717_v29  ;;  %v7701_v58 = vld [vmem:[%s14479_s4 + $0x208] sm:$0xf0] }
 0x218   : > { %4587 = vmatpush.bf16.msrb.mxu3 %v8236_v34  ;;  %4025 = vmatpush.bf16.msrb.mxu0 %v7700_v59  ;;  %v4215_v34 = vunpack.c.h.b16 %v12522_v32  ;;  %v7851_v59 = vld [vmem:[%s14479_s4 + $0x330] sm:$0xf] }
 0x219   : > { %4044 = vmatpush.bf16.msrb.mxu2 %v7884_v12  ;;  %v9421_v12 = vld [vmem:[%s14479_s4 + $0x334] sm:$0xf0] }
 0x21a   : > { %4611 = vmatpush.bf16.msra.mxu1 %v8128_v33  ;;  %v7741_v33 = vld [vmem:[%s14479_s4 + $0x258] sm:$0xf0]  ;;  %3578 = vmatmul.bf16.vlgmr.msra.gmra.mxu2 %v12769_v41  ;;  %v8261_v41 = vld [vmem:[%s14479_s4 + $0x5e8] sm:$0xf0]  ;;  %v7852_v9 = vor.u32 %v9421_v12, %v7851_v59  ;;  %v2785_v40 = vpop.f32.mrf.mxu2 }
 0x21b   : > { %4026 = vmatmul.bf16.vlgmr.msrb.gmra.mxu0 %v12983_v27  ;;  %v7744_v7 = vor.u32 %v9392_v35, %v7741_v33  ;;  %v8264_v15 = vor.u32 %v9506_v43, %v8261_v41  ;;  %v8443_v35 = vld [vmem:[%s14479_s4 + $0x6d0] sm:$0xf]  ;;  %v2825_v33 = vadd.f32 %v12531_v14, %v2812_v50  ;;  %v9384_v43 = vld [vmem:[%s14479_s4 + $0x214] sm:$0xf]  ;;  %v2813_v60 = vpop.f32.mrf.mxu0  ;;  %v7885_v59 = vld [vmem:[%s14479_s4 + $0x378] sm:$0xf0] }
 0x21c   : > { %4588 = vmatpush.bf16.msrb.mxu3 %v8228_v52  ;;  %4070 = vmatpush.bf16.msra.mxu0 %v7760_v16  ;;  %v13029_v52 = vpack.c.b16 %v4215_v34, %v4215_v34  ;;  %v9388_v16 = vld [vmem:[%s14479_s4 + $0x234] sm:$0xf]  ;;  %v7844_v34 = vor.u32 %v9419_v61, %v7843_v25  ;;  %v7835_v14 = vld [vmem:[%s14479_s4 + $0x310] sm:$0xf]  ;;  %v8444_v44 = vor.u32 %v9537_v36, %v8443_v35  ;;  %v8419_v36 = vld [vmem:[%s14479_s4 + $0x6a0] sm:$0xf] }
 0x21d   : > { %4045 = vmatpush.bf16.msrb.mxu2 %v7876_v53  ;;  %v7728_v53 = vor.u32 %v9388_v16, %v7725_v17  ;;  %v2917_v24 = vmul.f32 0.01, %v2825_v33  ;;  %vm2897_vm2 = vcmp.gt.f32.partialorder %v2825_v33, 0.0  ;;  %v8075_v16 = vld [vmem:[%s14479_s4 + $0x470] sm:$0xf] }
 0x21e   : > { %4612 = vmatpush.bf16.msra.mxu1 %v8120_v51  ;;  %v7733_v51 = vld [vmem:[%s14479_s4 + $0x248] sm:$0xf0]  ;;  %v9461_v17 = vld [vmem:[%s14479_s4 + $0x474] sm:$0xf0] }
 0x21f   : > { %v7736_v8 = vor.u32 %v9390_v47, %v7733_v51  ;;  %v9498_v47 = vld [vmem:[%s14479_s4 + $0x5a4] sm:$0xf]  ;;  %v8229_v51 = vld [vmem:[%s14479_s4 + $0x5a8] sm:$0xf0]  ;;  %v8076_v29 = vor.u32 %v9461_v17, %v8075_v16  ;;  %v9527_v16 = vld [vmem:[%s14479_s4 + $0x684] sm:$0xf0] }
 0x220   : > { %4589 = vmatpush.bf16.msrb.mxu3 %v8220_v54  ;;  %4071 = vmatpush.bf16.msra.mxu0 %v7752_v56  ;;  %v8451_v54 = vld [vmem:[%s14479_s4 + $0x6e0] sm:$0xf]  ;;  %v736_v56 = vperm.slane %v13021_v46, 0  ;;  %v9540_v17 = vld [vmem:[%s14479_s4 + $0x6f4] sm:$0xf] }
 0x221   : > { %4046 = vmatpush.bf16.msrb.mxu2 %v7868_v10  ;;  %v9417_v10 = vld [vmem:[%s14479_s4 + $0x314] sm:$0xf0] }
 0x222   : > { %4613 = vmatpush.bf16.msra.mxu1 %v8112_v20  ;;  %v8256_v20 = vor.u32 %v9504_v3, %v8253_v42  ;;  %v2786_v41 = vadd.f32 %v2785_v40, %v736_v56  ;;  %v9382_v3 = vld [vmem:[%s14479_s4 + $0x204] sm:$0xf]  ;;  %v3688_v56 = vunpack.c.l.b16 %v12093_v6  ;;  %v9459_v6 = vld [vmem:[%s14479_s4 + $0x464] sm:$0xf0]  ;;  %v8213_v40 = vld [vmem:[%s14479_s4 + $0x588] sm:$0xf0] }
 0x223   : > { %v7704_v25 = vor.u32 %v9382_v3, %v7701_v58  ;;  %v7861_v58 = vld [vmem:[%s14479_s4 + $0x348] sm:$0xf0] }
 0x224   : > { %4590 = vmatpush.bf16.msrb.mxu3 %v8212_v31  ;;  %4072 = vmatpush.bf16.msra.mxu0 %v7744_v7  ;;  %v8248_v31 = vor.u32 %v9502_v23, %v8245_v19  ;;  %v8435_v7 = vld [vmem:[%s14479_s4 + $0x6c0] sm:$0xf]  ;;  %v2799_v57 = vadd.f32 %v12520_v11, %v2786_v41  ;;  %v9428_v11 = vld [vmem:[%s14479_s4 + $0x374] sm:$0xf]  ;;  %v8221_v19 = vld [vmem:[%s14479_s4 + $0x598] sm:$0xf0] }
 0x225   : > { %4047 = vmatpush.bf16.msrb.mxu2 %v7860_v62  ;;  %v7836_v62 = vor.u32 %v9417_v10, %v7835_v14  ;;  %v8436_v12 = vor.u32 %v9535_v45, %v8435_v7  ;;  %v9496_v23 = vld [vmem:[%s14479_s4 + $0x594] sm:$0xf]  ;;  %v7888_v61 = vor.u32 %v9428_v11, %v7885_v59  ;;  %v8587_v14 = vld [vmem:[%s14479_s4 + $0x7f0] sm:$0xf]  ;;  %v9573_v10 = vld [vmem:[%s14479_s4 + $0x7f4] sm:$0xf0] }
 0x226   : > { %4614 = vmatpush.bf16.msra.mxu1 %v8104_v30  ;;  %v8452_v30 = vor.u32 %v9539_v21, %v8451_v54  ;;  %vm2896_vm3 = vcmp.gt.f32.partialorder %v2799_v57, 0.0  ;;  %v9533_v21 = vld [vmem:[%s14479_s4 + $0x6b4] sm:$0xf0]  ;;  %v7869_v7 = vld [vmem:[%s14479_s4 + $0x358] sm:$0xf0] }
 0x227   : > { %4591 = vmatmul.bf16.vlgmr.msrb.gmra.mxu3 %v13029_v52  ;;  %v9455_v59 = vld [vmem:[%s14479_s4 + $0x444] sm:$0xf0] }
 0x228   : > { %4635 = vmatpush.bf16.msra.mxu3 %v8272_v37  ;;  %4073 = vmatpush.bf16.msra.mxu0 %v7736_v8  ;;  %v9500_v37 = vld [vmem:[%s14479_s4 + $0x5b4] sm:$0xf]  ;;  %v2916_v8 = vmul.f32 0.01, %v2799_v57 }
 0x229   : > { %4048 = vmatpush.bf16.msrb.mxu2 %v7852_v9 }
 0x22a   : > { %4615 = vmatpush.bf16.msra.mxu1 %v8096_v26  ;;  %v8240_v26 = vor.u32 %v9500_v37, %v8237_v38  ;;  %v2936_v54 = vsel %vm2896_vm3, %v2799_v57, %v2916_v8  ;;  %v13154_v28 = vpop.f32.mrf.mxu3  ;;  %v9531_v37 = vld [vmem:[%s14479_s4 + $0x6a4] sm:$0xf0]  ;;  %v9494_v38 = vld [vmem:[%s14479_s4 + $0x584] sm:$0xf]  ;;  %v9529_v57 = vld [vmem:[%s14479_s4 + $0x694] sm:$0xf0] }
 0x22b   : > { %v8420_v45 = vor.u32 %v9531_v37, %v8419_v36  ;;  %v8051_v8 = vld [vmem:[%s14479_s4 + $0x440] sm:$0xf]  ;;  %v9567_v36 = vld [vmem:[%s14479_s4 + $0x7c4] sm:$0xf0] }
 0x22c   : > { %4636 = vmatpush.bf16.msra.mxu3 %v8264_v15  ;;  %4074 = vmatpush.bf16.msra.mxu0 %v7728_v53  ;;  %v7827_v15 = vld [vmem:[%s14479_s4 + $0x300] sm:$0xf]  ;;  %v2787_v53 = vpop.f32.mrf.mxu2 }
 0x22d   : > { %4049 = vmatpush.bf16.msrb.mxu2 %v7844_v34  ;;  %v7828_v9 = vor.u32 %v9415_v1, %v7827_v15  ;;  %v8067_v34 = vld [vmem:[%s14479_s4 + $0x460] sm:$0xf]  ;;  %v8588_v15 = vor.u32 %v9573_v10, %v8587_v14  ;;  %v9571_v1 = vld [vmem:[%s14479_s4 + $0x7e4] sm:$0xf0]  ;;  %v7853_v53 = vld [vmem:[%s14479_s4 + $0x338] sm:$0xf0] }
 0x22e   : > { %4616 = vmatpush.bf16.msra.mxu1 %v8088_v13  ;;  %v8232_v13 = vor.u32 %v9498_v47, %v8229_v51  ;;  %v13168_v55 = vpop.f32.mrf.mxu1  ;;  %v8068_v41 = vor.u32 %v9459_v6, %v8067_v34  ;;  %v9457_v47 = vld [vmem:[%s14479_s4 + $0x454] sm:$0xf0]  ;;  %v8453_v34 = vld [vmem:[%s14479_s4 + $0x6e8] sm:$0xf0]  ;;  %v8563_v6 = vld [vmem:[%s14479_s4 + $0x7c0] sm:$0xf] }
 0x22f   : > { %v8035_v14 = vld [vmem:[%s14479_s4 + $0x420] sm:$0xf]  ;;  %v9451_v10 = vld [vmem:[%s14479_s4 + $0x424] sm:$0xf0] }
 0x230   : > { %4637 = vmatpush.bf16.msra.mxu3 %v8256_v20  ;;  %4075 = vmatpush.bf16.msra.mxu0 %v7720_v39  ;;  %v2937_v20 = vsel %vm2897_vm2, %v2825_v33, %v2917_v24  ;;  %v8224_v33 = vor.u32 %v9496_v23, %v8221_v19  ;;  %v8411_v24 = vld [vmem:[%s14479_s4 + $0x690] sm:$0xf]  ;;  %v8052_v23 = vor.u32 %v9455_v59, %v8051_v8  ;;  %v9420_v19 = vld [vmem:[%s14479_s4 + $0x334] sm:$0xf]  ;;  %v8547_v8 = vld [vmem:[%s14479_s4 + $0x7a0] sm:$0xf] }
 0x231   : > { %4617 = vmatmul.bf16.vlgmr.msra.gmra.mxu1 %v12870_v18  ;;  %v7709_v18 = vld [vmem:[%s14479_s4 + $0x218] sm:$0xf0]  ;;  %4050 = vmatpush.bf16.msrb.mxu2 %v7836_v62  ;;  %v13165_v50 = vpack.c.bf16 %v2937_v20, %v2936_v54  ;;  %v8579_v62 = vld [vmem:[%s14479_s4 + $0x7e0] sm:$0xf]  ;;  %v8412_v11 = vor.u32 %v9529_v57, %v8411_v24  ;;  %v8571_v54 = vld [vmem:[%s14479_s4 + $0x7d0] sm:$0xf]  ;;  %v8036_v24 = vor.u32 %v9451_v10, %v8035_v14 }
 0x232   : > { %5083 = vmatpush.bf16.msrb.mxu1 %v8460_v2  ;;  %v7712_v42 = vor.u32 %v9384_v43, %v7709_v18  ;;  %v8427_v2 = vld [vmem:[%s14479_s4 + $0x6b0] sm:$0xf]  ;;  %v13200_v43 = vpack.c.b16 %v3688_v56, %v3688_v56  ;;  %v9424_v18 = vld [vmem:[%s14479_s4 + $0x354] sm:$0xf]  ;;  %v3542_v51 = vpop.f32.mrf.mxu3  ;;  %v8461_v20 = vld [vmem:[%s14479_s4 + $0x6f8] sm:$0xf0]  ;;  %v4739_v56 = vunpack.c.h.b16 %v12734_v49 }
 0x233   : > { %v8428_v35 = vor.u32 %v9533_v21, %v8427_v2  ;;  %v7872_v60 = vor.u32 %v9424_v18, %v7869_v7  ;;  %v739_v21 = vperm.slane %v13021_v46, 3  ;;  %v738_v18 = vperm.slane %v13021_v46, 2  ;;  %v8555_v51 = vld [vmem:[%s14479_s4 + $0x7b0] sm:$0xf]  ;;  %v9565_v46 = vld [vmem:[%s14479_s4 + $0x7b4] sm:$0xf0] }
 0x234   : > { %4638 = vmatpush.bf16.msra.mxu3 %v8248_v31  ;;  %4076 = vmatpush.bf16.msra.mxu0 %v7712_v42  ;;  %v7877_v31 = vld [vmem:[%s14479_s4 + $0x368] sm:$0xf0]  ;;  %v9422_v42 = vld [vmem:[%s14479_s4 + $0x344] sm:$0xf]  ;;  %v9416_v57 = vld [vmem:[%s14479_s4 + $0x314] sm:$0xf] }
 0x235   : > { %4051 = vmatpush.bf16.msrb.mxu2 %v7828_v9  ;;  %v7864_v2 = vor.u32 %v9422_v42, %v7861_v58  ;;  %v9569_v9 = vld [vmem:[%s14479_s4 + $0x7d4] sm:$0xf0]  ;;  %v9563_v59 = vld [vmem:[%s14479_s4 + $0x7a4] sm:$0xf0] }
 0x236   : > { %5084 = vmatpush.bf16.msrb.mxu1 %v8452_v30  ;;  %v9426_v30 = vld [vmem:[%s14479_s4 + $0x364] sm:$0xf] }
 0x237   : > { %v7880_v39 = vor.u32 %v9426_v30, %v7877_v31  ;;  %v8572_v30 = vor.u32 %v9569_v9, %v8571_v54  ;;  %v9538_v31 = vld [vmem:[%s14479_s4 + $0x6e4] sm:$0xf] }
 0x238   : > { %4639 = vmatpush.bf16.msra.mxu3 %v8240_v26  ;;  %4077 = vmatpush.bf16.msra.mxu0 %v7704_v25  ;;  %v8059_v26 = vld [vmem:[%s14479_s4 + $0x450] sm:$0xf]  ;;  %v8456_v7 = vor.u32 %v9538_v31, %v8453_v34  ;;  %v8429_v31 = vld [vmem:[%s14479_s4 + $0x6b8] sm:$0xf0] }
 0x239   : > { %4096 = vmatpush.bf16.msra.mxu2 %v7888_v61  ;;  %v8060_v3 = vor.u32 %v9457_v47, %v8059_v26  ;;  %v8043_v61 = vld [vmem:[%s14479_s4 + $0x430] sm:$0xf]  ;;  %v8445_v47 = vld [vmem:[%s14479_s4 + $0x6d8] sm:$0xf0] }
 0x23a   : > { %5085 = vmatpush.bf16.msrb.mxu1 %v8444_v44  ;;  %v8216_v44 = vor.u32 %v9494_v38, %v8213_v40  ;;  %4052 = vmatmul.bf16.vlgmr.msrb.gmra.mxu2 %v13200_v43  ;;  %v9418_v40 = vld [vmem:[%s14479_s4 + $0x324] sm:$0xf] }
 0x23b   : > { %4078 = vmatmul.bf16.vlgmr.msra.gmra.mxu0 %v12983_v27  ;;  %v3568_v27 = vpop.f32.mrf.mxu1 }
 0x23c   : > { %4640 = vmatpush.bf16.msra.mxu3 %v8232_v13  ;;  %4544 = vmatpush.bf16.msrb.mxu0 %v8076_v29  ;;  %v8403_v13 = vld [vmem:[%s14479_s4 + $0x680] sm:$0xf]  ;;  %v8464_v29 = vor.u32 %v9540_v17, %v8461_v20  ;;  %v9534_v27 = vld [vmem:[%s14479_s4 + $0x6c4] sm:$0xf]  ;;  %v7829_v17 = vld [vmem:[%s14479_s4 + $0x308] sm:$0xf0] }
 0x23d   : > { %4097 = vmatpush.bf16.msra.mxu2 %v7880_v39  ;;  %v8404_v25 = vor.u32 %v9527_v16, %v8403_v13  ;;  %v7845_v39 = vld [vmem:[%s14479_s4 + $0x328] sm:$0xf0]  ;;  %v9447_v20 = vld [vmem:[%s14479_s4 + $0x404] sm:$0xf0] }
 0x23e   : > { %5086 = vmatpush.bf16.msrb.mxu1 %v8436_v12  ;;  %v8580_v12 = vor.u32 %v9571_v1, %v8579_v62  ;;  %v7848_v26 = vor.u32 %v9418_v40, %v7845_v39  ;;  %v8027_v62 = vld [vmem:[%s14479_s4 + $0x410] sm:$0xf]  ;;  %v2837_v1 = vpop.f32.mrf.mxu2 }
 0x23f   : > { %v2838_v42 = vadd.f32 %v2837_v1, %v738_v18  ;;  %v8195_v18 = vld [vmem:[%s14479_s4 + $0x560] sm:$0xf] }
 0x240   : > { %4641 = vmatpush.bf16.msra.mxu3 %v8224_v33  ;;  %4545 = vmatpush.bf16.msrb.mxu0 %v8068_v41  ;;  %v7856_v33 = vor.u32 %v9420_v19, %v7853_v53  ;;  %v13297_v41 = vpack.c.b16 %v4739_v56, %v4739_v56  ;;  %v9493_v19 = vld [vmem:[%s14479_s4 + $0x574] sm:$0xf0]  ;;  %v9460_v53 = vld [vmem:[%s14479_s4 + $0x474] sm:$0xf] }
 0x241   : > { %4098 = vmatpush.bf16.msra.mxu2 %v7872_v60  ;;  %v7837_v60 = vld [vmem:[%s14479_s4 + $0x318] sm:$0xf0]  ;;  %v2851_v9 = vadd.f32 %v12732_v48, %v2838_v42  ;;  %v9532_v56 = vld [vmem:[%s14479_s4 + $0x6b4] sm:$0xf] }
 0x242   : > { %5087 = vmatpush.bf16.msrb.mxu1 %v8428_v35  ;;  %v2863_v35 = vpop.f32.mrf.mxu0  ;;  %v7840_v16 = vor.u32 %v9416_v57, %v7837_v60  ;;  %v9572_v57 = vld [vmem:[%s14479_s4 + $0x7f4] sm:$0xf]  ;;  %v8589_v60 = vld [vmem:[%s14479_s4 + $0x7f8] sm:$0xf0] }
 0x243   : > { %v2864_v37 = vadd.f32 %v2863_v35, %v739_v21  ;;  %vm2898_vm5 = vcmp.gt.f32.partialorder %v2851_v9, 0.0  ;;  %v2918_v48 = vmul.f32 0.01, %v2851_v9  ;;  %v8539_v35 = vld [vmem:[%s14479_s4 + $0x790] sm:$0xf] }
 0x244   : > { %4642 = vmatpush.bf16.msra.mxu3 %v8216_v44  ;;  %4546 = vmatpush.bf16.msrb.mxu0 %v8060_v3  ;;  %v9536_v44 = vld [vmem:[%s14479_s4 + $0x6d4] sm:$0xf]  ;;  %v8437_v3 = vld [vmem:[%s14479_s4 + $0x6c8] sm:$0xf0] }
 0x245   : > { %4099 = vmatpush.bf16.msra.mxu2 %v7864_v2  ;;  %v8448_v58 = vor.u32 %v9536_v44, %v8445_v47  ;;  %v8019_v2 = vld [vmem:[%s14479_s4 + $0x400] sm:$0xf]  ;;  %v9530_v47 = vld [vmem:[%s14479_s4 + $0x6a4] sm:$0xf] }
 0x246   : > { %5088 = vmatpush.bf16.msrb.mxu1 %v8420_v45  ;;  %v8564_v45 = vor.u32 %v9567_v36, %v8563_v6  ;;  %v2938_v6 = vsel %vm2898_vm5, %v2851_v9, %v2918_v48  ;;  %v8020_v36 = vor.u32 %v9447_v20, %v8019_v2  ;;  %v2839_v14 = vpop.f32.mrf.mxu2  ;;  %v9570_v2 = vld [vmem:[%s14479_s4 + $0x7e4] sm:$0xf]  ;;  %v8179_v9 = vld [vmem:[%s14479_s4 + $0x540] sm:$0xf] }
 0x247   : > { %4643 = vmatmul.bf16.vlgmr.msra.gmra.mxu3 %v13029_v52  ;;  %v9453_v52 = vld [vmem:[%s14479_s4 + $0x434] sm:$0xf0]  ;;  %v8045_v14 = vld [vmem:[%s14479_s4 + $0x438] sm:$0xf0] }
 0x248   : > { %5109 = vmatpush.bf16.msrb.mxu3 %v8588_v15  ;;  %4547 = vmatpush.bf16.msrb.mxu0 %v8052_v23  ;;  %v8044_v38 = vor.u32 %v9453_v52, %v8043_v61  ;;  %v2877_v15 = vadd.f32 %v12743_v63, %v2864_v37  ;;  %v9449_v63 = vld [vmem:[%s14479_s4 + $0x414] sm:$0xf0]  ;;  %v8203_v23 = vld [vmem:[%s14479_s4 + $0x570] sm:$0xf]  ;;  %v8440_v61 = vor.u32 %v9534_v27, %v8437_v3 }
 0x249   : > { %4100 = vmatpush.bf16.msra.mxu2 %v7856_v33  ;;  %v8028_v21 = vor.u32 %v9449_v63, %v8027_v62  ;;  %v8548_v52 = vor.u32 %v9563_v59, %v8547_v8  ;;  %v9561_v33 = vld [vmem:[%s14479_s4 + $0x794] sm:$0xf0]  ;;  %v8204_v37 = vor.u32 %v9493_v19, %v8203_v23  ;;  %v8187_v63 = vld [vmem:[%s14479_s4 + $0x550] sm:$0xf]  ;;  %v4741_v8 = vunpack.c.h.b16 %v12948_v4  ;;  %v9454_v19 = vld [vmem:[%s14479_s4 + $0x444] sm:$0xf] }
 0x24a   : > { %5089 = vmatpush.bf16.msrb.mxu1 %v8412_v11  ;;  %v8556_v11 = vor.u32 %v9565_v46, %v8555_v51  ;;  %v2865_v13 = vpop.f32.mrf.mxu0  ;;  %v2919_v54 = vmul.f32 0.01, %v2877_v15  ;;  %vm2899_vm4 = vcmp.gt.f32.partialorder %v2877_v15, 0.0  ;;  %v8540_v44 = vor.u32 %v9561_v33, %v8539_v35  ;;  %v8421_v51 = vld [vmem:[%s14479_s4 + $0x6a8] sm:$0xf0] }
 0x24b   : > { %v8531_v46 = vld [vmem:[%s14479_s4 + $0x780] sm:$0xf]  ;;  %v9489_v27 = vld [vmem:[%s14479_s4 + $0x554] sm:$0xf0]  ;;  %v8424_v3 = vor.u32 %v9530_v47, %v8421_v51  ;;  %v9528_v13 = vld [vmem:[%s14479_s4 + $0x694] sm:$0xf] }
 0x24c   : > { %5110 = vmatpush.bf16.msrb.mxu3 %v8580_v12  ;;  %4548 = vmatpush.bf16.msrb.mxu0 %v8044_v38  ;;  %v9414_v12 = vld [vmem:[%s14479_s4 + $0x304] sm:$0xf]  ;;  %v2939_v34 = vsel %vm2899_vm4, %v2877_v15, %v2919_v54  ;;  %v4212_v38 = vunpack.c.l.b16 %v12311_v22  ;;  %v9559_v15 = vld [vmem:[%s14479_s4 + $0x784] sm:$0xf0]  ;;  %v9568_v35 = vld [vmem:[%s14479_s4 + $0x7d4] sm:$0xf] }
 0x24d   : > { %4101 = vmatpush.bf16.msra.mxu2 %v7848_v26  ;;  %v13379_v40 = vpack.c.bf16 %v2939_v34, %v2938_v6  ;;  %v9458_v22 = vld [vmem:[%s14479_s4 + $0x464] sm:$0xf]  ;;  %v8069_v26 = vld [vmem:[%s14479_s4 + $0x468] sm:$0xf0]  ;;  %v8532_v42 = vor.u32 %v9559_v15, %v8531_v46  ;;  %v8573_v33 = vld [vmem:[%s14479_s4 + $0x7d8] sm:$0xf0] }
 0x24e   : > { %5090 = vmatpush.bf16.msrb.mxu1 %v8404_v25  ;;  %v8077_v25 = vld [vmem:[%s14479_s4 + $0x478] sm:$0xf0]  ;;  %v13381_v39 = vpop.f32.mrf.mxu1  ;;  %v13413_v62 = vpack.c.b16 %v4212_v38, %v4212_v38  ;;  %v8072_v1 = vor.u32 %v9458_v22, %v8069_v26  ;;  %v8171_v6 = vld [vmem:[%s14479_s4 + $0x530] sm:$0xf]  ;;  %v9452_v38 = vld [vmem:[%s14479_s4 + $0x434] sm:$0xf] }
 0x24f   : > { %v8080_v10 = vor.u32 %v9460_v53, %v8077_v25  ;;  %v8053_v53 = vld [vmem:[%s14479_s4 + $0x448] sm:$0xf0]  ;;  %v13454_v25 = vpack.c.b16 %v4741_v8, %v4741_v8  ;;  %v9603_v22 = vld [vmem:[%s14479_s4 + $0x8e4] sm:$0xf0]  ;;  %v9566_v26 = vld [vmem:[%s14479_s4 + $0x7c4] sm:$0xf]  ;;  %v8048_v51 = vor.u32 %v9452_v38, %v8045_v14 }
 0x250   : > { %5111 = vmatpush.bf16.msrb.mxu3 %v8572_v30  ;;  %4549 = vmatpush.bf16.msrb.mxu0 %v8036_v24  ;;  %v7832_v30 = vor.u32 %v9414_v12, %v7829_v17  ;;  %v8592_v12 = vor.u32 %v9572_v57, %v8589_v60  ;;  %v8188_v17 = vor.u32 %v9489_v27, %v8187_v63  ;;  %v8565_v47 = vld [vmem:[%s14479_s4 + $0x7c8] sm:$0xf0]  ;;  %v8163_v46 = vld [vmem:[%s14479_s4 + $0x520] sm:$0xf]  ;;  %v9483_v15 = vld [vmem:[%s14479_s4 + $0x524] sm:$0xf0] }
 0x251   : > { %5091 = vmatmul.bf16.vlgmr.msrb.gmra.mxu1 %v13297_v41  ;;  %4102 = vmatpush.bf16.msra.mxu2 %v7840_v16  ;;  %v8413_v16 = vld [vmem:[%s14479_s4 + $0x698] sm:$0xf0]  ;;  %v8056_v34 = vor.u32 %v9454_v19, %v8053_v53  ;;  %v8037_v57 = vld [vmem:[%s14479_s4 + $0x428] sm:$0xf0]  ;;  %v8763_v63 = vld [vmem:[%s14479_s4 + $0x8d0] sm:$0xf]  ;;  %v8164_v27 = vor.u32 %v9483_v15, %v8163_v46 }
 0x252   : > { %5135 = vmatpush.bf16.msra.mxu1 %v8464_v29  ;;  %v13366_v29 = vpop.f32.mrf.mxu3  ;;  %v8416_v23 = vor.u32 %v9528_v13, %v8413_v16  ;;  %v8155_v8 = vld [vmem:[%s14479_s4 + $0x510] sm:$0xf]  ;;  %v9448_v13 = vld [vmem:[%s14479_s4 + $0x414] sm:$0xf]  ;;  %v8147_v19 = vld [vmem:[%s14479_s4 + $0x500] sm:$0xf] }
 0x253   : > { %v9479_v53 = vld [vmem:[%s14479_s4 + $0x504] sm:$0xf0]  ;;  %v9560_v38 = vld [vmem:[%s14479_s4 + $0x794] sm:$0xf]  ;;  %v8541_v14 = vld [vmem:[%s14479_s4 + $0x798] sm:$0xf0] }
 0x254   : > { %5112 = vmatpush.bf16.msrb.mxu3 %v8564_v45  ;;  %4550 = vmatpush.bf16.msrb.mxu0 %v8028_v21  ;;  %v8432_v45 = vor.u32 %v9532_v56, %v8429_v31  ;;  %v9487_v21 = vld [vmem:[%s14479_s4 + $0x544] sm:$0xf0]  ;;  %v8779_v56 = vld [vmem:[%s14479_s4 + $0x8f0] sm:$0xf]  ;;  %v9605_v31 = vld [vmem:[%s14479_s4 + $0x8f4] sm:$0xf0]  ;;  %v8544_v15 = vor.u32 %v9560_v38, %v8541_v14 }
 0x255   : > { %4103 = vmatpush.bf16.msra.mxu2 %v7832_v30  ;;  %v8180_v30 = vor.u32 %v9487_v21, %v8179_v9  ;;  %v9562_v9 = vld [vmem:[%s14479_s4 + $0x7a4] sm:$0xf]  ;;  %v8549_v21 = vld [vmem:[%s14479_s4 + $0x7a8] sm:$0xf0]  ;;  %v8891_v38 = vld [vmem:[%s14479_s4 + $0x9d0] sm:$0xf] }
 0x256   : > { %5136 = vmatpush.bf16.msra.mxu1 %v8456_v7  ;;  %v9491_v7 = vld [vmem:[%s14479_s4 + $0x564] sm:$0xf0]  ;;  %v4042_v20 = vpop.f32.mrf.mxu1  ;;  %v9633_v14 = vld [vmem:[%s14479_s4 + $0x9d4] sm:$0xf0] }
 0x257   : > { %v8196_v24 = vor.u32 %v9491_v7, %v8195_v18  ;;  %v8576_v18 = vor.u32 %v9568_v35, %v8573_v33  ;;  %v8771_v7 = vld [vmem:[%s14479_s4 + $0x8e0] sm:$0xf]  ;;  %v8395_v35 = vld [vmem:[%s14479_s4 + $0x670] sm:$0xf]  ;;  %v9525_v33 = vld [vmem:[%s14479_s4 + $0x674] sm:$0xf0] }
 0x258   : > { %5113 = vmatpush.bf16.msrb.mxu3 %v8556_v11  ;;  %4551 = vmatpush.bf16.msrb.mxu0 %v8020_v36  ;;  %v8061_v11 = vld [vmem:[%s14479_s4 + $0x458] sm:$0xf0]  ;;  %v9485_v36 = vld [vmem:[%s14479_s4 + $0x534] sm:$0xf0]  ;;  %v8772_v60 = vor.u32 %v9603_v22, %v8771_v7  ;;  %v4214_v7 = vunpack.c.l.b16 %v12522_v32  ;;  %v8387_v32 = vld [vmem:[%s14479_s4 + $0x660] sm:$0xf] }
 0x259   : > { %4570 = vmatpush.bf16.msrb.mxu2 %v8204_v37 }
 0x25a   : > { %5137 = vmatpush.bf16.msra.mxu1 %v8448_v58  ;;  %v9456_v58 = vld [vmem:[%s14479_s4 + $0x454] sm:$0xf]  ;;  %v3594_v59 = vpop.f32.mrf.mxu3  ;;  %4104 = vmatmul.bf16.vlgmr.msra.gmra.mxu2 %v13200_v43  ;;  %v8581_v43 = vld [vmem:[%s14479_s4 + $0x7e8] sm:$0xf0] }
 0x25b   : > { %4552 = vmatmul.bf16.vlgmr.msrb.gmra.mxu0 %v13413_v62  ;;  %v8064_v54 = vor.u32 %v9456_v58, %v8061_v11  ;;  %v8584_v48 = vor.u32 %v9570_v2, %v8581_v43  ;;  %v8557_v58 = vld [vmem:[%s14479_s4 + $0x7b8] sm:$0xf0]  ;;  %v9481_v59 = vld [vmem:[%s14479_s4 + $0x514] sm:$0xf0]  ;;  %v8755_v2 = vld [vmem:[%s14479_s4 + $0x8c0] sm:$0xf] }
 0x25c   : > { %5114 = vmatpush.bf16.msrb.mxu3 %v8548_v52  ;;  %4596 = vmatpush.bf16.msra.mxu0 %v8080_v10  ;;  %v8405_v52 = vld [vmem:[%s14479_s4 + $0x688] sm:$0xf0]  ;;  %v8780_v10 = vor.u32 %v9605_v31, %v8779_v56  ;;  %v8156_v20 = vor.u32 %v9481_v59, %v8155_v8  ;;  %v8205_v56 = vld [vmem:[%s14479_s4 + $0x578] sm:$0xf0]  ;;  %v8552_v31 = vor.u32 %v9562_v9, %v8549_v21  ;;  %v9488_v8 = vld [vmem:[%s14479_s4 + $0x554] sm:$0xf] }
 0x25d   : > { %4571 = vmatpush.bf16.msrb.mxu2 %v8196_v24  ;;  %v9450_v24 = vld [vmem:[%s14479_s4 + $0x424] sm:$0xf]  ;;  %v8189_v59 = vld [vmem:[%s14479_s4 + $0x558] sm:$0xf0]  ;;  %v8899_v21 = vld [vmem:[%s14479_s4 + $0x9e0] sm:$0xf] }
 0x25e   : > { %5138 = vmatpush.bf16.msra.mxu1 %v8440_v61  ;;  %v9526_v61 = vld [vmem:[%s14479_s4 + $0x684] sm:$0xf]  ;;  %v8040_v11 = vor.u32 %v9450_v24, %v8037_v57  ;;  %v9523_v24 = vld [vmem:[%s14479_s4 + $0x664] sm:$0xf0]  ;;  %v8739_v57 = vld [vmem:[%s14479_s4 + $0x8a0] sm:$0xf]  ;;  %v8192_v9 = vor.u32 %v9488_v8, %v8189_v59 }
 0x25f   : > { %v8408_v37 = vor.u32 %v9526_v61, %v8405_v52  ;;  %v8021_v61 = vld [vmem:[%s14479_s4 + $0x408] sm:$0xf0]  ;;  %v9492_v52 = vld [vmem:[%s14479_s4 + $0x574] sm:$0xf]  ;;  %v8355_v8 = vld [vmem:[%s14479_s4 + $0x620] sm:$0xf] }
 0x260   : > { %5115 = vmatpush.bf16.msrb.mxu3 %v8540_v44  ;;  %4597 = vmatpush.bf16.msra.mxu0 %v8072_v1  ;;  %v8172_v44 = vor.u32 %v9485_v36, %v8171_v6  ;;  %v8568_v1 = vor.u32 %v9566_v26, %v8565_v47  ;;  %v8148_v36 = vor.u32 %v9479_v53, %v8147_v19  ;;  %v9490_v47 = vld [vmem:[%s14479_s4 + $0x564] sm:$0xf]  ;;  %v9515_v59 = vld [vmem:[%s14479_s4 + $0x624] sm:$0xf0] }
 0x261   : > { %4572 = vmatpush.bf16.msrb.mxu2 %v8188_v17  ;;  %v8396_v26 = vor.u32 %v9525_v33, %v8395_v35  ;;  %v9486_v53 = vld [vmem:[%s14479_s4 + $0x544] sm:$0xf]  ;;  %v8723_v35 = vld [vmem:[%s14479_s4 + $0x880] sm:$0xf]  ;;  %v9591_v33 = vld [vmem:[%s14479_s4 + $0x884] sm:$0xf0] }
 0x262   : > { %5139 = vmatpush.bf16.msra.mxu1 %v8432_v45  ;;  %v13490_v45 = vpop.f32.mrf.mxu0 }
 0x264   : > { %5116 = vmatpush.bf16.msrb.mxu3 %v8532_v42  ;;  %4598 = vmatpush.bf16.msra.mxu0 %v8064_v54  ;;  %v9564_v42 = vld [vmem:[%s14479_s4 + $0x7b4] sm:$0xf]  ;;  %v9599_v54 = vld [vmem:[%s14479_s4 + $0x8c4] sm:$0xf0] }
 0x265   : > { %4573 = vmatpush.bf16.msrb.mxu2 %v8180_v30  ;;  %v8560_v17 = vor.u32 %v9564_v42, %v8557_v58  ;;  %v8756_v30 = vor.u32 %v9599_v54, %v8755_v2  ;;  %v9637_v42 = vld [vmem:[%s14479_s4 + $0x9f4] sm:$0xf0]  ;;  %v13623_v58 = vpack.c.b16 %v4214_v7, %v4214_v7  ;;  %v9484_v7 = vld [vmem:[%s14479_s4 + $0x534] sm:$0xf] }
 0x266   : > { %5140 = vmatpush.bf16.msra.mxu1 %v8424_v3  ;;  %v9601_v3 = vld [vmem:[%s14479_s4 + $0x8d4] sm:$0xf0] }
 0x267   : > { %5117 = vmatmul.bf16.vlgmr.msrb.gmra.mxu3 %v13454_v25  ;;  %v8764_v16 = vor.u32 %v9601_v3, %v8763_v63  ;;  %v8533_v63 = vld [vmem:[%s14479_s4 + $0x788] sm:$0xf0]  ;;  %v8907_v3 = vld [vmem:[%s14479_s4 + $0x9f0] sm:$0xf]  ;;  %v9593_v54 = vld [vmem:[%s14479_s4 + $0x894] sm:$0xf0] }
 0x268   : > { %5161 = vmatpush.bf16.msra.mxu3 %v8592_v12  ;;  %4599 = vmatpush.bf16.msra.mxu0 %v8056_v34  ;;  %v13532_v12 = vpop.f32.mrf.mxu2  ;;  %v8747_v34 = vld [vmem:[%s14479_s4 + $0x8b0] sm:$0xf] }
 0x269   : > { %4574 = vmatpush.bf16.msrb.mxu2 %v8172_v44 }
 0x26a   : > { %5141 = vmatpush.bf16.msra.mxu1 %v8416_v23  ;;  %v3503_v43 = vpop.f32.mrf.mxu0  ;;  %v13579_v6 = vpop.f32.mrf.mxu3 }
 0x26b   : > { %v8908_v43 = vor.u32 %v9637_v42, %v8907_v3  ;;  %v9482_v42 = vld [vmem:[%s14479_s4 + $0x524] sm:$0xf] }
 0x26c   : > { %5162 = vmatpush.bf16.msra.mxu3 %v8584_v48  ;;  %4600 = vmatpush.bf16.msra.mxu0 %v8048_v51  ;;  %v9446_v48 = vld [vmem:[%s14479_s4 + $0x404] sm:$0xf]  ;;  %v8197_v51 = vld [vmem:[%s14479_s4 + $0x568] sm:$0xf0] }
 0x26d   : > { %4575 = vmatpush.bf16.msrb.mxu2 %v8164_v27  ;;  %v8200_v27 = vor.u32 %v9490_v47, %v8197_v51  ;;  %v8363_v47 = vld [vmem:[%s14479_s4 + $0x630] sm:$0xf]  ;;  %v9517_v51 = vld [vmem:[%s14479_s4 + $0x634] sm:$0xf0] }
 0x26e   : > { %5142 = vmatpush.bf16.msra.mxu1 %v8408_v37  ;;  %v9597_v37 = vld [vmem:[%s14479_s4 + $0x8b4] sm:$0xf0]  ;;  %v13591_v44 = vpop.f32.mrf.mxu1  ;;  %v8364_v3 = vor.u32 %v9517_v51, %v8363_v47  ;;  %v9524_v47 = vld [vmem:[%s14479_s4 + $0x674] sm:$0xf]  ;;  %v8397_v51 = vld [vmem:[%s14479_s4 + $0x678] sm:$0xf0] }
 0x26f   : > { %v8748_v46 = vor.u32 %v9597_v37, %v8747_v34  ;;  %v9604_v34 = vld [vmem:[%s14479_s4 + $0x8f4] sm:$0xf]  ;;  %v8781_v37 = vld [vmem:[%s14479_s4 + $0x8f8] sm:$0xf0] }
 0x270   : > { %5163 = vmatpush.bf16.msra.mxu3 %v8576_v18  ;;  %4601 = vmatpush.bf16.msra.mxu0 %v8040_v11  ;;  %v8208_v18 = vor.u32 %v9492_v52, %v8205_v56  ;;  %v3072_v22 = vpop.f32.mrf.mxu2  ;;  %v8388_v11 = vor.u32 %v9523_v24, %v8387_v32  ;;  %v8371_v56 = vld [vmem:[%s14479_s4 + $0x640] sm:$0xf]  ;;  %v9602_v32 = vld [vmem:[%s14479_s4 + $0x8e4] sm:$0xf] }
 0x271   : > { %5143 = vmatmul.bf16.vlgmr.msra.gmra.mxu1 %v13297_v41  ;;  %v8029_v41 = vld [vmem:[%s14479_s4 + $0x418] sm:$0xf0]  ;;  %4576 = vmatpush.bf16.msrb.mxu2 %v8156_v20  ;;  %v8731_v20 = vld [vmem:[%s14479_s4 + $0x890] sm:$0xf] }
 0x272   : > { %5609 = vmatpush.bf16.msrb.mxu1 %v8780_v10  ;;  %v8032_v23 = vor.u32 %v9448_v13, %v8029_v41  ;;  %v8024_v10 = vor.u32 %v9446_v48, %v8021_v61  ;;  %v4068_v2 = vpop.f32.mrf.mxu3  ;;  %v8181_v48 = vld [vmem:[%s14479_s4 + $0x548] sm:$0xf0]  ;;  %v13660_v61 = vld [vmem:[%s14480_s5] sm:$0x1f]  ;;  %v8732_v52 = vor.u32 %v9593_v54, %v8731_v20  ;;  %v8173_v22 = vld [vmem:[%s14479_s4 + $0x538] sm:$0xf0] }
 0x273   : > { %v8765_v2 = vld [vmem:[%s14479_s4 + $0x8d8] sm:$0xf0]  ;;  %v9629_v20 = vld [vmem:[%s14479_s4 + $0x9b4] sm:$0xf0] }
 0x274   : > { %5164 = vmatpush.bf16.msra.mxu3 %v8568_v1  ;;  %4602 = vmatpush.bf16.msra.mxu0 %v8032_v23  ;;  %v9558_v1 = vld [vmem:[%s14479_s4 + $0x784] sm:$0xf]  ;;  %v9635_v23 = vld [vmem:[%s14479_s4 + $0x9e4] sm:$0xf0] }
 0x275   : > { %4577 = vmatpush.bf16.msrb.mxu2 %v8148_v36  ;;  %v8536_v41 = vor.u32 %v9558_v1, %v8533_v63  ;;  %v8184_v36 = vor.u32 %v9486_v53, %v8181_v48  ;;  %v8883_v1 = vld [vmem:[%s14479_s4 + $0x9c0] sm:$0xf]  ;;  %v9631_v63 = vld [vmem:[%s14479_s4 + $0x9c4] sm:$0xf0]  ;;  %v9513_v53 = vld [vmem:[%s14479_s4 + $0x614] sm:$0xf0] }
 0x276   : > { %5610 = vmatpush.bf16.msrb.mxu1 %v8772_v60  ;;  %v9595_v60 = vld [vmem:[%s14479_s4 + $0x8a4] sm:$0xf0] }
 0x277   : > { %v8740_v13 = vor.u32 %v9595_v60, %v8739_v57  ;;  %v8176_v57 = vor.u32 %v9484_v7, %v8173_v22  ;;  %v8773_v60 = vld [vmem:[%s14479_s4 + $0x8e8] sm:$0xf0]  ;;  %v9557_v7 = vld [vmem:[%s14479_s4 + $0x774] sm:$0xf0] }
 0x278   : > { %5165 = vmatpush.bf16.msra.mxu3 %v8560_v17  ;;  %4603 = vmatpush.bf16.msra.mxu0 %v8024_v10  ;;  %v9521_v17 = vld [vmem:[%s14479_s4 + $0x654] sm:$0xf0]  ;;  %v3156_v10 = vperm.slane %v13660_v61, 0  ;;  %v13704_v24 = vpop.f32.mrf.mxu0 }
 0x279   : > { %4622 = vmatpush.bf16.msra.mxu2 %v8208_v18 }
 0x27a   : > { %5611 = vmatpush.bf16.msrb.mxu1 %v8764_v16  ;;  %v8379_v16 = vld [vmem:[%s14479_s4 + $0x650] sm:$0xf]  ;;  %4578 = vmatmul.bf16.vlgmr.msrb.gmra.mxu2 %v13623_v58 }
 0x27b   : > { %4604 = vmatmul.bf16.vlgmr.msra.gmra.mxu0 %v13413_v62  ;;  %v4094_v62 = vpop.f32.mrf.mxu1  ;;  %v8380_v19 = vor.u32 %v9521_v17, %v8379_v16  ;;  %v9600_v16 = vld [vmem:[%s14479_s4 + $0x8d4] sm:$0xf] }
 0x27c   : > { %5166 = vmatpush.bf16.msra.mxu3 %v8552_v31  ;;  %5070 = vmatpush.bf16.msrb.mxu0 %v8396_v26  ;;  %v8900_v31 = vor.u32 %v9635_v23, %v8899_v21  ;;  %v8724_v26 = vor.u32 %v9591_v33, %v8723_v35  ;;  %v9480_v21 = vld [vmem:[%s14479_s4 + $0x514] sm:$0xf]  ;;  %v8157_v23 = vld [vmem:[%s14479_s4 + $0x518] sm:$0xf0]  ;;  %v8757_v35 = vld [vmem:[%s14479_s4 + $0x8c8] sm:$0xf0] }
 0x27d   : > { %4623 = vmatpush.bf16.msra.mxu2 %v8200_v27  ;;  %v3502_v27 = vadd.f32 %v13490_v45, %v3156_v10  ;;  %v3527_v62 = vpop.f32.mrf.mxu2  ;;  %v8867_v33 = vld [vmem:[%s14479_s4 + $0x9a0] sm:$0xf]  ;;  %v9511_v10 = vld [vmem:[%s14479_s4 + $0x604] sm:$0xf0] }
 0x27e   : > { %5612 = vmatpush.bf16.msrb.mxu1 %v8756_v30  ;;  %v9519_v30 = vld [vmem:[%s14479_s4 + $0x644] sm:$0xf0] }
 0x27f   : > { %v8372_v18 = vor.u32 %v9519_v30, %v8371_v56  ;;  %v3515_v54 = vadd.f32 %v12950_v5, %v3502_v27  ;;  %v8768_v5 = vor.u32 %v9600_v16, %v8765_v2  ;;  %v9598_v56 = vld [vmem:[%s14479_s4 + $0x8c4] sm:$0xf]  ;;  %v4738_v27 = vunpack.c.l.b16 %v12734_v49  ;;  %v8389_v16 = vld [vmem:[%s14479_s4 + $0x668] sm:$0xf0] }
 0x280   : > { %5167 = vmatpush.bf16.msra.mxu3 %v8544_v15  ;;  %5071 = vmatpush.bf16.msrb.mxu0 %v8388_v11  ;;  %v8892_v15 = vor.u32 %v9633_v14, %v8891_v38  ;;  %v8165_v11 = vld [vmem:[%s14479_s4 + $0x528] sm:$0xf0]  ;;  %v3555_v30 = vpop.f32.mrf.mxu0  ;;  %v8339_v14 = vld [vmem:[%s14479_s4 + $0x600] sm:$0xf]  ;;  %v8760_v22 = vor.u32 %v9598_v56, %v8757_v35  ;;  %v9522_v49 = vld [vmem:[%s14479_s4 + $0x664] sm:$0xf] }
 0x281   : > { %4624 = vmatpush.bf16.msra.mxu2 %v8192_v9  ;;  %v8168_v17 = vor.u32 %v9482_v42, %v8165_v11  ;;  %v8356_v9 = vor.u32 %v9515_v59, %v8355_v8  ;;  %v13756_v48 = vadd.f32 %v3527_v62, %v3515_v54  ;;  %v8149_v38 = vld [vmem:[%s14479_s4 + $0x508] sm:$0xf0]  ;;  %v8400_v11 = vor.u32 %v9524_v47, %v8397_v51  ;;  %v8515_v8 = vld [vmem:[%s14479_s4 + $0x760] sm:$0xf]  ;;  %v9555_v59 = vld [vmem:[%s14479_s4 + $0x764] sm:$0xf0] }
 0x282   : > { %5613 = vmatpush.bf16.msrb.mxu1 %v8748_v46  ;;  %v8784_v46 = vor.u32 %v9604_v34, %v8781_v37  ;;  %v9627_v34 = vld [vmem:[%s14479_s4 + $0x9a4] sm:$0xf0]  ;;  %v9478_v37 = vld [vmem:[%s14479_s4 + $0x504] sm:$0xf]  ;;  %v8741_v2 = vld [vmem:[%s14479_s4 + $0x8a8] sm:$0xf0]  ;;  %v8516_v54 = vor.u32 %v9555_v59, %v8515_v8  ;;  %v8392_v62 = vor.u32 %v9522_v49, %v8389_v16 }
 0x283   : > { %v9520_v56 = vld [vmem:[%s14479_s4 + $0x654] sm:$0xf]  ;;  %v8381_v30 = vld [vmem:[%s14479_s4 + $0x658] sm:$0xf0]  ;;  %v9518_v47 = vld [vmem:[%s14479_s4 + $0x644] sm:$0xf] }
 0x284   : > { %5168 = vmatpush.bf16.msra.mxu3 %v8536_v41  ;;  %5072 = vmatpush.bf16.msrb.mxu0 %v8380_v19  ;;  %v8884_v41 = vor.u32 %v9631_v63, %v8883_v1  ;;  %v8347_v19 = vld [vmem:[%s14479_s4 + $0x610] sm:$0xf]  ;;  %v8340_v1 = vor.u32 %v9511_v10, %v8339_v14  ;;  %v8384_v10 = vor.u32 %v9520_v56, %v8381_v30  ;;  %v8373_v51 = vld [vmem:[%s14479_s4 + $0x648] sm:$0xf0]  ;;  %v9549_v8 = vld [vmem:[%s14479_s4 + $0x734] sm:$0xf0] }
 0x285   : > { %4625 = vmatpush.bf16.msra.mxu2 %v8184_v36  ;;  %v8348_v36 = vor.u32 %v9513_v53, %v8347_v19  ;;  %v3529_v42 = vpop.f32.mrf.mxu2  ;;  %v8507_v19 = vld [vmem:[%s14479_s4 + $0x750] sm:$0xf]  ;;  %v9553_v53 = vld [vmem:[%s14479_s4 + $0x754] sm:$0xf0] }
 0x286   : > { %5614 = vmatpush.bf16.msrb.mxu1 %v8740_v13  ;;  %v8776_v13 = vor.u32 %v9602_v32, %v8773_v60  ;;  %v8749_v32 = vld [vmem:[%s14479_s4 + $0x8b8] sm:$0xf0]  ;;  %v9625_v60 = vld [vmem:[%s14479_s4 + $0x994] sm:$0xf0]  ;;  %v8376_v42 = vor.u32 %v9518_v47, %v8373_v51  ;;  %v8341_v47 = vld [vmem:[%s14479_s4 + $0x608] sm:$0xf0] }
 0x287   : > { %5169 = vmatmul.bf16.vlgmr.msra.gmra.mxu3 %v13454_v25  ;;  %v5265_v25 = vunpack.c.h.b16 %v13165_v50  ;;  %v8525_v51 = vld [vmem:[%s14479_s4 + $0x778] sm:$0xf0] }
 0x288   : > { %5635 = vmatpush.bf16.msrb.mxu3 %v8908_v43  ;;  %5073 = vmatpush.bf16.msrb.mxu0 %v8372_v18  ;;  %v8875_v43 = vld [vmem:[%s14479_s4 + $0x9b0] sm:$0xf] }
 0x289   : > { %v13728_v45 = vpack.c.b16 %v5265_v25, %v5265_v25  ;;  %4626 = vmatpush.bf16.msra.mxu2 %v8176_v57  ;;  %v8523_v18 = vld [vmem:[%s14479_s4 + $0x770] sm:$0xf]  ;;  %v9596_v25 = vld [vmem:[%s14479_s4 + $0x8b4] sm:$0xf] }
 0x28a   : > { %5615 = vmatpush.bf16.msrb.mxu1 %v8732_v52  ;;  %v8876_v52 = vor.u32 %v9629_v20, %v8875_v43  ;;  %v8859_v57 = vld [vmem:[%s14479_s4 + $0x990] sm:$0xf]  ;;  %v8524_v63 = vor.u32 %v9557_v7, %v8523_v18  ;;  %v8851_v43 = vld [vmem:[%s14479_s4 + $0x980] sm:$0xf]  ;;  %v9623_v20 = vld [vmem:[%s14479_s4 + $0x984] sm:$0xf0] }
 0x28b   : > { %v8499_v18 = vld [vmem:[%s14479_s4 + $0x740] sm:$0xf]  ;;  %v9551_v7 = vld [vmem:[%s14479_s4 + $0x744] sm:$0xf0] }
 0x28c   : > { %5636 = vmatpush.bf16.msrb.mxu3 %v8900_v31  ;;  %5074 = vmatpush.bf16.msrb.mxu0 %v8364_v3  ;;  %v8160_v31 = vor.u32 %v9480_v21, %v8157_v23  ;;  %v8909_v21 = vld [vmem:[%s14479_s4 + $0x9f8] sm:$0xf0]  ;;  %v13841_v23 = vpack.c.b16 %v4738_v27, %v4738_v27 }
 0x28d   : > { %4627 = vmatpush.bf16.msra.mxu2 %v8168_v17  ;;  %v9594_v17 = vld [vmem:[%s14479_s4 + $0x8a4] sm:$0xf] }
 0x28e   : > { %5616 = vmatpush.bf16.msrb.mxu1 %v8724_v26  ;;  %v8868_v26 = vor.u32 %v9627_v34, %v8867_v33  ;;  %v13809_v3 = vpop.f32.mrf.mxu1  ;;  %v9592_v34 = vld [vmem:[%s14479_s4 + $0x894] sm:$0xf] }
 0x290   : > { %5637 = vmatpush.bf16.msrb.mxu3 %v8892_v15  ;;  %5075 = vmatpush.bf16.msrb.mxu0 %v8356_v9  ;;  %v8152_v15 = vor.u32 %v9478_v37, %v8149_v38  ;;  %v9636_v9 = vld [vmem:[%s14479_s4 + $0x9f4] sm:$0xf]  ;;  %v8508_v37 = vor.u32 %v9553_v53, %v8507_v19  ;;  %v9634_v38 = vld [vmem:[%s14479_s4 + $0x9e4] sm:$0xf]  ;;  %v8357_v19 = vld [vmem:[%s14479_s4 + $0x628] sm:$0xf0] }
 0x291   : > { %5617 = vmatmul.bf16.vlgmr.msrb.gmra.mxu1 %v13728_v45  ;;  %4628 = vmatpush.bf16.msra.mxu2 %v8160_v31  ;;  %v5267_v31 = vunpack.c.h.b16 %v13379_v40  ;;  %v8912_v33 = vor.u32 %v9636_v9, %v8909_v21  ;;  %v8483_v9 = vld [vmem:[%s14479_s4 + $0x720] sm:$0xf]  ;;  %v9547_v21 = vld [vmem:[%s14479_s4 + $0x724] sm:$0xf0] }
 0x292   : > { %5661 = vmatpush.bf16.msra.mxu1 %v8784_v46  ;;  %v13797_v46 = vpop.f32.mrf.mxu3  ;;  %v8484_v53 = vor.u32 %v9547_v21, %v8483_v9  ;;  %v9587_v9 = vld [vmem:[%s14479_s4 + $0x864] sm:$0xf0]  ;;  %v9622_v21 = vld [vmem:[%s14479_s4 + $0x984] sm:$0xf] }
 0x294   : > { %5638 = vmatpush.bf16.msrb.mxu3 %v8884_v41  ;;  %5076 = vmatpush.bf16.msrb.mxu0 %v8348_v36  ;;  %v8860_v41 = vor.u32 %v9625_v60, %v8859_v57  ;;  %v8733_v36 = vld [vmem:[%s14479_s4 + $0x898] sm:$0xf0]  ;;  %v8725_v57 = vld [vmem:[%s14479_s4 + $0x888] sm:$0xf0]  ;;  %v8500_v60 = vor.u32 %v9551_v7, %v8499_v18  ;;  %v9543_v7 = vld [vmem:[%s14479_s4 + $0x704] sm:$0xf0] }
 0x295   : > { %4629 = vmatpush.bf16.msra.mxu2 %v8152_v15 }
 0x296   : > { %5662 = vmatpush.bf16.msra.mxu1 %v8776_v13  ;;  %v8752_v13 = vor.u32 %v9596_v25, %v8749_v32  ;;  %v4568_v14 = vpop.f32.mrf.mxu1  ;;  %v13887_v25 = vpack.c.b16 %v5267_v31, %v5267_v31  ;;  %v9590_v32 = vld [vmem:[%s14479_s4 + $0x884] sm:$0xf]  ;;  %v8475_v31 = vld [vmem:[%s14479_s4 + $0x710] sm:$0xf] }
 0x297   : > { %v8728_v59 = vor.u32 %v9590_v32, %v8725_v57  ;;  %v9626_v14 = vld [vmem:[%s14479_s4 + $0x9a4] sm:$0xf] }
 0x298   : > { %5639 = vmatpush.bf16.msrb.mxu3 %v8876_v52  ;;  %5077 = vmatpush.bf16.msrb.mxu0 %v8340_v1  ;;  %v8852_v52 = vor.u32 %v9623_v20, %v8851_v43  ;;  %v9632_v1 = vld [vmem:[%s14479_s4 + $0x9d4] sm:$0xf]  ;;  %v13915_v16 = vpop.f32.mrf.mxu0  ;;  %v8885_v43 = vld [vmem:[%s14479_s4 + $0x9c8] sm:$0xf0] }
 0x299   : > { %5096 = vmatpush.bf16.msrb.mxu2 %v8524_v63  ;;  %v8893_v63 = vld [vmem:[%s14479_s4 + $0x9d8] sm:$0xf0] }
 0x29a   : > { %5663 = vmatpush.bf16.msra.mxu1 %v8768_v5  ;;  %v8744_v5 = vor.u32 %v9594_v17, %v8741_v2  ;;  %v4120_v35 = vpop.f32.mrf.mxu3  ;;  %4630 = vmatmul.bf16.vlgmr.msra.gmra.mxu2 %v13623_v58  ;;  %v8901_v58 = vld [vmem:[%s14479_s4 + $0x9e8] sm:$0xf0]  ;;  %v8896_v49 = vor.u32 %v9632_v1, %v8893_v63  ;;  %v9630_v2 = vld [vmem:[%s14479_s4 + $0x9c4] sm:$0xf]  ;;  %v9589_v1 = vld [vmem:[%s14479_s4 + $0x874] sm:$0xf0] }
 0x29b   : > { %5078 = vmatmul.bf16.vlgmr.msrb.gmra.mxu0 %v13841_v23  ;;  %v8904_v15 = vor.u32 %v9634_v38, %v8901_v58  ;;  %v9545_v35 = vld [vmem:[%s14479_s4 + $0x714] sm:$0xf0] }
 0x29c   : > { %5640 = vmatpush.bf16.msrb.mxu3 %v8868_v26  ;;  %5122 = vmatpush.bf16.msra.mxu0 %v8400_v11  ;;  %v8736_v26 = vor.u32 %v9592_v34, %v8733_v36  ;;  %v8491_v11 = vld [vmem:[%s14479_s4 + $0x730] sm:$0xf]  ;;  %v9512_v34 = vld [vmem:[%s14479_s4 + $0x614] sm:$0xf]  ;;  %v8476_v58 = vor.u32 %v9545_v35, %v8475_v31  ;;  %v9585_v31 = vld [vmem:[%s14479_s4 + $0x854] sm:$0xf0] }
 0x29d   : > { %5097 = vmatpush.bf16.msrb.mxu2 %v8516_v54  ;;  %v8492_v17 = vor.u32 %v9549_v8, %v8491_v11  ;;  %v8861_v11 = vld [vmem:[%s14479_s4 + $0x998] sm:$0xf0]  ;;  %v4740_v8 = vunpack.c.l.b16 %v12948_v4 }
 0x29e   : > { %5664 = vmatpush.bf16.msra.mxu1 %v8760_v22  ;;  %v13879_v22 = vld [vmem:[%s14480_s5 + $0x8] sm:$0x1f] }
 0x29f   : > { %v3157_v27 = vperm.slane %v13879_v22, 0 }
 0x2a0   : > { %5641 = vmatpush.bf16.msrb.mxu3 %v8860_v41  ;;  %5123 = vmatpush.bf16.msra.mxu0 %v8392_v62  ;;  %v8365_v41 = vld [vmem:[%s14479_s4 + $0x638] sm:$0xf0]  ;;  %v9514_v62 = vld [vmem:[%s14479_s4 + $0x624] sm:$0xf]  ;;  %v4029_v38 = vpop.f32.mrf.mxu0 }
 0x2a1   : > { %5098 = vmatpush.bf16.msrb.mxu2 %v8508_v37  ;;  %v3554_v20 = vadd.f32 %v13704_v24, %v3157_v27  ;;  %v8888_v24 = vor.u32 %v9630_v2, %v8885_v43  ;;  %v8360_v30 = vor.u32 %v9514_v62, %v8357_v19  ;;  %v9554_v43 = vld [vmem:[%s14479_s4 + $0x764] sm:$0xf]  ;;  %v8853_v62 = vld [vmem:[%s14479_s4 + $0x988] sm:$0xf0]  ;;  %v14029_v19 = vpack.c.b16 %v4740_v8, %v4740_v8  ;;  %v8675_v8 = vld [vmem:[%s14479_s4 + $0x820] sm:$0xf] }
 0x2a2   : > { %5665 = vmatpush.bf16.msra.mxu1 %v8752_v13  ;;  %v9516_v13 = vld [vmem:[%s14479_s4 + $0x634] sm:$0xf]  ;;  %v9550_v38 = vld [vmem:[%s14479_s4 + $0x744] sm:$0xf] }
 0x2a3   : > { %v8368_v54 = vor.u32 %v9516_v13, %v8365_v41  ;;  %v3567_v56 = vadd.f32 %v13168_v55, %v3554_v20  ;;  %v13958_v55 = vadd.f32 %v13154_v28, %v13756_v48  ;;  %v8467_v48 = vld [vmem:[%s14479_s4 + $0x700] sm:$0xf]  ;;  %v8517_v20 = vld [vmem:[%s14479_s4 + $0x768] sm:$0xf0] }
 0x2a4   : > { %5642 = vmatpush.bf16.msrb.mxu3 %v8852_v52  ;;  %5124 = vmatpush.bf16.msra.mxu0 %v8384_v10  ;;  %v8877_v52 = vld [vmem:[%s14479_s4 + $0x9b8] sm:$0xf0]  ;;  %v8869_v10 = vld [vmem:[%s14479_s4 + $0x9a8] sm:$0xf0]  ;;  %v8468_v27 = vor.u32 %v9543_v7, %v8467_v48  ;;  %v3682_v48 = vperm.slane %v13660_v61, 1 }
 0x2a5   : > { %5099 = vmatpush.bf16.msrb.mxu2 %v8500_v60  ;;  %v8872_v57 = vor.u32 %v9626_v14, %v8869_v10  ;;  %v8715_v60 = vld [vmem:[%s14479_s4 + $0x870] sm:$0xf]  ;;  %v9583_v14 = vld [vmem:[%s14479_s4 + $0x844] sm:$0xf0] }
 0x2a6   : > { %5666 = vmatpush.bf16.msra.mxu1 %v8744_v5  ;;  %v9628_v5 = vld [vmem:[%s14479_s4 + $0x9b4] sm:$0xf]  ;;  %v8716_v2 = vor.u32 %v9589_v1, %v8715_v60  ;;  %v4028_v60 = vadd.f32 %v13915_v16, %v3682_v48 }
 0x2a7   : > { %5643 = vmatmul.bf16.vlgmr.msrb.gmra.mxu3 %v13887_v25  ;;  %v8880_v37 = vor.u32 %v9628_v5, %v8877_v52  ;;  %v9552_v5 = vld [vmem:[%s14479_s4 + $0x754] sm:$0xf]  ;;  %v8509_v52 = vld [vmem:[%s14479_s4 + $0x758] sm:$0xf0] }
 0x2a8   : > { %5687 = vmatpush.bf16.msra.mxu3 %v8912_v33  ;;  %5125 = vmatpush.bf16.msra.mxu0 %v8376_v42  ;;  %v3579_v33 = vpop.f32.mrf.mxu2  ;;  %v9624_v42 = vld [vmem:[%s14479_s4 + $0x994] sm:$0xf] }
 0x2a9   : > { %5100 = vmatpush.bf16.msrb.mxu2 %v8492_v17  ;;  %v3580_v36 = vadd.f32 %v3579_v33, %v3567_v56  ;;  %v8864_v4 = vor.u32 %v9624_v42, %v8861_v11  ;;  %v8856_v56 = vor.u32 %v9622_v21, %v8853_v62  ;;  %v9546_v42 = vld [vmem:[%s14479_s4 + $0x724] sm:$0xf]  ;;  %v8485_v11 = vld [vmem:[%s14479_s4 + $0x728] sm:$0xf0]  ;;  %v8667_v62 = vld [vmem:[%s14479_s4 + $0x810] sm:$0xf] }
 0x2aa   : > { %5667 = vmatpush.bf16.msra.mxu1 %v8736_v26  ;;  %v9510_v26 = vld [vmem:[%s14479_s4 + $0x604] sm:$0xf]  ;;  %v13997_v63 = vpop.f32.mrf.mxu3 }
 0x2ab   : > { %v13967_v18 = vadd.f32 %v13366_v29, %v3580_v36  ;;  %v9556_v29 = vld [vmem:[%s14479_s4 + $0x774] sm:$0xf]  ;;  %v8344_v13 = vor.u32 %v9510_v26, %v8341_v47 }
 0x2ac   : > { %5688 = vmatpush.bf16.msra.mxu3 %v8904_v15  ;;  %5126 = vmatpush.bf16.msra.mxu0 %v8368_v54  ;;  %v3596_v15 = vmul.f32 %v13958_v55, %v13958_v55  ;;  %v8528_v41 = vor.u32 %v9556_v29, %v8525_v51  ;;  %v8707_v54 = vld [vmem:[%s14479_s4 + $0x860] sm:$0xf]  ;;  %v9548_v47 = vld [vmem:[%s14479_s4 + $0x734] sm:$0xf]  ;;  %v8493_v29 = vld [vmem:[%s14479_s4 + $0x738] sm:$0xf0] }
 0x2ad   : > { %5101 = vmatpush.bf16.msrb.mxu2 %v8484_v53  ;;  %v3597_v32 = vmul.f32 %v13967_v18, %v13967_v18  ;;  %v8708_v53 = vor.u32 %v9587_v9, %v8707_v54  ;;  %v8683_v51 = vld [vmem:[%s14479_s4 + $0x830] sm:$0xf]  ;;  %v8477_v54 = vld [vmem:[%s14479_s4 + $0x718] sm:$0xf0] }
 0x2ae   : > { %5668 = vmatpush.bf16.msra.mxu1 %v8728_v59 }
 0x2af   : > { %v14006_v59 = vadd.f32 %v3597_v32, %v3596_v15  ;;  %v9581_v15 = vld [vmem:[%s14479_s4 + $0x834] sm:$0xf0] }
 0x2b0   : > { %5689 = vmatpush.bf16.msra.mxu3 %v8896_v49  ;;  %5127 = vmatpush.bf16.msra.mxu0 %v8360_v30  ;;  %v14008_v49 = vpop.f32.mrf.mxu1  ;;  %v3581_v17 = vpop.f32.mrf.mxu2  ;;  %v8699_v30 = vld [vmem:[%s14479_s4 + $0x850] sm:$0xf] }
 0x2b1   : > { %5669 = vmatmul.bf16.vlgmr.msra.gmra.mxu1 %v13728_v45  ;;  %v8349_v45 = vld [vmem:[%s14479_s4 + $0x618] sm:$0xf0]  ;;  %5102 = vmatpush.bf16.msrb.mxu2 %v8476_v58  ;;  %9727 = vrsqrt.f32 %v14006_v59  ;;  %v8501_v58 = vld [vmem:[%s14479_s4 + $0x748] sm:$0xf0]  ;;  %vm3606_vm6 = vcmp.eq.f32.partialorder %v14006_v59, inf  ;;  %v8488_v17 = vor.u32 %v9546_v42, %v8485_v11  ;;  %vm3608_vm7 = vcmp.eq.f32.partialorder %v14006_v59, 0.0 }
 0x2b2   : > { %v8352_v28 = vor.u32 %v9512_v34, %v8349_v45  ;;  %v4594_v35 = vpop.f32.mrf.mxu3  ;;  %v8512_v34 = vor.u32 %v9552_v5, %v8509_v52 }
 0x2b3   : > { %v9575_v35 = vld [vmem:[%s14479_s4 + $0x804] sm:$0xf0] }
 0x2b4   : > { %5690 = vmatpush.bf16.msra.mxu3 %v8888_v24  ;;  %5128 = vmatpush.bf16.msra.mxu0 %v8352_v28  ;;  %v8520_v24 = vor.u32 %v9554_v43, %v8517_v20  ;;  %v8504_v28 = vor.u32 %v9550_v38, %v8501_v58  ;;  %v4041_v43 = vadd.f32 %v13381_v39, %v4028_v60 }
 0x2b5   : > { %5103 = vmatpush.bf16.msrb.mxu2 %v8468_v27  ;;  %v8684_v27 = vor.u32 %v9581_v15, %v8683_v51 }
 0x2b7   : > { %v9728_v33 = vpop.eup %9727 }
 0x2b8   : > { %5691 = vmatpush.bf16.msra.mxu3 %v8880_v37  ;;  %5129 = vmatpush.bf16.msra.mxu0 %v8344_v13  ;;  %v3600_v45 = vmul.f32 %v9728_v33, %v14006_v59  ;;  %v4620_v36 = vpop.f32.mrf.mxu1  ;;  %v8700_v37 = vor.u32 %v9585_v31, %v8699_v30  ;;  %v9579_v13 = vld [vmem:[%s14479_s4 + $0x824] sm:$0xf0]  ;;  %v8469_v30 = vld [vmem:[%s14479_s4 + $0x708] sm:$0xf0]  ;;  %v8659_v31 = vld [vmem:[%s14479_s4 + $0x800] sm:$0xf] }
 0x2b9   : > { %5148 = vmatpush.bf16.msra.mxu2 %v8528_v41  ;;  %v3609_v41 = vand.u32 2147483648, %v14006_v59  ;;  %v8676_v20 = vor.u32 %v9579_v13, %v8675_v8  ;;  %v8717_v36 = vld [vmem:[%s14479_s4 + $0x878] sm:$0xf0]  ;;  %v8660_v58 = vor.u32 %v9575_v35, %v8659_v31 }
 0x2ba   : > { %5104 = vmatmul.bf16.vlgmr.msrb.gmra.mxu2 %v14029_v19  ;;  %v3601_v10 = vmul.f32 %v9728_v33, %v3600_v45  ;;  %v9588_v45 = vld [vmem:[%s14479_s4 + $0x874] sm:$0xf] }
 0x2bb   : > { %5130 = vmatmul.bf16.vlgmr.msra.gmra.mxu0 %v13841_v23  ;;  %v8691_v23 = vld [vmem:[%s14479_s4 + $0x840] sm:$0xf]  ;;  %v8720_v48 = vor.u32 %v9588_v45, %v8717_v36  ;;  %v9576_v36 = vld [vmem:[%s14479_s4 + $0x814] sm:$0xf] }
 0x2bc   : > { %5692 = vmatpush.bf16.msra.mxu3 %v8872_v57  ;;  %5596 = vmatpush.bf16.msrb.mxu0 %v8716_v2  ;;  %v3602_v7 = vmul.f32 0.5, %v3601_v10  ;;  %v8692_v26 = vor.u32 %v9583_v14, %v8691_v23  ;;  %v14072_v57 = vpop.f32.mrf.mxu0  ;;  %v5264_v14 = vunpack.c.l.b16 %v13165_v50  ;;  %v8709_v50 = vld [vmem:[%s14479_s4 + $0x868] sm:$0xf0] }
 0x2bd   : > { %5149 = vmatpush.bf16.msra.mxu2 %v8520_v24  ;;  %v4053_v21 = vpop.f32.mrf.mxu2 }
 0x2be   : > { %v3603_v32 = vsub.f32 1.5, %v3602_v7  ;;  %v14105_v24 = vadd.f32 %v4053_v21, %v4041_v43  ;;  %v8835_v7 = vld [vmem:[%s14479_s4 + $0x960] sm:$0xf]  ;;  %v3683_v43 = vperm.slane %v13879_v22, 1  ;;  %v8685_v21 = vld [vmem:[%s14479_s4 + $0x838] sm:$0xf0] }
 0x2c0   : > { %5693 = vmatpush.bf16.msra.mxu3 %v8864_v4  ;;  %5597 = vmatpush.bf16.msrb.mxu0 %v8708_v53  ;;  %v3604_v1 = vmul.f32 %v9728_v33, %v3603_v32  ;;  %v9544_v4 = vld [vmem:[%s14479_s4 + $0x714] sm:$0xf]  ;;  %v8843_v33 = vld [vmem:[%s14479_s4 + $0x970] sm:$0xf] }
 0x2c1   : > { %5150 = vmatpush.bf16.msra.mxu2 %v8512_v34  ;;  %v8480_v5 = vor.u32 %v9544_v4, %v8477_v54  ;;  %v9621_v34 = vld [vmem:[%s14479_s4 + $0x974] sm:$0xf0]  ;;  %v8811_v4 = vld [vmem:[%s14479_s4 + $0x930] sm:$0xf] }
 0x2c2   : > { %v3605_v16 = vmul.f32 %v3604_v1, %v14006_v59  ;;  %v8844_v23 = vor.u32 %v9621_v34, %v8843_v33  ;;  %v8827_v1 = vld [vmem:[%s14479_s4 + $0x950] sm:$0xf]  ;;  %v9613_v54 = vld [vmem:[%s14479_s4 + $0x934] sm:$0xf0] }
 0x2c3   : > { %v8795_v33 = vld [vmem:[%s14479_s4 + $0x910] sm:$0xf]  ;;  %v9609_v34 = vld [vmem:[%s14479_s4 + $0x914] sm:$0xf0] }
 0x2c4   : > { %5694 = vmatpush.bf16.msra.mxu3 %v8856_v56  ;;  %5598 = vmatpush.bf16.msrb.mxu0 %v8700_v37  ;;  %v3607_v2 = vsel %vm3606_vm6, %v14006_v59, %v3605_v16  ;;  %v9577_v59 = vld [vmem:[%s14479_s4 + $0x814] sm:$0xf0]  ;;  %v4081_v53 = vpop.f32.mrf.mxu0  ;;  %v9542_v56 = vld [vmem:[%s14479_s4 + $0x704] sm:$0xf]  ;;  %v9615_v16 = vld [vmem:[%s14479_s4 + $0x944] sm:$0xf0] }
 0x2c5   : > { %5151 = vmatpush.bf16.msra.mxu2 %v8504_v28  ;;  %v3610_v9 = vsel %vm3608_vm7, %v3609_v41, %v3607_v2  ;;  %v8668_v52 = vor.u32 %v9577_v59, %v8667_v62  ;;  %v8472_v38 = vor.u32 %v9542_v56, %v8469_v30  ;;  %v4055_v28 = vpop.f32.mrf.mxu2  ;;  %v9582_v41 = vld [vmem:[%s14479_s4 + $0x844] sm:$0xf]  ;;  %v8812_v59 = vor.u32 %v9613_v54, %v8811_v4  ;;  %v8677_v30 = vld [vmem:[%s14479_s4 + $0x828] sm:$0xf0] }
 0x2c6   : > { %v3611_v39 = vadd.f32 1e-05, %v3610_v9  ;;  %v9580_v9 = vld [vmem:[%s14479_s4 + $0x834] sm:$0xf]  ;;  %v9578_v56 = vld [vmem:[%s14479_s4 + $0x824] sm:$0xf] }
 0x2c7   : > { %5695 = vmatmul.bf16.vlgmr.msra.gmra.mxu3 %v13887_v25  ;;  %v8496_v25 = vor.u32 %v9548_v47, %v8493_v29  ;;  %v9586_v29 = vld [vmem:[%s14479_s4 + $0x864] sm:$0xf]  ;;  %v8688_v53 = vor.u32 %v9580_v9, %v8685_v21  ;;  %v8680_v35 = vor.u32 %v9578_v56, %v8677_v30  ;;  %v8821_v9 = vld [vmem:[%s14479_s4 + $0x948] sm:$0xf0] }
 0x2c8   : > { %5599 = vmatpush.bf16.msrb.mxu0 %v8692_v26  ;;  %9729 = vrcp.f32 %v3611_v39  ;;  %v9619_v26 = vld [vmem:[%s14479_s4 + $0x964] sm:$0xf0]  ;;  %v8712_v60 = vor.u32 %v9586_v29, %v8709_v50  ;;  %v4080_v39 = vadd.f32 %v14072_v57, %v3683_v43  ;;  %v9614_v54 = vld [vmem:[%s14479_s4 + $0x944] sm:$0xf] }
 0x2c9   : > { %5152 = vmatpush.bf16.msra.mxu2 %v8496_v25  ;;  %v8836_v32 = vor.u32 %v9619_v26, %v8835_v7  ;;  %v14154_v25 = vpack.c.b16 %v5264_v14, %v5264_v14  ;;  %v8796_v14 = vor.u32 %v9609_v34, %v8795_v33  ;;  %v8787_v7 = vld [vmem:[%s14479_s4 + $0x900] sm:$0xf]  ;;  %v9607_v26 = vld [vmem:[%s14479_s4 + $0x904] sm:$0xf0] }
 0x2ca   : > { %v14131_v37 = vpop.f32.mrf.mxu3  ;;  %v4093_v31 = vadd.f32 %v13591_v44, %v4080_v39  ;;  %v14225_v44 = vadd.f32 %v13579_v6, %v14105_v24  ;;  %v9574_v6 = vld [vmem:[%s14479_s4 + $0x804] sm:$0xf]  ;;  %v8661_v24 = vld [vmem:[%s14479_s4 + $0x808] sm:$0xf0]  ;;  %v4208_v39 = vperm.slane %v13660_v61, 2 }
 0x2cb   : > { %v9610_v61 = vld [vmem:[%s14479_s4 + $0x924] sm:$0xf] }
 0x2cc   : > { %5600 = vmatpush.bf16.msrb.mxu0 %v8684_v27  ;;  %v8701_v27 = vld [vmem:[%s14479_s4 + $0x858] sm:$0xf0]  ;;  %v4122_v29 = vmul.f32 %v14225_v44, %v14225_v44 }
 0x2cd   : > { %5153 = vmatpush.bf16.msra.mxu2 %v8488_v17  ;;  %v8693_v17 = vld [vmem:[%s14479_s4 + $0x848] sm:$0xf0] }
 0x2ce   : > { %v14134_v10 = vpop.f32.mrf.mxu1  ;;  %v9730_v47 = vpop.eup %9729 }
 0x2cf   : > { %v14149_v51 = vmul.f32 %v9730_v47, %v13958_v55  ;;  %v14152_v15 = vmul.f32 %v9730_v47, %v13967_v18  ;;  %v9617_v55 = vld [vmem:[%s14479_s4 + $0x954] sm:$0xf0]  ;;  %v9584_v18 = vld [vmem:[%s14479_s4 + $0x854] sm:$0xf]  ;;  %v8845_v47 = vld [vmem:[%s14479_s4 + $0x978] sm:$0xf0] }
 0x2d0   : > { %5601 = vmatpush.bf16.msrb.mxu0 %v8676_v20  ;;  %v8828_v11 = vor.u32 %v9617_v55, %v8827_v1  ;;  %v8704_v13 = vor.u32 %v9584_v18, %v8701_v27  ;;  %v8696_v20 = vor.u32 %v9582_v41, %v8693_v17  ;;  %v5266_v1 = vunpack.c.l.b16 %v13379_v40  ;;  %v8829_v41 = vld [vmem:[%s14479_s4 + $0x958] sm:$0xf0] }
 0x2d1   : > { %5154 = vmatpush.bf16.msra.mxu2 %v8480_v5  ;;  %v8803_v5 = vld [vmem:[%s14479_s4 + $0x920] sm:$0xf]  ;;  %v8664_v18 = vor.u32 %v9574_v6, %v8661_v24  ;;  %v8789_v24 = vld [vmem:[%s14479_s4 + $0x908] sm:$0xf0] }
 0x2d2   : > { %v4646_v42 = vpop.f32.mrf.mxu3 }
 0x2d4   : > { %5602 = vmatpush.bf16.msrb.mxu0 %v8668_v52  ;;  %v9611_v52 = vld [vmem:[%s14479_s4 + $0x924] sm:$0xf0] }
 0x2d5   : > { %5155 = vmatpush.bf16.msra.mxu2 %v8472_v38  ;;  %v8804_v57 = vor.u32 %v9611_v52, %v8803_v5  ;;  %v8669_v38 = vld [vmem:[%s14479_s4 + $0x818] sm:$0xf0] }
 0x2d6   : > { %v5094_v8 = vpop.f32.mrf.mxu1  ;;  %v8813_v5 = vld [vmem:[%s14479_s4 + $0x938] sm:$0xf0] }
 0x2d7   : > { %v9618_v8 = vld [vmem:[%s14479_s4 + $0x964] sm:$0xf] }
 0x2d8   : > { %5603 = vmatpush.bf16.msrb.mxu0 %v8660_v58  ;;  %5156 = vmatmul.bf16.vlgmr.msra.gmra.mxu2 %v14029_v19  ;;  %v8819_v19 = vld [vmem:[%s14479_s4 + $0x940] sm:$0xf]  ;;  %v14195_v62 = vpop.f32.mrf.mxu0 }
 0x2d9   : > { %5622 = vmatpush.bf16.msrb.mxu2 %v8844_v23  ;;  %v8820_v2 = vor.u32 %v9615_v16, %v8819_v19  ;;  %v5270_v19 = vpack.c.b16 %v5266_v1, %v5266_v1  ;;  %v9616_v16 = vld [vmem:[%s14479_s4 + $0x954] sm:$0xf] }
 0x2da   : > { %v8832_v43 = vor.u32 %v9616_v16, %v8829_v41 }
 0x2db   : > { %5604 = vmatmul.bf16.vlgmr.msrb.gmra.mxu0 %v14154_v25 }
 0x2dc   : > { %5648 = vmatpush.bf16.msra.mxu0 %v8720_v48  ;;  %v8672_v48 = vor.u32 %v9576_v36, %v8669_v38 }
 0x2dd   : > { %5623 = vmatpush.bf16.msrb.mxu2 %v8836_v32  ;;  %v4105_v45 = vpop.f32.mrf.mxu2 }
 0x2de   : > { %v4106_v58 = vadd.f32 %v4105_v45, %v4093_v31 }
 0x2e0   : > { %5649 = vmatpush.bf16.msra.mxu0 %v8712_v60  ;;  %v4555_v23 = vpop.f32.mrf.mxu0  ;;  %v14228_v28 = vadd.f32 %v13797_v46, %v4106_v58  ;;  %v9620_v46 = vld [vmem:[%s14479_s4 + $0x974] sm:$0xf]  ;;  %v8788_v60 = vor.u32 %v9607_v26, %v8787_v7  ;;  %v8797_v58 = vld [vmem:[%s14479_s4 + $0x918] sm:$0xf0] }
 0x2e1   : > { %5624 = vmatpush.bf16.msrb.mxu2 %v8828_v11  ;;  %v8848_v27 = vor.u32 %v9620_v46, %v8845_v47 }
 0x2e2   : > { %v4123_v50 = vmul.f32 %v14228_v28, %v14228_v28 }
 0x2e4   : > { %5650 = vmatpush.bf16.msra.mxu0 %v8704_v13  ;;  %v4124_v55 = vadd.f32 %v4123_v50, %v4122_v29  ;;  %v8837_v13 = vld [vmem:[%s14479_s4 + $0x968] sm:$0xf0] }
 0x2e5   : > { %5625 = vmatpush.bf16.msrb.mxu2 %v8820_v2  ;;  %v4107_v11 = vpop.f32.mrf.mxu2  ;;  %v8840_v40 = vor.u32 %v9618_v8, %v8837_v13 }
 0x2e6   : > { %9731 = vrsqrt.f32 %v4124_v55  ;;  %vm4132_vm8 = vcmp.eq.f32.partialorder %v4124_v55, inf  ;;  %v4135_v34 = vand.u32 2147483648, %v4124_v55  ;;  %vm4134_vm9 = vcmp.eq.f32.partialorder %v4124_v55, 0.0 }
 0x2e7   : > { %v4209_v11 = vperm.slane %v13879_v22, 2 }
 0x2e8   : > { %5651 = vmatpush.bf16.msra.mxu0 %v8696_v20 }
 0x2e9   : > { %5626 = vmatpush.bf16.msrb.mxu2 %v8812_v59  ;;  %v8824_v59 = vor.u32 %v9614_v54, %v8821_v9 }
 0x2ea   : > { %v14252_v32 = vpop.f32.mrf.mxu3 }
 0x2ec   : > { %5652 = vmatpush.bf16.msra.mxu0 %v8688_v53  ;;  %v9732_v2 = vpop.eup %9731 }
 0x2ed   : > { %5627 = vmatpush.bf16.msrb.mxu2 %v8804_v57  ;;  %v4126_v20 = vmul.f32 %v9732_v2, %v4124_v55  ;;  %v4554_v57 = vadd.f32 %v14195_v62, %v4208_v39  ;;  %v9608_v62 = vld [vmem:[%s14479_s4 + $0x914] sm:$0xf] }
 0x2ee   : > { %v14255_v42 = vpop.f32.mrf.mxu1  ;;  %v8800_v6 = vor.u32 %v9608_v62, %v8797_v58 }
 0x2ef   : > { %v4127_v21 = vmul.f32 %v9732_v2, %v4126_v20  ;;  %v4567_v38 = vadd.f32 %v13809_v3, %v4554_v57  ;;  %v9606_v3 = vld [vmem:[%s14479_s4 + $0x904] sm:$0xf] }
 0x2f0   : > { %5653 = vmatpush.bf16.msra.mxu0 %v8680_v35  ;;  %v8805_v35 = vld [vmem:[%s14479_s4 + $0x928] sm:$0xf0]  ;;  %v8792_v47 = vor.u32 %v9606_v3, %v8789_v24 }
 0x2f1   : > { %5628 = vmatpush.bf16.msrb.mxu2 %v8796_v14  ;;  %v4128_v53 = vmul.f32 0.5, %v4127_v21  ;;  %v8808_v45 = vor.u32 %v9610_v61, %v8805_v35 }
 0x2f2   : > { %v5120_v17 = vpop.f32.mrf.mxu3 }
 0x2f3   : > { %v4129_v52 = vsub.f32 1.5, %v4128_v53 }
 0x2f4   : > { %5654 = vmatpush.bf16.msra.mxu0 %v8672_v48 }
 0x2f5   : > { %5629 = vmatpush.bf16.msrb.mxu2 %v8788_v60  ;;  %v4130_v31 = vmul.f32 %v9732_v2, %v4129_v52 }
 0x2f6   : > { %v5146_v4 = vpop.f32.mrf.mxu1 }
 0x2f7   : > { %v4131_v33 = vmul.f32 %v4130_v31, %v4124_v55 }
 0x2f8   : > { %5655 = vmatpush.bf16.msra.mxu0 %v8664_v18  ;;  %5630 = vmatmul.bf16.vlgmr.msrb.gmra.mxu2 %v5270_v19  ;;  %v4605_v56 = vpop.f32.mrf.mxu0 }
 0x2f9   : > { %5674 = vmatpush.bf16.msra.mxu2 %v8848_v27  ;;  %v4133_v36 = vsel %vm4132_vm8, %v4124_v55, %v4131_v33  ;;  %v4606_v13 = vadd.f32 %v4605_v56, %v4209_v11 }
 0x2fa   : > { %v4136_v23 = vsel %vm4134_vm9, %v4135_v34, %v4133_v36 }
 0x2fb   : > { %5656 = vmatmul.bf16.vlgmr.msra.gmra.mxu0 %v14154_v25  ;;  %v9612_v25 = vld [vmem:[%s14479_s4 + $0x934] sm:$0xf]  ;;  %v4137_v48 = vadd.f32 1e-05, %v4136_v23 }
 0x2fc   : > { %v8816_v30 = vor.u32 %v9612_v25, %v8813_v5 }
 0x2fd   : > { %5675 = vmatpush.bf16.msra.mxu2 %v8840_v40  ;;  %v4579_v14 = vpop.f32.mrf.mxu2  ;;  %9733 = vrcp.f32 %v4137_v48  ;;  %v4619_v40 = vadd.f32 %v14008_v49, %v4606_v13 }
 0x2fe   : > { %v4580_v7 = vadd.f32 %v4579_v14, %v4567_v38 }
 0x300   : > { %v4607_v26 = vpop.f32.mrf.mxu0  ;;  %v4593_v41 = vadd.f32 %v13997_v63, %v4580_v7  ;;  %v14324_v63 = vld [vmem:[%s14480_s5] sm:$0x1f] }
 0x301   : > { %5676 = vmatpush.bf16.msra.mxu2 %v8832_v43 }
 0x302   : > { %v4648_v43 = vmul.f32 %v4593_v41, %v4593_v41 }
 0x303   : > { %v9734_v60 = vpop.eup %9733 }
 0x304   : > { %v14308_v1 = vmul.f32 %v9734_v60, %v14225_v44  ;;  %v14311_v55 = vmul.f32 %v9734_v60, %v14228_v28 }
 0x305   : > { %5677 = vmatpush.bf16.msra.mxu2 %v8824_v59  ;;  %v4581_v50 = vpop.f32.mrf.mxu2 }
 0x309   : > { %5678 = vmatpush.bf16.msra.mxu2 %v8816_v30 }
 0x30a   : > { %v14303_v46 = vpop.f32.mrf.mxu3 }
 0x30d   : > { %5679 = vmatpush.bf16.msra.mxu2 %v8808_v45 }
 0x30e   : > { %v14305_v29 = vpop.f32.mrf.mxu1 }
 0x311   : > { %5680 = vmatpush.bf16.msra.mxu2 %v8800_v6 }
 0x312   : > { %v5172_v18 = vpop.f32.mrf.mxu3 }
 0x313   : > { %v4735_v18 = vperm.slane %v13879_v22, 3 }
 0x315   : > { %5681 = vmatpush.bf16.msra.mxu2 %v8792_v47 }
 0x316   : > { %v5620_v27 = vpop.f32.mrf.mxu1 }
 0x318   : > { %5682 = vmatmul.bf16.vlgmr.msra.gmra.mxu2 %v5270_v19  ;;  %v5079_v8 = vpop.f32.mrf.mxu0 }
 0x31d   : > { %v4631_v16 = vpop.f32.mrf.mxu2 }
 0x31e   : > { %v4632_v17 = vadd.f32 %v4631_v16, %v4619_v40 }
 0x320   : > { %v5081_v2 = vpop.f32.mrf.mxu0  ;;  %v4645_v44 = vadd.f32 %v14131_v37, %v4632_v17  ;;  %v4734_v37 = vperm.slane %v14324_v63, 3 }
 0x322   : > { %v4649_v28 = vmul.f32 %v4645_v44, %v4645_v44  ;;  %v5080_v5 = vadd.f32 %v5079_v8, %v4734_v37 }
 0x324   : > { %v4650_v19 = vadd.f32 %v4649_v28, %v4648_v43  ;;  %v5093_v31 = vadd.f32 %v14134_v10, %v5080_v5 }
 0x325   : > { %v4633_v54 = vpop.f32.mrf.mxu2 }
 0x326   : > { %9735 = vrsqrt.f32 %v4650_v19  ;;  %vm4658_vm10 = vcmp.eq.f32.partialorder %v4650_v19, inf  ;;  %v4661_v57 = vand.u32 2147483648, %v4650_v19  ;;  %vm4660_vm11 = vcmp.eq.f32.partialorder %v4650_v19, 0.0 }
 0x32a   : > { %v14317_v20 = vpop.f32.mrf.mxu3 }
 0x32c   : > { %v9736_v21 = vpop.eup %9735 }
 0x32d   : > { %v4652_v59 = vmul.f32 %v9736_v21, %v4650_v19 }
 0x32e   : > { %v14319_v4 = vpop.f32.mrf.mxu1 }
 0x32f   : > { %v4653_v39 = vmul.f32 %v9736_v21, %v4652_v59 }
 0x331   : > { %v4654_v53 = vmul.f32 0.5, %v4653_v39 }
 0x332   : > { %v5646_v9 = vpop.f32.mrf.mxu3 }
 0x333   : > { %v4655_v25 = vsub.f32 1.5, %v4654_v53 }
 0x335   : > { %v4656_v56 = vmul.f32 %v9736_v21, %v4655_v25 }
 0x336   : > { %v5672_v49 = vpop.f32.mrf.mxu1 }
 0x337   : > { %v4657_v30 = vmul.f32 %v4656_v56, %v4650_v19 }
 0x338   : > { %v5131_v52 = vpop.f32.mrf.mxu0 }
 0x339   : > { %v4659_v61 = vsel %vm4658_vm10, %v4650_v19, %v4657_v30  ;;  %v5132_v27 = vadd.f32 %v5131_v52, %v4735_v18  ;;  %v9645_v18 = vld [vmem:[%s14482_s7 + $0x38] sm:$0xff] }
 0x33a   : > { %v4662_v33 = vsel %vm4660_vm11, %v4661_v57, %v4659_v61  ;;  %5898 = vmatpush.bf16.msrb.mxu0 %v9645_v18 }
 0x33b   : > { %v4663_v45 = vadd.f32 1e-05, %v4662_v33  ;;  %v5145_v8 = vadd.f32 %v14255_v42, %v5132_v27  ;;  %v9653_v27 = vld [vmem:[%s14482_s7 + $0x78] sm:$0xff] }
 0x33c   : > { %5911 = vmatpush.bf16.msrb.mxu1 %v9653_v27 }
 0x33d   : > { %v5105_v35 = vpop.f32.mrf.mxu2  ;;  %9737 = vrcp.f32 %v4663_v45 }
 0x33e   : > { %v5106_v34 = vadd.f32 %v5105_v35, %v5093_v31 }
 0x340   : > { %v5133_v36 = vpop.f32.mrf.mxu0  ;;  %v5119_v40 = vadd.f32 %v14252_v32, %v5106_v34 }
 0x341   : > { %v5260_v36 = vperm.slane %v14324_v63, 4 }
 0x342   : > { %v5174_v2 = vmul.f32 %v5119_v40, %v5119_v40 }
 0x343   : > { %v9738_v58 = vpop.eup %9737 }
 0x344   : > { %v4665_v23 = vmul.f32 %v9738_v58, %v4593_v41  ;;  %v4666_v14 = vmul.f32 %v9738_v58, %v4645_v44 }
 0x345   : > { %v5107_v62 = vpop.f32.mrf.mxu2 }
 0x346   : > { %v5719_v48 = vmul.f32 %v4665_v23, %v14149_v51  ;;  %v5720_v7 = vmul.f32 %v4666_v14, %v14152_v15  ;;  %v5722_v10 = vmul.f32 %v4666_v14, %v14149_v51  ;;  %v5723_v26 = vmul.f32 %v4665_v23, %v14152_v15 }
 0x348   : > { %v5721_v6 = vsub.f32 %v5719_v48, %v5720_v7  ;;  %v5724_v3 = vadd.f32 %v5723_v26, %v5722_v10 }
 0x34a   : > { %v14328_v38 = vpop.f32.mrf.mxu3  ;;  %v5751_v47 = vmul.f32 %v5721_v6, %v5721_v6  ;;  %v5752_v50 = vmul.f32 %v5724_v3, %v5724_v3 }
 0x34c   : > { %v5753_v60 = vadd.f32 %v5752_v50, %v5751_v47 }
 0x352   : > { %v5698_v24 = vpop.f32.mrf.mxu3 }
 0x358   : > { %v5605_v11 = vpop.f32.mrf.mxu0 }
 0x359   : > { %v5606_v47 = vadd.f32 %v5605_v11, %v5260_v36 }
 0x35b   : > { %v5157_v13 = vpop.f32.mrf.mxu2  ;;  %v5619_v11 = vadd.f32 %v14305_v29, %v5606_v47  ;;  %v9643_v29 = vld [vmem:[%s14482_s7 + $0x28] sm:$0xff] }
 0x35c   : > { %v5158_v16 = vadd.f32 %v5157_v13, %v5145_v8 }
 0x35e   : > { %v5171_v41 = vadd.f32 %v14303_v46, %v5158_v16 }
 0x360   : > { %v5607_v17 = vpop.f32.mrf.mxu0  ;;  %v5175_v44 = vmul.f32 %v5171_v41, %v5171_v41 }
 0x362   : > { %v5176_v43 = vadd.f32 %v5175_v44, %v5174_v2  ;;  %v9651_v2 = vld [vmem:[%s14482_s7 + $0x68] sm:$0xff] }
 0x363   : > { %v5159_v28 = vpop.f32.mrf.mxu2 }
 0x364   : > { %9739 = vrsqrt.f32 %v5176_v43  ;;  %vm5184_vm12 = vcmp.eq.f32.partialorder %v5176_v43, inf  ;;  %v5187_v37 = vand.u32 2147483648, %v5176_v43  ;;  %vm5186_vm13 = vcmp.eq.f32.partialorder %v5176_v43, 0.0  ;;  %v9642_v28 = vld [vmem:[%s14482_s7 + $0x20] sm:$0xff] }
 0x36a   : > { %v9740_v19 = vpop.eup %9739 }
 0x36b   : > { %v5178_v54 = vmul.f32 %v9740_v19, %v5176_v43 }
 0x36d   : > { %v5179_v9 = vmul.f32 %v9740_v19, %v5178_v54 }
 0x36f   : > { %v5180_v21 = vmul.f32 0.5, %v5179_v9  ;;  %v9649_v9 = vld [vmem:[%s14482_s7 + $0x58] sm:$0xff] }
 0x371   : > { %v5181_v59 = vsub.f32 1.5, %v5180_v21  ;;  %v9640_v21 = vld [vmem:[%s14482_s7 + $0x10] sm:$0xff] }
 0x373   : > { %v5182_v49 = vmul.f32 %v9740_v19, %v5181_v59  ;;  %v9648_v59 = vld [vmem:[%s14482_s7 + $0x50] sm:$0xff] }
 0x375   : > { %v5183_v42 = vmul.f32 %v5182_v49, %v5176_v43 }
 0x377   : > { %v5185_v32 = vsel %vm5184_vm12, %v5176_v43, %v5183_v42  ;;  %v9639_v42 = vld [vmem:[%s14482_s7 + $0x8] sm:$0xff] }
 0x378   : > { %v5657_v39 = vpop.f32.mrf.mxu0  ;;  %v5188_v53 = vsel %vm5186_vm13, %v5187_v37, %v5185_v32  ;;  %v9647_v37 = vld [vmem:[%s14482_s7 + $0x48] sm:$0xff] }
 0x379   : > { %v5189_v25 = vadd.f32 1e-05, %v5188_v53 }
 0x37b   : > { %v5631_v46 = vpop.f32.mrf.mxu2  ;;  %9741 = vrcp.f32 %v5189_v25  ;;  %v9646_v25 = vld [vmem:[%s14482_s7 + $0x40] sm:$0xff] }
 0x37c   : > { %v5632_v13 = vadd.f32 %v5631_v46, %v5619_v11  ;;  %v9638_v46 = vld [vmem:[%s14482_s7] sm:$0xff] }
 0x380   : > { %v5659_v5 = vpop.f32.mrf.mxu0 }
 0x381   : > { %v9742_v56 = vpop.eup %9741 }
 0x382   : > { %v5191_v30 = vmul.f32 %v9742_v56, %v5119_v40  ;;  %v5192_v57 = vmul.f32 %v9742_v56, %v5171_v41  ;;  %v5645_v41 = vadd.f32 %v14317_v20, %v5632_v13  ;;  %v9650_v20 = vld [vmem:[%s14482_s7 + $0x60] sm:$0xff] }
 0x383   : > { %v5633_v52 = vpop.f32.mrf.mxu2 }
 0x384   : > { %v5725_v31 = vmul.f32 %v5191_v30, %v14149_v51  ;;  %v5726_v61 = vmul.f32 %v5192_v57, %v14152_v15  ;;  %v5728_v35 = vmul.f32 %v5192_v57, %v14149_v51  ;;  %v5729_v33 = vmul.f32 %v5191_v30, %v14152_v15 }
 0x385   : > { %v5700_v43 = vmul.f32 %v5645_v41, %v5645_v41 }
 0x386   : > { %v5727_v34 = vsub.f32 %v5725_v31, %v5726_v61  ;;  %v5730_v45 = vadd.f32 %v5729_v33, %v5728_v35 }
 0x388   : > { %v5737_v62 = vadd.f32 %v5727_v34, %v5721_v6  ;;  %v5738_v58 = vadd.f32 %v5730_v45, %v5724_v3  ;;  %v5754_v23 = vmul.f32 %v5727_v34, %v5727_v34  ;;  %v5755_v14 = vmul.f32 %v5730_v45, %v5730_v45 }
 0x389   : > { %v5261_v6 = vperm.slane %v13879_v22, 4  ;;  %v9644_v22 = vld [vmem:[%s14482_s7 + $0x30] sm:$0xff] }
 0x38a   : > { %v14344_v48 = vmul.f32 %v5737_v62, %v14308_v1  ;;  %v14347_v7 = vmul.f32 %v5738_v58, %v14311_v55  ;;  %v5742_v10 = vmul.f32 %v5737_v62, %v14311_v55  ;;  %v5743_v26 = vmul.f32 %v5738_v58, %v14308_v1  ;;  %5899 = vmatpush.bf16.msrb.mxu0 %v9644_v22 }
 0x38b   : > { %v5756_v24 = vadd.f32 %v5755_v14, %v5754_v23  ;;  %v5658_v8 = vadd.f32 %v5657_v39, %v5261_v6 }
 0x38c   : > { %v5741_v50 = vsub.f32 %v14344_v48, %v14347_v7  ;;  %v14353_v63 = vadd.f32 %v5743_v26, %v5742_v10 }
 0x38d   : > { %v14356_v3 = vadd.f32 %v5756_v24, %v5753_v60  ;;  %v9652_v60 = vld [vmem:[%s14482_s7 + $0x70] sm:$0xff]  ;;  %v5671_v40 = vadd.f32 %v14319_v4, %v5658_v8 }
 0x38e   : > { %5912 = vmatpush.bf16.msrb.mxu1 %v9652_v60  ;;  %5900 = vmatpush.bf16.msrb.mxu0 %v9643_v29 }
 0x392   : > { %5913 = vmatpush.bf16.msrb.mxu1 %v9651_v2  ;;  %5901 = vmatpush.bf16.msrb.mxu0 %v9642_v28 }
 0x396   : > { %5914 = vmatpush.bf16.msrb.mxu1 %v9650_v20 }
 0x39a   : > { %5915 = vmatpush.bf16.msrb.mxu1 %v9649_v9 }
 0x39b   : > { %v5683_v16 = vpop.f32.mrf.mxu2 }
 0x39c   : > { %v5684_v17 = vadd.f32 %v5683_v16, %v5671_v40 }
 0x39e   : > { %v5697_v44 = vadd.f32 %v14328_v38, %v5684_v17  ;;  %v9641_v38 = vld [vmem:[%s14482_s7 + $0x18] sm:$0xff]  ;;  %5916 = vmatpush.bf16.msrb.mxu1 %v9648_v59 }
 0x39f   : > { %5902 = vmatpush.bf16.msrb.mxu0 %v9641_v38 }
 0x3a0   : > { %v5701_v4 = vmul.f32 %v5697_v44, %v5697_v44 }
 0x3a2   : > { %v5702_v19 = vadd.f32 %v5701_v4, %v5700_v43  ;;  %5917 = vmatpush.bf16.msrb.mxu1 %v9647_v37 }
 0x3a3   : > { %v5685_v54 = vpop.f32.mrf.mxu2  ;;  %5903 = vmatpush.bf16.msrb.mxu0 %v9640_v21 }
 0x3a4   : > { %9743 = vrsqrt.f32 %v5702_v19  ;;  %vm5710_vm14 = vcmp.eq.f32.partialorder %v5702_v19, inf  ;;  %v5713_v30 = vand.u32 2147483648, %v5702_v19  ;;  %vm5712_vm15 = vcmp.eq.f32.partialorder %v5702_v19, 0.0 }
 0x3a6   : > { %5918 = vmatpush.bf16.msrb.mxu1 %v9646_v25 }
 0x3a7   : > { %5904 = vmatpush.bf16.msrb.mxu0 %v9639_v42 }
 0x3aa   : > { %v9744_v49 = vpop.eup %9743 }
 0x3ab   : > { %v5704_v39 = vmul.f32 %v9744_v49, %v5702_v19  ;;  %5905 = vmatpush.bf16.msrb.mxu0 %v9638_v46 }
 0x3ad   : > { %v5705_v32 = vmul.f32 %v9744_v49, %v5704_v39 }
 0x3af   : > { %v5706_v53 = vmul.f32 0.5, %v5705_v32 }
 0x3b1   : > { %v5707_v5 = vsub.f32 1.5, %v5706_v53 }
 0x3b3   : > { %v5708_v52 = vmul.f32 %v9744_v49, %v5707_v5 }
 0x3b5   : > { %v5709_v56 = vmul.f32 %v5708_v52, %v5702_v19 }
 0x3b7   : > { %v5711_v57 = vsel %vm5710_vm14, %v5702_v19, %v5709_v56 }
 0x3b8   : > { %v5714_v31 = vsel %vm5712_vm15, %v5713_v30, %v5711_v57 }
 0x3b9   : > { %v5715_v61 = vadd.f32 1e-05, %v5714_v31 }
 0x3bb   : > { %9745 = vrcp.f32 %v5715_v61 }
 0x3c1   : > { %v9746_v35 = vpop.eup %9745 }
 0x3c2   : > { %v5717_v33 = vmul.f32 %v9746_v35, %v5645_v41  ;;  %v5718_v34 = vmul.f32 %v9746_v35, %v5697_v44 }
 0x3c4   : > { %v5731_v45 = vmul.f32 %v5717_v33, %v14308_v1  ;;  %v5732_v36 = vmul.f32 %v5718_v34, %v14311_v55  ;;  %v5734_v62 = vmul.f32 %v5718_v34, %v14308_v1  ;;  %v5735_v58 = vmul.f32 %v5717_v33, %v14311_v55 }
 0x3c6   : > { %v5733_v23 = vsub.f32 %v5731_v45, %v5732_v36  ;;  %v5736_v14 = vadd.f32 %v5735_v58, %v5734_v62 }
 0x3c8   : > { %v5745_v10 = vmul.f32 %v5733_v23, %v14149_v51  ;;  %v5746_v26 = vmul.f32 %v5736_v14, %v14152_v15  ;;  %v5748_v24 = vmul.f32 %v5733_v23, %v14152_v15  ;;  %v5749_v47 = vmul.f32 %v5736_v14, %v14149_v51 }
 0x3c9   : > { %v5758_v6 = vmul.f32 %v5733_v23, %v5733_v23  ;;  %v5759_v18 = vmul.f32 %v5736_v14, %v5736_v14 }
 0x3ca   : > { %v5747_v27 = vsub.f32 %v5745_v10, %v5746_v26  ;;  %v5750_v8 = vadd.f32 %v5749_v47, %v5748_v24 }
 0x3cb   : > { %v5760_v11 = vadd.f32 %v5759_v18, %v5758_v6 }
 0x3cc   : > { %v5762_v1 = vadd.f32 %v5747_v27, %v5741_v50  ;;  %v5765_v55 = vadd.f32 %v5750_v8, %v14353_v63 }
 0x3cd   : > { %v5761_v13 = vadd.f32 %v5760_v11, %v14356_v3 }
 0x3cf   : > { %v5763_v15 = vmul.f32 %v5761_v13, %v13532_v12  ;;  %v5766_v51 = vmul.f32 %v5761_v13, %v12937_v0  ;;  %v2963_v12 = vld [vmem:[%s9974_s16] sm:$0xff] }
 0x3d1   : > { %v5764_v22 = vsub.f32 %v5762_v1, %v5763_v15  ;;  %v5767_v60 = vsub.f32 %v5765_v55, %v5766_v51 }
 0x3d3   : > { %v5800_v40 = vpack.c.bf16 %v5764_v22, %v5764_v22  ;;  %v5801_v16 = vpack.c.bf16 %v5767_v60, %v5767_v60 }
 0x3d5   : > { %5906 = vmatmul.bf16.vlgmr.msrb.gmra.mxu0 %v5800_v40  ;;  %5919 = vmatmul.bf16.vlgmr.msrb.gmra.mxu1 %v5801_v16 }
 0x452   : > { %v5907_v48 = vpop.f32.mrf.mxu0  ;;  %v5920_v7 = vpop.f32.mrf.mxu1 }
 0x453   : > { %v5921_v0 = vadd.f32 %v5920_v7, %v5907_v48 }
 0x455   : > { %v5924_v50 = vadd.f32 %v5921_v0, %v2963_v12 }
 0x457   : > { %5925 = vst [vmem:[%s14498_s24] sm:$0xff] %v5924_v50 }
 0x458   : > { %9776 = shalt.err (!%p9773_p9)
}
 0x459   : > { %9654 = dma.vmem_to_hbm [thread:$0]  (%p9942_p3), %s5942_s17, 128, %s5944_s20, %s5927_s30  }
 0x45a   : > { %v5909_v63 = vpop.f32.mrf.mxu0  ;;  %v5922_v3 = vpop.f32.mrf.mxu1 }
 0x45b PF: > { %p9660_p10 = scmp.ge.s32.totalorder %s9843_s12, 2  ;;  %s5955_s25 = sand.u32 1, %s9815_s27  }
 0x45c   : > { %s5956_s26 = scalar_lea.sflag [#allocation6], %s5955_s25 }
 0x45d   : > { %p9657_p11 = pnand %p9660_p10, %p9951_p8 }
 0x45f   : > { %p9658_p12 = pneg %p9657_p11 }
 0x461   : > { %9810 = dma.done.wait (%p9658_p12), %s5956_s26, 128  }
 0x462   : > { %9812 = vsyncadd (%p9658_p12), %s5956_s26, 4294967168  ;;  %s21_s12 = sadd.s32 1, %s9843_s12   ;;  %s14500_s9 = sld [smem:[#allocation8_spill]] }
 0x463   : > { %p18_p13 = scmp.ge.s32.totalorder %s21_s12, 6   ;;  %s14501_s18 = sld [smem:[#allocation9_spill]] }
 0x464   : > { %s14502_s11 = sld [smem:[#allocation10_spill]]  ;;  %s14503_s27 = smov %s9819_s28 }
 0x465   : > { %s14504_s28 = smov %s9823_s29  ;;  %s14505_s29 = smov %s9960_s23 }
 0x466   : > { %s14506_s30 = smov %s9835_s10  ;;  %20 = sbr.rel (!%p18_p13) target bundleno = 8 (0x8), region = 96 }
 0x469   : > { %s14507_s10 = smov %s14501_s18 }
 0x46b   :  { %5962 = vsyncpa [#allocation6], 1 }
 0x46c   :  { %5964 = vsyncpa [#allocation6 + $0x1], 1 }

</bundles_post_ra>
